<compile_context>
chip_gen: v6e
topology: v6e:2x2x1
jax: 0.10.0
libtpu: 0.0.40
codegen_flags: <defaults>
</compile_context>

<pallas_src>
import functools

import jax
import jax.numpy as jnp
from jax.experimental import pallas as pl
from jax.experimental.pallas import tpu as pltpu


_LANE = 128      # TPU lane width; each LSTM gate gets one full lane block
_SUBLANE = 8     # f32 sublane count; batch is padded to a multiple of this


def _round_up(n, m):
    return ((n + m - 1) // m) * m


def _lstm_kernel(x_ref, w_ih_ref, w_hh_ref, b_ref, w_fc_ref, b_fc_ref,
                 logits_ref, hn_ref, cn_ref):
    """Single-layer LSTM recurrence + final linear, entirely VMEM-resident.

    x_ref:    (Bp, S, I)   batch-major input (batch padded to a sublane multiple)
    w_ih_ref: (I, 4*Hp)    input->gate weights, bf16, gate-block-padded columns
    w_hh_ref: (Hp, 4*Hp)   hidden->gate weights, bf16, zero rows >= H
    b_ref:    (1, 4*Hp)    combined bias (b_ih + b_hh), f32, zero in pad lanes
    w_fc_ref: (Hp, O)      fc weight, bf16, zero rows >= H
    b_fc_ref: (1, O)       fc bias, f32
    logits_ref: (Bp, O)    fc(out[:, -1, :])
    hn_ref:   (Bp, H)      final hidden state
    cn_ref:   (Bp, H)      final cell state
    """
    Bp, S, I = x_ref.shape
    Hp = w_hh_ref.shape[0]          # padded hidden width = one full lane block
    H = hn_ref.shape[1]             # real hidden width

    # ---- Hoisted input projection: one batched matmul for all timesteps ----
    x_all = x_ref[...].astype(jnp.bfloat16).reshape(Bp * S, I)
    xg = jnp.dot(x_all, w_ih_ref[...],
                 preferred_element_type=jnp.float32) + b_ref[...]   # (Bp*S, 4Hp) f32
    xg = xg.reshape(Bp, S, 4 * Hp)

    # Real state lives in lanes [0, H); padded lanes stay exactly 0 throughout
    # (pad gate columns/bias are zero, and w_hh/w_fc pad rows are zero).
    h = jnp.zeros((Bp, Hp), jnp.float32)
    c = jnp.zeros((Bp, Hp), jnp.float32)

    # ---- Statically unrolled recurrence (S is compile-time known) ----
    for t in range(S):
        gates = xg[:, t, :] + jnp.dot(h.astype(jnp.bfloat16), w_hh_ref[...],
                                      preferred_element_type=jnp.float32)
        # One full 128-lane block per gate -> whole-vreg static slices.
        i_g = jax.nn.sigmoid(gates[:, 0 * Hp:1 * Hp])
        f_g = jax.nn.sigmoid(gates[:, 1 * Hp:2 * Hp])
        g_g = jnp.tanh(gates[:, 2 * Hp:3 * Hp])
        o_g = jax.nn.sigmoid(gates[:, 3 * Hp:4 * Hp])
        c = f_g * c + i_g * g_g
        h = o_g * jnp.tanh(c)

    logits_ref[...] = (jnp.dot(h.astype(jnp.bfloat16), w_fc_ref[...],
                               preferred_element_type=jnp.float32)
                       + b_fc_ref[...])
    hn_ref[...] = h[:, :H]
    cn_ref[...] = c[:, :H]


def pack_params(params, hidden_dim):
    """Pad the (PyTorch-layout, transposed) f32 params into kernel operands.

    Each of the 4 gates gets its own 128-lane column block; the hidden / fc
    contraction dims are zero-padded to the same width; matmul operands are
    cast to bf16 (accumulation stays f32 on the MXU). Done once per param set.
    """
    H = hidden_dim
    Hp = _round_up(max(H, _LANE), _LANE)

    def gate_block_pad(w):                       # (rows, 4H) -> (rows, 4*Hp)
        rows = w.shape[0]
        w4 = w.reshape(rows, 4, H)
        return jnp.pad(w4, ((0, 0), (0, 0), (0, Hp - H))).reshape(rows, 4 * Hp)

    w_ih = gate_block_pad(params["w_ih_T"])                        # (I, 4Hp)
    w_hh = jnp.pad(gate_block_pad(params["w_hh_T"]),
                   ((0, Hp - H), (0, 0)))                          # (Hp, 4Hp)
    bias = gate_block_pad(params["bias"])                          # (1, 4Hp)
    w_fc = jnp.pad(params["w_fc_T"], ((0, Hp - H), (0, 0)))        # (Hp, O)

    return {
        "w_ih": w_ih.astype(jnp.bfloat16),
        "w_hh": w_hh.astype(jnp.bfloat16),
        "bias": bias.astype(jnp.float32),
        "w_fc": w_fc.astype(jnp.bfloat16),
        "b_fc": params["b_fc"].astype(jnp.float32),
    }


@functools.partial(jax.jit, static_argnames=("hidden_dim",))
def lstm_forward(x, packed, hidden_dim):
    """x: (B, S, I) float32. Returns (logits, (h_n, c_n)) matching PyTorch."""
    B, S, I = x.shape
    H = hidden_dim
    O = packed["b_fc"].shape[1]

    Bp = _round_up(max(B, _SUBLANE), _SUBLANE)     # fill the sublane dimension
    x_p = jnp.pad(x, ((0, Bp - B), (0, 0), (0, 0))) if Bp != B else x

    logits, h_n, c_n = pl.pallas_call(
        _lstm_kernel,
        out_shape=(
            jax.ShapeDtypeStruct((Bp, O), jnp.float32),
            jax.ShapeDtypeStruct((Bp, H), jnp.float32),
            jax.ShapeDtypeStruct((Bp, H), jnp.float32),
        ),
        in_specs=[pl.BlockSpec(memory_space=pltpu.MemorySpace.VMEM)] * 6,
        out_specs=(
            pl.BlockSpec(memory_space=pltpu.MemorySpace.VMEM),
            pl.BlockSpec(memory_space=pltpu.MemorySpace.VMEM),
            pl.BlockSpec(memory_space=pltpu.MemorySpace.VMEM),
        ),
        compiler_params=pltpu.CompilerParams(vmem_limit_bytes=32 * 1024 * 1024),
    )(x_p, packed["w_ih"], packed["w_hh"], packed["bias"],
      packed["w_fc"], packed["b_fc"])

    # PyTorch returns hidden with a leading n_layers dim (n_layers = 1).
    return logits[:B], (h_n[None, :B, :], c_n[None, :B, :])


def lstm_forward_ref(x, params):
    """Pure-JAX f32 reference with identical semantics (for validation)."""
    B, S, I = x.shape
    H = params["w_hh_T"].shape[0]
    h = jnp.zeros((B, H), jnp.float32)
    c = jnp.zeros((B, H), jnp.float32)
    for t in range(S):
        gates = x[:, t, :] @ params["w_ih_T"] + h @ params["w_hh_T"] + params["bias"]
        i_g = jax.nn.sigmoid(gates[:, 0:H])
        f_g = jax.nn.sigmoid(gates[:, H:2 * H])
        g_g = jnp.tanh(gates[:, 2 * H:3 * H])
        o_g = jax.nn.sigmoid(gates[:, 3 * H:4 * H])
        c = f_g * c + i_g * g_g
        h = o_g * jnp.tanh(c)
    logits = h @ params["w_fc_T"] + params["b_fc"]
    return logits, (h[None], c[None])


def init_params(key, input_size, hidden_dim, output_size):
    """Deterministic init mirroring PyTorch's U(-1/sqrt(H), 1/sqrt(H))."""
    k = 1.0 / jnp.sqrt(jnp.float32(hidden_dim))
    keys = jax.random.split(key, 6)
    w_ih = jax.random.uniform(keys[0], (4 * hidden_dim, input_size), jnp.float32, -k, k)
    w_hh = jax.random.uniform(keys[1], (4 * hidden_dim, hidden_dim), jnp.float32, -k, k)
    b_ih = jax.random.uniform(keys[2], (4 * hidden_dim,), jnp.float32, -k, k)
    b_hh = jax.random.uniform(keys[3], (4 * hidden_dim,), jnp.float32, -k, k)
    w_fc = jax.random.uniform(keys[4], (output_size, hidden_dim), jnp.float32, -k, k)
    b_fc = jax.random.uniform(keys[5], (output_size,), jnp.float32, -k, k)
    return {
        "w_ih_T": w_ih.T,                       # (I, 4H)   gate order i,f,g,o
        "w_hh_T": w_hh.T,                       # (H, 4H)
        "bias": (b_ih + b_hh)[None, :],         # (1, 4H)
        "w_fc_T": w_fc.T,                       # (H, O)
        "b_fc": b_fc[None, :],                  # (1, O)
    }


if __name__ == "__main__":
    batch, seq, input_size, hidden_dim, output_size = 2, 8, 16, 32, 20

    key = jax.random.PRNGKey(0)
    k_x, k_p = jax.random.split(key)
    # x is the embedded item sequence the PyTorch model feeds to forward().
    x = jax.random.normal(k_x, (batch, seq, input_size), jnp.float32)
    params = init_params(k_p, input_size, hidden_dim, output_size)
    packed = pack_params(params, hidden_dim)

    logits, (h_n, c_n) = jax.block_until_ready(lstm_forward(x, packed, hidden_dim))
    logits_ref, (h_ref, c_ref) = lstm_forward_ref(x, params)

    assert logits.shape == (batch, output_size)
    assert h_n.shape == (1, batch, hidden_dim) and c_n.shape == (1, batch, hidden_dim)
    # Kernel uses bf16 MXU operands (f32 accumulation), so compare against the
    # pure-f32 reference with a correspondingly relaxed tolerance.
    assert jnp.allclose(logits, logits_ref, atol=3e-2, rtol=3e-2)
    assert jnp.allclose(h_n, h_ref, atol=3e-2, rtol=3e-2)
    assert jnp.allclose(c_n, c_ref, atol=3e-2, rtol=3e-2)

    print("KERNEL_OK")
</pallas_src>

<mosaic_0001>
module attributes {stable_mosaic.version = 11 : i64} {
  func.func @_lstm_kernel(%arg0: memref<8x8x16xf32, #tpu.memory_space<vmem>>, %arg1: memref<16x512xbf16, #tpu.memory_space<vmem>>, %arg2: memref<128x512xbf16, #tpu.memory_space<vmem>>, %arg3: memref<1x512xf32, #tpu.memory_space<vmem>>, %arg4: memref<128x20xbf16, #tpu.memory_space<vmem>>, %arg5: memref<1x20xf32, #tpu.memory_space<vmem>>, %arg6: memref<8x20xf32, #tpu.memory_space<vmem>>, %arg7: memref<8x32xf32, #tpu.memory_space<vmem>>, %arg8: memref<8x32xf32, #tpu.memory_space<vmem>>) attributes {dimension_semantics = [], scalar_prefetch = 0 : i64, scratch_operands = 0 : i64, tpu.core_type = #tpu.core_type<tc>} {
    %c0 = arith.constant 0 : index
    %c0_0 = arith.constant 0 : index
    %c0_1 = arith.constant 0 : index
    %0 = vector.load %arg0[%c0, %c0_0, %c0_1] : memref<8x8x16xf32, #tpu.memory_space<vmem>>, vector<8x8x16xf32>
    %1 = arith.truncf %0 : vector<8x8x16xf32> to vector<8x8x16xbf16>
    %2 = vector.shape_cast %1 : vector<8x8x16xbf16> to vector<64x16xbf16>
    %c0_2 = arith.constant 0 : index
    %c0_3 = arith.constant 0 : index
    %3 = vector.load %arg1[%c0_2, %c0_3] : memref<16x512xbf16, #tpu.memory_space<vmem>>, vector<16x512xbf16>
    %cst = arith.constant dense<0.000000e+00> : vector<64x512xf32>
    %4 = tpu.matmul %2, %3, %cst {dimension_numbers = #tpu.dot_dimension_numbers<[1], [0], [0], [1], [0, 0, 1, 1], [], []>} : vector<64x16xbf16>, vector<16x512xbf16>, vector<64x512xf32> -> vector<64x512xf32>
    %c0_4 = arith.constant 0 : index
    %c0_5 = arith.constant 0 : index
    %5 = vector.load %arg3[%c0_4, %c0_5] : memref<1x512xf32, #tpu.memory_space<vmem>>, vector<1x512xf32>
    %6 = vector.broadcast %5 : vector<1x512xf32> to vector<64x512xf32>
    %7 = arith.addf %4, %6 : vector<64x512xf32>
    %8 = vector.shape_cast %7 : vector<64x512xf32> to vector<8x8x512xf32>
    %cst_6 = arith.constant 0.000000e+00 : f32
    %9 = vector.broadcast %cst_6 : f32 to vector<8x128xf32>
    %cst_7 = arith.constant 0.000000e+00 : f32
    %10 = vector.broadcast %cst_7 : f32 to vector<8x128xf32>
    %11 = vector.extract_strided_slice %8 {offsets = [0, 0, 0], sizes = [8, 1, 512], strides = [1, 1, 1]} : vector<8x8x512xf32> to vector<8x1x512xf32>
    %12 = vector.shape_cast %11 : vector<8x1x512xf32> to vector<8x512xf32>
    %13 = arith.truncf %9 : vector<8x128xf32> to vector<8x128xbf16>
    %c0_8 = arith.constant 0 : index
    %c0_9 = arith.constant 0 : index
    %14 = vector.load %arg2[%c0_8, %c0_9] : memref<128x512xbf16, #tpu.memory_space<vmem>>, vector<128x512xbf16>
    %cst_10 = arith.constant dense<0.000000e+00> : vector<8x512xf32>
    %15 = tpu.matmul %13, %14, %cst_10 {dimension_numbers = #tpu.dot_dimension_numbers<[1], [0], [0], [1], [0, 0, 1, 1], [], []>} : vector<8x128xbf16>, vector<128x512xbf16>, vector<8x512xf32> -> vector<8x512xf32>
    %16 = arith.addf %12, %15 : vector<8x512xf32>
    %17 = vector.extract_strided_slice %16 {offsets = [0, 0], sizes = [8, 128], strides = [1, 1]} : vector<8x512xf32> to vector<8x128xf32>
    %18 = arith.negf %17 : vector<8x128xf32>
    %19 = math.exp %18 : vector<8x128xf32>
    %cst_11 = arith.constant 1.000000e+00 : f32
    %20 = vector.broadcast %cst_11 : f32 to vector<8x128xf32>
    %21 = arith.addf %20, %19 : vector<8x128xf32>
    %22 = arith.divf %20, %21 : vector<8x128xf32>
    %23 = vector.extract_strided_slice %16 {offsets = [0, 128], sizes = [8, 128], strides = [1, 1]} : vector<8x512xf32> to vector<8x128xf32>
    %24 = arith.negf %23 : vector<8x128xf32>
    %25 = math.exp %24 : vector<8x128xf32>
    %cst_12 = arith.constant 1.000000e+00 : f32
    %26 = vector.broadcast %cst_12 : f32 to vector<8x128xf32>
    %27 = arith.addf %26, %25 : vector<8x128xf32>
    %28 = arith.divf %26, %27 : vector<8x128xf32>
    %29 = vector.extract_strided_slice %16 {offsets = [0, 256], sizes = [8, 128], strides = [1, 1]} : vector<8x512xf32> to vector<8x128xf32>
    %30 = math.tanh %29 : vector<8x128xf32>
    %31 = vector.extract_strided_slice %16 {offsets = [0, 384], sizes = [8, 128], strides = [1, 1]} : vector<8x512xf32> to vector<8x128xf32>
    %32 = arith.negf %31 : vector<8x128xf32>
    %33 = math.exp %32 : vector<8x128xf32>
    %cst_13 = arith.constant 1.000000e+00 : f32
    %34 = vector.broadcast %cst_13 : f32 to vector<8x128xf32>
    %35 = arith.addf %34, %33 : vector<8x128xf32>
    %36 = arith.divf %34, %35 : vector<8x128xf32>
    %37 = arith.mulf %28, %10 : vector<8x128xf32>
    %38 = arith.mulf %22, %30 : vector<8x128xf32>
    %39 = arith.addf %37, %38 : vector<8x128xf32>
    %40 = math.tanh %39 : vector<8x128xf32>
    %41 = arith.mulf %36, %40 : vector<8x128xf32>
    %42 = vector.extract_strided_slice %8 {offsets = [0, 1, 0], sizes = [8, 1, 512], strides = [1, 1, 1]} : vector<8x8x512xf32> to vector<8x1x512xf32>
    %43 = vector.shape_cast %42 : vector<8x1x512xf32> to vector<8x512xf32>
    %44 = arith.truncf %41 : vector<8x128xf32> to vector<8x128xbf16>
    %c0_14 = arith.constant 0 : index
    %c0_15 = arith.constant 0 : index
    %45 = vector.load %arg2[%c0_14, %c0_15] : memref<128x512xbf16, #tpu.memory_space<vmem>>, vector<128x512xbf16>
    %cst_16 = arith.constant dense<0.000000e+00> : vector<8x512xf32>
    %46 = tpu.matmul %44, %45, %cst_16 {dimension_numbers = #tpu.dot_dimension_numbers<[1], [0], [0], [1], [0, 0, 1, 1], [], []>} : vector<8x128xbf16>, vector<128x512xbf16>, vector<8x512xf32> -> vector<8x512xf32>
    %47 = arith.addf %43, %46 : vector<8x512xf32>
    %48 = vector.extract_strided_slice %47 {offsets = [0, 0], sizes = [8, 128], strides = [1, 1]} : vector<8x512xf32> to vector<8x128xf32>
    %49 = arith.negf %48 : vector<8x128xf32>
    %50 = math.exp %49 : vector<8x128xf32>
    %cst_17 = arith.constant 1.000000e+00 : f32
    %51 = vector.broadcast %cst_17 : f32 to vector<8x128xf32>
    %52 = arith.addf %51, %50 : vector<8x128xf32>
    %53 = arith.divf %51, %52 : vector<8x128xf32>
    %54 = vector.extract_strided_slice %47 {offsets = [0, 128], sizes = [8, 128], strides = [1, 1]} : vector<8x512xf32> to vector<8x128xf32>
    %55 = arith.negf %54 : vector<8x128xf32>
    %56 = math.exp %55 : vector<8x128xf32>
    %cst_18 = arith.constant 1.000000e+00 : f32
    %57 = vector.broadcast %cst_18 : f32 to vector<8x128xf32>
    %58 = arith.addf %57, %56 : vector<8x128xf32>
    %59 = arith.divf %57, %58 : vector<8x128xf32>
    %60 = vector.extract_strided_slice %47 {offsets = [0, 256], sizes = [8, 128], strides = [1, 1]} : vector<8x512xf32> to vector<8x128xf32>
    %61 = math.tanh %60 : vector<8x128xf32>
    %62 = vector.extract_strided_slice %47 {offsets = [0, 384], sizes = [8, 128], strides = [1, 1]} : vector<8x512xf32> to vector<8x128xf32>
    %63 = arith.negf %62 : vector<8x128xf32>
    %64 = math.exp %63 : vector<8x128xf32>
    %cst_19 = arith.constant 1.000000e+00 : f32
    %65 = vector.broadcast %cst_19 : f32 to vector<8x128xf32>
    %66 = arith.addf %65, %64 : vector<8x128xf32>
    %67 = arith.divf %65, %66 : vector<8x128xf32>
    %68 = arith.mulf %59, %39 : vector<8x128xf32>
    %69 = arith.mulf %53, %61 : vector<8x128xf32>
    %70 = arith.addf %68, %69 : vector<8x128xf32>
    %71 = math.tanh %70 : vector<8x128xf32>
    %72 = arith.mulf %67, %71 : vector<8x128xf32>
    %73 = vector.extract_strided_slice %8 {offsets = [0, 2, 0], sizes = [8, 1, 512], strides = [1, 1, 1]} : vector<8x8x512xf32> to vector<8x1x512xf32>
    %74 = vector.shape_cast %73 : vector<8x1x512xf32> to vector<8x512xf32>
    %75 = arith.truncf %72 : vector<8x128xf32> to vector<8x128xbf16>
    %c0_20 = arith.constant 0 : index
    %c0_21 = arith.constant 0 : index
    %76 = vector.load %arg2[%c0_20, %c0_21] : memref<128x512xbf16, #tpu.memory_space<vmem>>, vector<128x512xbf16>
    %cst_22 = arith.constant dense<0.000000e+00> : vector<8x512xf32>
    %77 = tpu.matmul %75, %76, %cst_22 {dimension_numbers = #tpu.dot_dimension_numbers<[1], [0], [0], [1], [0, 0, 1, 1], [], []>} : vector<8x128xbf16>, vector<128x512xbf16>, vector<8x512xf32> -> vector<8x512xf32>
    %78 = arith.addf %74, %77 : vector<8x512xf32>
    %79 = vector.extract_strided_slice %78 {offsets = [0, 0], sizes = [8, 128], strides = [1, 1]} : vector<8x512xf32> to vector<8x128xf32>
    %80 = arith.negf %79 : vector<8x128xf32>
    %81 = math.exp %80 : vector<8x128xf32>
    %cst_23 = arith.constant 1.000000e+00 : f32
    %82 = vector.broadcast %cst_23 : f32 to vector<8x128xf32>
    %83 = arith.addf %82, %81 : vector<8x128xf32>
    %84 = arith.divf %82, %83 : vector<8x128xf32>
    %85 = vector.extract_strided_slice %78 {offsets = [0, 128], sizes = [8, 128], strides = [1, 1]} : vector<8x512xf32> to vector<8x128xf32>
    %86 = arith.negf %85 : vector<8x128xf32>
    %87 = math.exp %86 : vector<8x128xf32>
    %cst_24 = arith.constant 1.000000e+00 : f32
    %88 = vector.broadcast %cst_24 : f32 to vector<8x128xf32>
    %89 = arith.addf %88, %87 : vector<8x128xf32>
    %90 = arith.divf %88, %89 : vector<8x128xf32>
    %91 = vector.extract_strided_slice %78 {offsets = [0, 256], sizes = [8, 128], strides = [1, 1]} : vector<8x512xf32> to vector<8x128xf32>
    %92 = math.tanh %91 : vector<8x128xf32>
    %93 = vector.extract_strided_slice %78 {offsets = [0, 384], sizes = [8, 128], strides = [1, 1]} : vector<8x512xf32> to vector<8x128xf32>
    %94 = arith.negf %93 : vector<8x128xf32>
    %95 = math.exp %94 : vector<8x128xf32>
    %cst_25 = arith.constant 1.000000e+00 : f32
    %96 = vector.broadcast %cst_25 : f32 to vector<8x128xf32>
    %97 = arith.addf %96, %95 : vector<8x128xf32>
    %98 = arith.divf %96, %97 : vector<8x128xf32>
    %99 = arith.mulf %90, %70 : vector<8x128xf32>
    %100 = arith.mulf %84, %92 : vector<8x128xf32>
    %101 = arith.addf %99, %100 : vector<8x128xf32>
    %102 = math.tanh %101 : vector<8x128xf32>
    %103 = arith.mulf %98, %102 : vector<8x128xf32>
    %104 = vector.extract_strided_slice %8 {offsets = [0, 3, 0], sizes = [8, 1, 512], strides = [1, 1, 1]} : vector<8x8x512xf32> to vector<8x1x512xf32>
    %105 = vector.shape_cast %104 : vector<8x1x512xf32> to vector<8x512xf32>
    %106 = arith.truncf %103 : vector<8x128xf32> to vector<8x128xbf16>
    %c0_26 = arith.constant 0 : index
    %c0_27 = arith.constant 0 : index
    %107 = vector.load %arg2[%c0_26, %c0_27] : memref<128x512xbf16, #tpu.memory_space<vmem>>, vector<128x512xbf16>
    %cst_28 = arith.constant dense<0.000000e+00> : vector<8x512xf32>
    %108 = tpu.matmul %106, %107, %cst_28 {dimension_numbers = #tpu.dot_dimension_numbers<[1], [0], [0], [1], [0, 0, 1, 1], [], []>} : vector<8x128xbf16>, vector<128x512xbf16>, vector<8x512xf32> -> vector<8x512xf32>
    %109 = arith.addf %105, %108 : vector<8x512xf32>
    %110 = vector.extract_strided_slice %109 {offsets = [0, 0], sizes = [8, 128], strides = [1, 1]} : vector<8x512xf32> to vector<8x128xf32>
    %111 = arith.negf %110 : vector<8x128xf32>
    %112 = math.exp %111 : vector<8x128xf32>
    %cst_29 = arith.constant 1.000000e+00 : f32
    %113 = vector.broadcast %cst_29 : f32 to vector<8x128xf32>
    %114 = arith.addf %113, %112 : vector<8x128xf32>
    %115 = arith.divf %113, %114 : vector<8x128xf32>
    %116 = vector.extract_strided_slice %109 {offsets = [0, 128], sizes = [8, 128], strides = [1, 1]} : vector<8x512xf32> to vector<8x128xf32>
    %117 = arith.negf %116 : vector<8x128xf32>
    %118 = math.exp %117 : vector<8x128xf32>
    %cst_30 = arith.constant 1.000000e+00 : f32
    %119 = vector.broadcast %cst_30 : f32 to vector<8x128xf32>
    %120 = arith.addf %119, %118 : vector<8x128xf32>
    %121 = arith.divf %119, %120 : vector<8x128xf32>
    %122 = vector.extract_strided_slice %109 {offsets = [0, 256], sizes = [8, 128], strides = [1, 1]} : vector<8x512xf32> to vector<8x128xf32>
    %123 = math.tanh %122 : vector<8x128xf32>
    %124 = vector.extract_strided_slice %109 {offsets = [0, 384], sizes = [8, 128], strides = [1, 1]} : vector<8x512xf32> to vector<8x128xf32>
    %125 = arith.negf %124 : vector<8x128xf32>
    %126 = math.exp %125 : vector<8x128xf32>
    %cst_31 = arith.constant 1.000000e+00 : f32
    %127 = vector.broadcast %cst_31 : f32 to vector<8x128xf32>
    %128 = arith.addf %127, %126 : vector<8x128xf32>
    %129 = arith.divf %127, %128 : vector<8x128xf32>
    %130 = arith.mulf %121, %101 : vector<8x128xf32>
    %131 = arith.mulf %115, %123 : vector<8x128xf32>
    %132 = arith.addf %130, %131 : vector<8x128xf32>
    %133 = math.tanh %132 : vector<8x128xf32>
    %134 = arith.mulf %129, %133 : vector<8x128xf32>
    %135 = vector.extract_strided_slice %8 {offsets = [0, 4, 0], sizes = [8, 1, 512], strides = [1, 1, 1]} : vector<8x8x512xf32> to vector<8x1x512xf32>
    %136 = vector.shape_cast %135 : vector<8x1x512xf32> to vector<8x512xf32>
    %137 = arith.truncf %134 : vector<8x128xf32> to vector<8x128xbf16>
    %c0_32 = arith.constant 0 : index
    %c0_33 = arith.constant 0 : index
    %138 = vector.load %arg2[%c0_32, %c0_33] : memref<128x512xbf16, #tpu.memory_space<vmem>>, vector<128x512xbf16>
    %cst_34 = arith.constant dense<0.000000e+00> : vector<8x512xf32>
    %139 = tpu.matmul %137, %138, %cst_34 {dimension_numbers = #tpu.dot_dimension_numbers<[1], [0], [0], [1], [0, 0, 1, 1], [], []>} : vector<8x128xbf16>, vector<128x512xbf16>, vector<8x512xf32> -> vector<8x512xf32>
    %140 = arith.addf %136, %139 : vector<8x512xf32>
    %141 = vector.extract_strided_slice %140 {offsets = [0, 0], sizes = [8, 128], strides = [1, 1]} : vector<8x512xf32> to vector<8x128xf32>
    %142 = arith.negf %141 : vector<8x128xf32>
    %143 = math.exp %142 : vector<8x128xf32>
    %cst_35 = arith.constant 1.000000e+00 : f32
    %144 = vector.broadcast %cst_35 : f32 to vector<8x128xf32>
    %145 = arith.addf %144, %143 : vector<8x128xf32>
    %146 = arith.divf %144, %145 : vector<8x128xf32>
    %147 = vector.extract_strided_slice %140 {offsets = [0, 128], sizes = [8, 128], strides = [1, 1]} : vector<8x512xf32> to vector<8x128xf32>
    %148 = arith.negf %147 : vector<8x128xf32>
    %149 = math.exp %148 : vector<8x128xf32>
    %cst_36 = arith.constant 1.000000e+00 : f32
    %150 = vector.broadcast %cst_36 : f32 to vector<8x128xf32>
    %151 = arith.addf %150, %149 : vector<8x128xf32>
    %152 = arith.divf %150, %151 : vector<8x128xf32>
    %153 = vector.extract_strided_slice %140 {offsets = [0, 256], sizes = [8, 128], strides = [1, 1]} : vector<8x512xf32> to vector<8x128xf32>
    %154 = math.tanh %153 : vector<8x128xf32>
    %155 = vector.extract_strided_slice %140 {offsets = [0, 384], sizes = [8, 128], strides = [1, 1]} : vector<8x512xf32> to vector<8x128xf32>
    %156 = arith.negf %155 : vector<8x128xf32>
    %157 = math.exp %156 : vector<8x128xf32>
    %cst_37 = arith.constant 1.000000e+00 : f32
    %158 = vector.broadcast %cst_37 : f32 to vector<8x128xf32>
    %159 = arith.addf %158, %157 : vector<8x128xf32>
    %160 = arith.divf %158, %159 : vector<8x128xf32>
    %161 = arith.mulf %152, %132 : vector<8x128xf32>
    %162 = arith.mulf %146, %154 : vector<8x128xf32>
    %163 = arith.addf %161, %162 : vector<8x128xf32>
    %164 = math.tanh %163 : vector<8x128xf32>
    %165 = arith.mulf %160, %164 : vector<8x128xf32>
    %166 = vector.extract_strided_slice %8 {offsets = [0, 5, 0], sizes = [8, 1, 512], strides = [1, 1, 1]} : vector<8x8x512xf32> to vector<8x1x512xf32>
    %167 = vector.shape_cast %166 : vector<8x1x512xf32> to vector<8x512xf32>
    %168 = arith.truncf %165 : vector<8x128xf32> to vector<8x128xbf16>
    %c0_38 = arith.constant 0 : index
    %c0_39 = arith.constant 0 : index
    %169 = vector.load %arg2[%c0_38, %c0_39] : memref<128x512xbf16, #tpu.memory_space<vmem>>, vector<128x512xbf16>
    %cst_40 = arith.constant dense<0.000000e+00> : vector<8x512xf32>
    %170 = tpu.matmul %168, %169, %cst_40 {dimension_numbers = #tpu.dot_dimension_numbers<[1], [0], [0], [1], [0, 0, 1, 1], [], []>} : vector<8x128xbf16>, vector<128x512xbf16>, vector<8x512xf32> -> vector<8x512xf32>
    %171 = arith.addf %167, %170 : vector<8x512xf32>
    %172 = vector.extract_strided_slice %171 {offsets = [0, 0], sizes = [8, 128], strides = [1, 1]} : vector<8x512xf32> to vector<8x128xf32>
    %173 = arith.negf %172 : vector<8x128xf32>
    %174 = math.exp %173 : vector<8x128xf32>
    %cst_41 = arith.constant 1.000000e+00 : f32
    %175 = vector.broadcast %cst_41 : f32 to vector<8x128xf32>
    %176 = arith.addf %175, %174 : vector<8x128xf32>
    %177 = arith.divf %175, %176 : vector<8x128xf32>
    %178 = vector.extract_strided_slice %171 {offsets = [0, 128], sizes = [8, 128], strides = [1, 1]} : vector<8x512xf32> to vector<8x128xf32>
    %179 = arith.negf %178 : vector<8x128xf32>
    %180 = math.exp %179 : vector<8x128xf32>
    %cst_42 = arith.constant 1.000000e+00 : f32
    %181 = vector.broadcast %cst_42 : f32 to vector<8x128xf32>
    %182 = arith.addf %181, %180 : vector<8x128xf32>
    %183 = arith.divf %181, %182 : vector<8x128xf32>
    %184 = vector.extract_strided_slice %171 {offsets = [0, 256], sizes = [8, 128], strides = [1, 1]} : vector<8x512xf32> to vector<8x128xf32>
    %185 = math.tanh %184 : vector<8x128xf32>
    %186 = vector.extract_strided_slice %171 {offsets = [0, 384], sizes = [8, 128], strides = [1, 1]} : vector<8x512xf32> to vector<8x128xf32>
    %187 = arith.negf %186 : vector<8x128xf32>
    %188 = math.exp %187 : vector<8x128xf32>
    %cst_43 = arith.constant 1.000000e+00 : f32
    %189 = vector.broadcast %cst_43 : f32 to vector<8x128xf32>
    %190 = arith.addf %189, %188 : vector<8x128xf32>
    %191 = arith.divf %189, %190 : vector<8x128xf32>
    %192 = arith.mulf %183, %163 : vector<8x128xf32>
    %193 = arith.mulf %177, %185 : vector<8x128xf32>
    %194 = arith.addf %192, %193 : vector<8x128xf32>
    %195 = math.tanh %194 : vector<8x128xf32>
    %196 = arith.mulf %191, %195 : vector<8x128xf32>
    %197 = vector.extract_strided_slice %8 {offsets = [0, 6, 0], sizes = [8, 1, 512], strides = [1, 1, 1]} : vector<8x8x512xf32> to vector<8x1x512xf32>
    %198 = vector.shape_cast %197 : vector<8x1x512xf32> to vector<8x512xf32>
    %199 = arith.truncf %196 : vector<8x128xf32> to vector<8x128xbf16>
    %c0_44 = arith.constant 0 : index
    %c0_45 = arith.constant 0 : index
    %200 = vector.load %arg2[%c0_44, %c0_45] : memref<128x512xbf16, #tpu.memory_space<vmem>>, vector<128x512xbf16>
    %cst_46 = arith.constant dense<0.000000e+00> : vector<8x512xf32>
    %201 = tpu.matmul %199, %200, %cst_46 {dimension_numbers = #tpu.dot_dimension_numbers<[1], [0], [0], [1], [0, 0, 1, 1], [], []>} : vector<8x128xbf16>, vector<128x512xbf16>, vector<8x512xf32> -> vector<8x512xf32>
    %202 = arith.addf %198, %201 : vector<8x512xf32>
    %203 = vector.extract_strided_slice %202 {offsets = [0, 0], sizes = [8, 128], strides = [1, 1]} : vector<8x512xf32> to vector<8x128xf32>
    %204 = arith.negf %203 : vector<8x128xf32>
    %205 = math.exp %204 : vector<8x128xf32>
    %cst_47 = arith.constant 1.000000e+00 : f32
    %206 = vector.broadcast %cst_47 : f32 to vector<8x128xf32>
    %207 = arith.addf %206, %205 : vector<8x128xf32>
    %208 = arith.divf %206, %207 : vector<8x128xf32>
    %209 = vector.extract_strided_slice %202 {offsets = [0, 128], sizes = [8, 128], strides = [1, 1]} : vector<8x512xf32> to vector<8x128xf32>
    %210 = arith.negf %209 : vector<8x128xf32>
    %211 = math.exp %210 : vector<8x128xf32>
    %cst_48 = arith.constant 1.000000e+00 : f32
    %212 = vector.broadcast %cst_48 : f32 to vector<8x128xf32>
    %213 = arith.addf %212, %211 : vector<8x128xf32>
    %214 = arith.divf %212, %213 : vector<8x128xf32>
    %215 = vector.extract_strided_slice %202 {offsets = [0, 256], sizes = [8, 128], strides = [1, 1]} : vector<8x512xf32> to vector<8x128xf32>
    %216 = math.tanh %215 : vector<8x128xf32>
    %217 = vector.extract_strided_slice %202 {offsets = [0, 384], sizes = [8, 128], strides = [1, 1]} : vector<8x512xf32> to vector<8x128xf32>
    %218 = arith.negf %217 : vector<8x128xf32>
    %219 = math.exp %218 : vector<8x128xf32>
    %cst_49 = arith.constant 1.000000e+00 : f32
    %220 = vector.broadcast %cst_49 : f32 to vector<8x128xf32>
    %221 = arith.addf %220, %219 : vector<8x128xf32>
    %222 = arith.divf %220, %221 : vector<8x128xf32>
    %223 = arith.mulf %214, %194 : vector<8x128xf32>
    %224 = arith.mulf %208, %216 : vector<8x128xf32>
    %225 = arith.addf %223, %224 : vector<8x128xf32>
    %226 = math.tanh %225 : vector<8x128xf32>
    %227 = arith.mulf %222, %226 : vector<8x128xf32>
    %228 = vector.extract_strided_slice %8 {offsets = [0, 7, 0], sizes = [8, 1, 512], strides = [1, 1, 1]} : vector<8x8x512xf32> to vector<8x1x512xf32>
    %229 = vector.shape_cast %228 : vector<8x1x512xf32> to vector<8x512xf32>
    %230 = arith.truncf %227 : vector<8x128xf32> to vector<8x128xbf16>
    %c0_50 = arith.constant 0 : index
    %c0_51 = arith.constant 0 : index
    %231 = vector.load %arg2[%c0_50, %c0_51] : memref<128x512xbf16, #tpu.memory_space<vmem>>, vector<128x512xbf16>
    %cst_52 = arith.constant dense<0.000000e+00> : vector<8x512xf32>
    %232 = tpu.matmul %230, %231, %cst_52 {dimension_numbers = #tpu.dot_dimension_numbers<[1], [0], [0], [1], [0, 0, 1, 1], [], []>} : vector<8x128xbf16>, vector<128x512xbf16>, vector<8x512xf32> -> vector<8x512xf32>
    %233 = arith.addf %229, %232 : vector<8x512xf32>
    %234 = vector.extract_strided_slice %233 {offsets = [0, 0], sizes = [8, 128], strides = [1, 1]} : vector<8x512xf32> to vector<8x128xf32>
    %235 = arith.negf %234 : vector<8x128xf32>
    %236 = math.exp %235 : vector<8x128xf32>
    %cst_53 = arith.constant 1.000000e+00 : f32
    %237 = vector.broadcast %cst_53 : f32 to vector<8x128xf32>
    %238 = arith.addf %237, %236 : vector<8x128xf32>
    %239 = arith.divf %237, %238 : vector<8x128xf32>
    %240 = vector.extract_strided_slice %233 {offsets = [0, 128], sizes = [8, 128], strides = [1, 1]} : vector<8x512xf32> to vector<8x128xf32>
    %241 = arith.negf %240 : vector<8x128xf32>
    %242 = math.exp %241 : vector<8x128xf32>
    %cst_54 = arith.constant 1.000000e+00 : f32
    %243 = vector.broadcast %cst_54 : f32 to vector<8x128xf32>
    %244 = arith.addf %243, %242 : vector<8x128xf32>
    %245 = arith.divf %243, %244 : vector<8x128xf32>
    %246 = vector.extract_strided_slice %233 {offsets = [0, 256], sizes = [8, 128], strides = [1, 1]} : vector<8x512xf32> to vector<8x128xf32>
    %247 = math.tanh %246 : vector<8x128xf32>
    %248 = vector.extract_strided_slice %233 {offsets = [0, 384], sizes = [8, 128], strides = [1, 1]} : vector<8x512xf32> to vector<8x128xf32>
    %249 = arith.negf %248 : vector<8x128xf32>
    %250 = math.exp %249 : vector<8x128xf32>
    %cst_55 = arith.constant 1.000000e+00 : f32
    %251 = vector.broadcast %cst_55 : f32 to vector<8x128xf32>
    %252 = arith.addf %251, %250 : vector<8x128xf32>
    %253 = arith.divf %251, %252 : vector<8x128xf32>
    %254 = arith.mulf %245, %225 : vector<8x128xf32>
    %255 = arith.mulf %239, %247 : vector<8x128xf32>
    %256 = arith.addf %254, %255 : vector<8x128xf32>
    %257 = math.tanh %256 : vector<8x128xf32>
    %258 = arith.mulf %253, %257 : vector<8x128xf32>
    %259 = arith.truncf %258 : vector<8x128xf32> to vector<8x128xbf16>
    %c0_56 = arith.constant 0 : index
    %c0_57 = arith.constant 0 : index
    %260 = vector.load %arg4[%c0_56, %c0_57] : memref<128x20xbf16, #tpu.memory_space<vmem>>, vector<128x20xbf16>
    %cst_58 = arith.constant dense<0.000000e+00> : vector<8x20xf32>
    %261 = tpu.matmul %259, %260, %cst_58 {dimension_numbers = #tpu.dot_dimension_numbers<[1], [0], [0], [1], [0, 0, 1, 1], [], []>} : vector<8x128xbf16>, vector<128x20xbf16>, vector<8x20xf32> -> vector<8x20xf32>
    %c0_59 = arith.constant 0 : index
    %c0_60 = arith.constant 0 : index
    %262 = vector.load %arg5[%c0_59, %c0_60] : memref<1x20xf32, #tpu.memory_space<vmem>>, vector<1x20xf32>
    %263 = vector.broadcast %262 : vector<1x20xf32> to vector<8x20xf32>
    %264 = arith.addf %261, %263 : vector<8x20xf32>
    %c0_61 = arith.constant 0 : index
    %c0_62 = arith.constant 0 : index
    %265 = vector.load %arg6[%c0_61, %c0_62] : memref<8x20xf32, #tpu.memory_space<vmem>>, vector<8x20xf32>
    tpu.vector_store %arg6[%c0_61, %c0_62], %264 {strides = array<i32>} : memref<8x20xf32, #tpu.memory_space<vmem>>, vector<8x20xf32>,
    %266 = vector.extract_strided_slice %258 {offsets = [0, 0], sizes = [8, 32], strides = [1, 1]} : vector<8x128xf32> to vector<8x32xf32>
    %c0_63 = arith.constant 0 : index
    %c0_64 = arith.constant 0 : index
    %267 = vector.load %arg7[%c0_63, %c0_64] : memref<8x32xf32, #tpu.memory_space<vmem>>, vector<8x32xf32>
    tpu.vector_store %arg7[%c0_63, %c0_64], %266 {strides = array<i32>} : memref<8x32xf32, #tpu.memory_space<vmem>>, vector<8x32xf32>,
    %268 = vector.extract_strided_slice %256 {offsets = [0, 0], sizes = [8, 32], strides = [1, 1]} : vector<8x128xf32> to vector<8x32xf32>
    %c0_65 = arith.constant 0 : index
    %c0_66 = arith.constant 0 : index
    %269 = vector.load %arg8[%c0_65, %c0_66] : memref<8x32xf32, #tpu.memory_space<vmem>>, vector<8x32xf32>
    tpu.vector_store %arg8[%c0_65, %c0_66], %268 {strides = array<i32>} : memref<8x32xf32, #tpu.memory_space<vmem>>, vector<8x32xf32>,
    return
  }
}

</mosaic_0001>

<bundles_post_ra>
// kernel: lstm_forward.1
= control target key start
LH: loop header
LB: loop body
LE: loop exit
PB: predicated region body
PF: predicated region fallthrough
CT: control target
= control target key end

     0   :  { %14 = vsyncpa [#allocation3], 0  ;;  %s5599_s27 = smov [#allocation2]   ;;  %s7510_s0 = inlined_call_operand.vmem [shape: f32[8,8,16], index: 0, kind: input, shape index: {}]   ;;  %s7511_s1 = inlined_call_operand.vmem [shape: bf16[16,512], index: 1, kind: input, shape index: {}]   ;;  %s7512_s2 = inlined_call_operand.hbm [shape: bf16[128,512], index: 2, kind: input, shape index: {}]   ;;  %s7513_s3 = inlined_call_operand.vmem [shape: f32[1,512], index: 3, kind: input, shape index: {}]   ;;  %s7514_s4 = inlined_call_operand.vmem [shape: bf16[128,20], index: 4, kind: input, shape index: {}]   ;;  %s7515_s5 = inlined_call_operand.vmem [shape: f32[1,20], index: 5, kind: input, shape index: {}]   ;;  %s7516_s6 = inlined_call_operand.vmem [shape: f32[8,20], index: 6, kind: output, shape index: {0}]   ;;  %s7517_s7 = inlined_call_operand.vmem [shape: f32[8,32], index: 7, kind: output, shape index: {1}]   ;;  %s7518_s8 = inlined_call_operand.vmem [shape: f32[8,32], index: 8, kind: output, shape index: {2}]  }
   0x1   :  { %s24_s28 = sshll.u32 %s5599_s27, 4  ;;  %s25_s28 = int_to_ptr.vmem [resolvable:$true] %s24_s28 }
   0x2   :  { %s5585_s29 = scalar_lea.vmem %s25_s28, 4096  ;;  %p5590_p1 = scmp.lt.s32.totalorder %s25_s28, %s25_s28 }
   0x3   :  { %p5586_p0 = scmp.ne.s32.totalorder %s25_s28, %s5585_s29  ;;  %p5591_p2 = scmp.lt.s32.totalorder %s5585_s29, %s5585_s29 }
   0x5   :  { %p5592_p3 = por %p5591_p2, %p5590_p1 }
   0x7   :  { %p5593_p4 = pnand %p5592_p3, %p5586_p0 }
   0x9   :  { %5596 = shalt.err (!%p5593_p4)
}
   0xa   :  { %s5600_s30 = smov 256   ;;  %s5601_s9 = smov 16  }
   0xb   :  { %30 = dma.hbm_to_vmem [thread:$0]  %s7512_s2, 4096, %s25_s28, [#allocation3], %s5600_s30, %s5600_s30, %s5601_s9  }
   0xc   :  { %5597 = dma.done.wait [#allocation3], 4096  }
   0xd   :  { %5598 = vsyncadd [#allocation3], 4294963200  ;;  %v7519_v0 = vmov 0   ;;  %v4395_v1 = vld [vmem:[%s7511_s1 + $0x4] ss:$16 sps:$4 sm:$0xff]   ;;  %v42_v6 = vld [vmem:[%s7510_s0 + $0x8] sm:$0xff] }
   0xe   :  { %168 = vmatprep.mubr.bf16.mxu0 %v7519_v0  ;;  %241 = vmatprep.mubr.bf16.mxu1 %v7519_v0  ;;  %v4397_v2 = vld [vmem:[%s7511_s1 + $0xc] ss:$16 sps:$4 sm:$0xff]   ;;  %v4399_v3 = vld [vmem:[%s7511_s1] ss:$16 sps:$4 sm:$0xff]   ;;  %v4400_v4 = vld [vmem:[%s7511_s1 + $0x8] ss:$16 sps:$4 sm:$0xff]  }
   0xf   :  { %150 = vmatprep.subr.bf16.mxu0 %v4395_v1  ;;  %v41_v5 = vld [vmem:[%s7510_s0] sm:$0xff]  ;;  %223 = vmatprep.subr.bf16.mxu1 %v4397_v2  ;;  %vm123_vm0 = vcmask 130048   ;;  %v5675_v9 = vld [vmem:[#allocation2 + $0xec] ss:$16 sps:$4 sm:$0xff]   ;;  %v5679_v11 = vld [vmem:[#allocation2 + $0xe8] ss:$16 sps:$4 sm:$0xff]   ;;  %v63_v2 = vlaneseq }
  0x10   :  { %151 = vmatpush1.bf16.msra.mxu0 %v4399_v3  ;;  %224 = vmatpush1.bf16.msra.mxu1 %v4400_v4  ;;  %v4356_v7 = vpack.c.bf16 %v42_v6, %v41_v5  ;;  %v5673_v8 = vld [vmem:[#allocation2 + $0xe4] ss:$16 sps:$4 sm:$0xff]   ;;  %v5677_v10 = vld [vmem:[#allocation2 + $0xe0] ss:$16 sps:$4 sm:$0xff]   ;;  %v5686_v13 = vld [vmem:[#allocation2 + $0xcc] ss:$16 sps:$4 sm:$0xff]  }
  0x11   :  { %474 = vmatprep.subr.bf16.mxu0 %v5673_v8  ;;  %v5682_v12 = vld [vmem:[#allocation2 + $0xc4] ss:$16 sps:$4 sm:$0xff]   ;;  %515 = vmatprep.subr.bf16.mxu1 %v5675_v9  ;;  %v5690_v14 = vld [vmem:[#allocation2 + $0xc0] ss:$16 sps:$4 sm:$0xff]   ;;  %v5692_v15 = vld [vmem:[#allocation2 + $0xc8] ss:$16 sps:$4 sm:$0xff]  }
  0x12   :  { %v43_v16 = vld [vmem:[%s7510_s0 + $0x10] sm:$0xff]  ;;  %v44_v17 = vld [vmem:[%s7510_s0 + $0x18] sm:$0xff]  ;;  %v45_v26 = vld [vmem:[%s7510_s0 + $0x20] sm:$0xff]  ;;  %vm869_vm1 = vcmask 1041409   ;;  %vm872_vm2 = vcmask 1042434   ;;  %vm875_vm3 = vcmask 1043459  }
  0x13   :  { %4115 = vmatmul.mubr.msk.bf16.vlgmr.msra.gmra.mxu0 %vm123_vm0, %v4356_v7  ;;  %4119 = vmatmul.mubr.msk.bf16.vlgmr.msra.gmra.mxu1 %vm123_vm0, %v4356_v7  ;;  %v5704_v18 = vld [vmem:[#allocation2 + $0xa4] ss:$16 sps:$4 sm:$0xff]   ;;  %v4357_v19 = vpack.c.bf16 %v44_v17, %v43_v16  ;;  %v5707_v20 = vld [vmem:[#allocation2 + $0xac] ss:$16 sps:$4 sm:$0xff]   ;;  %v5709_v21 = vld [vmem:[#allocation2 + $0xa0] ss:$16 sps:$4 sm:$0xff]  }
  0x14   :  { %475 = vmatpush1.bf16.msra.mxu0 %v5677_v10  ;;  %516 = vmatpush1.bf16.msra.mxu1 %v5679_v11  ;;  %v5712_v22 = vld [vmem:[#allocation2 + $0xa8] ss:$16 sps:$4 sm:$0xff]   ;;  %v5716_v23 = vld [vmem:[#allocation2 + $0x84] ss:$16 sps:$4 sm:$0xff]   ;;  %v5719_v24 = vld [vmem:[#allocation2 + $0x8c] ss:$16 sps:$4 sm:$0xff]  }
  0x15   :  { %476 = vmatprep.subr.bf16.mxu0 %v5682_v12  ;;  %517 = vmatprep.subr.bf16.mxu1 %v5686_v13  ;;  %v5721_v25 = vld [vmem:[#allocation2 + $0x80] ss:$16 sps:$4 sm:$0xff]   ;;  %v46_v27 = vld [vmem:[%s7510_s0 + $0x28] sm:$0xff]  ;;  %v5737_v29 = vld [vmem:[#allocation2 + $0x64] ss:$16 sps:$4 sm:$0xff]   ;;  %v64_v7 = vshrl.u32 %v63_v2, 7 }
  0x16   :  { %178 = vmatprep.mubr.bf16.mxu0 %v7519_v0  ;;  %251 = vmatprep.mubr.bf16.mxu1 %v7519_v0  ;;  %v5735_v28 = vld [vmem:[#allocation2 + $0x88] ss:$16 sps:$4 sm:$0xff]   ;;  %v5741_v30 = vld [vmem:[#allocation2 + $0x6c] ss:$16 sps:$4 sm:$0xff]   ;;  %v4358_v31 = vpack.c.bf16 %v46_v27, %v45_v26  ;;  %v5744_v32 = vld [vmem:[#allocation2 + $0x60] ss:$16 sps:$4 sm:$0xff]  }
  0x17   :  { %v5746_v33 = vld [vmem:[#allocation2 + $0x68] ss:$16 sps:$4 sm:$0xff]   ;;  %v5750_v34 = vld [vmem:[#allocation2 + $0x44] ss:$16 sps:$4 sm:$0xff]   ;;  %v5753_v35 = vld [vmem:[#allocation2 + $0x4c] ss:$16 sps:$4 sm:$0xff]  }
  0x18   :  { %477 = vmatpush1.bf16.msra.mxu0 %v5690_v14  ;;  %518 = vmatpush1.bf16.msra.mxu1 %v5692_v15  ;;  %v5757_v36 = vld [vmem:[#allocation2 + $0x40] ss:$16 sps:$4 sm:$0xff]   ;;  %v5759_v37 = vld [vmem:[#allocation2 + $0x48] ss:$16 sps:$4 sm:$0xff]   ;;  %v5771_v40 = vld [vmem:[#allocation2 + $0x24] ss:$16 sps:$4 sm:$0xff]  }
  0x19   :  { %478 = vmatprep.subr.bf16.mxu0 %v5704_v18  ;;  %519 = vmatprep.subr.bf16.mxu1 %v5707_v20  ;;  %v47_v38 = vld [vmem:[%s7510_s0 + $0x30] sm:$0xff]  ;;  %v48_v39 = vld [vmem:[%s7510_s0 + $0x38] sm:$0xff]  ;;  %v73_v16 = vsub.s32 2, %v64_v7  ;;  %v69_v17 = vsub.s32 1, %v64_v7  ;;  %vm878_vm4 = vcmask 1044484   ;;  %vm881_vm5 = vcmask 1045509  }
  0x1a   :  { %v5775_v41 = vld [vmem:[#allocation2 + $0x2c] ss:$16 sps:$4 sm:$0xff]   ;;  %v5777_v42 = vld [vmem:[#allocation2 + $0x20] ss:$16 sps:$4 sm:$0xff]   ;;  %v4359_v43 = vpack.c.bf16 %v48_v39, %v47_v38  ;;  %v5779_v44 = vld [vmem:[#allocation2 + $0x28] ss:$16 sps:$4 sm:$0xff]  }
  0x1b   :  { %4116 = vmatmul.mubr.msk.bf16.gmra.mxu0 %vm123_vm0, %v4357_v19  ;;  %4120 = vmatmul.mubr.msk.bf16.gmra.mxu1 %vm123_vm0, %v4357_v19  ;;  %v5781_v45 = vld [vmem:[#allocation2 + $0x4] ss:$16 sps:$4 sm:$0xff]   ;;  %v5784_v46 = vld [vmem:[#allocation2 + $0xc] ss:$16 sps:$4 sm:$0xff]   ;;  %v5792_v47 = vld [vmem:[#allocation2] ss:$16 sps:$4 sm:$0xff]  }
  0x1c   :  { %479 = vmatpush1.bf16.msra.mxu0 %v5709_v21  ;;  %188 = vmatprep.mubr.bf16.mxu0 %v7519_v0  ;;  %7609 = vst [vmem:[#allocation5_spill] sm:$0xff] %v5792_v47  ;;  %v5797_v48 = vld [vmem:[#allocation2 + $0x8] ss:$16 sps:$4 sm:$0xff]   ;;  %vm884_vm6 = vcmask 1046534   ;;  %vm887_vm7 = vcmask 1047559   ;;  %vm5604_vm8 = vmmov 0  }
  0x1d   :  { %520 = vmatpush1.bf16.msra.mxu1 %v5712_v22  ;;  %480 = vmatprep.subr.bf16.mxu0 %v5716_v23  ;;  %7610 = vst [vmem:[#allocation6_spill] sm:$0xff] %v5797_v48  ;;  %vm4065_vm9 = vcmask 261127   ;;  %vm4067_vm10 = vcmask 260096   ;;  %vm4040_vm11 = vcmask 162816  }
  0x1e   :  { %521 = vmatprep.subr.bf16.mxu1 %v5719_v24  ;;  %261 = vmatprep.mubr.bf16.mxu1 %v7519_v0 }
  0x20   :  { %481 = vmatpush1.bf16.msra.mxu0 %v5721_v25 }
  0x21   :  { %522 = vmatpush1.bf16.msra.mxu1 %v5735_v28  ;;  %482 = vmatprep.subr.bf16.mxu0 %v5737_v29 }
  0x22   :  { %523 = vmatprep.subr.bf16.mxu1 %v5741_v30 }
  0x23   :  { %4117 = vmatmul.mubr.msk.bf16.gmra.mxu0 %vm123_vm0, %v4358_v31  ;;  %4121 = vmatmul.mubr.msk.bf16.gmra.mxu1 %vm123_vm0, %v4358_v31 }
  0x24   :  { %483 = vmatpush1.bf16.msra.mxu0 %v5744_v32  ;;  %198 = vmatprep.mubr.bf16.mxu0 %v7519_v0 }
  0x25   :  { %524 = vmatpush1.bf16.msra.mxu1 %v5746_v33  ;;  %484 = vmatprep.subr.bf16.mxu0 %v5750_v34 }
  0x26   :  { %525 = vmatprep.subr.bf16.mxu1 %v5753_v35  ;;  %271 = vmatprep.mubr.bf16.mxu1 %v7519_v0 }
  0x28   :  { %485 = vmatpush1.bf16.msra.mxu0 %v5757_v36 }
  0x29   :  { %526 = vmatpush1.bf16.msra.mxu1 %v5759_v37  ;;  %486 = vmatprep.subr.bf16.mxu0 %v5771_v40 }
  0x2a   :  { %527 = vmatprep.subr.bf16.mxu1 %v5775_v41 }
  0x2b   :  { %4118 = vmatmul.mubr.msk.bf16.gmra.mxu0 %vm123_vm0, %v4359_v43  ;;  %4122 = vmatmul.mubr.msk.bf16.gmra.mxu1 %vm123_vm0, %v4359_v43 }
  0x2c   :  { %487 = vmatpush1.bf16.msra.mxu0 %v5777_v42  ;;  %506 = vmatprep.mubr.bf16.mxu0 %v7519_v0 }
  0x2d   :  { %528 = vmatpush1.bf16.msra.mxu1 %v5779_v44  ;;  %488 = vmatprep.subr.bf16.mxu0 %v5781_v45 }
  0x2e   :  { %529 = vmatprep.subr.bf16.mxu1 %v5784_v46  ;;  %547 = vmatprep.mubr.bf16.mxu1 %v7519_v0 }
  0x30   :  { %489 = vmatpush1.bf16.msra.mxu0 %v5792_v47 }
  0x31   :  { %530 = vmatpush1.bf16.msra.mxu1 %v5797_v48  ;;  %891 = vmatprep.subr.bf16.mxu0 %v5673_v8 }
  0x32   :  { %932 = vmatprep.subr.bf16.mxu1 %v5675_v9 }
  0x33   :  { %507 = vmatmul.mubr.bf16.vlgmr.msra.gmra.mxu0 %v7519_v0 }
  0x34   :  { %548 = vmatmul.mubr.bf16.vlgmr.msra.gmra.mxu1 %v7519_v0  ;;  %892 = vmatpush1.bf16.msra.mxu0 %v5677_v10 }
  0x35   :  { %933 = vmatpush1.bf16.msra.mxu1 %v5679_v11  ;;  %893 = vmatprep.subr.bf16.mxu0 %v5682_v12  ;;  %v65_v12 = vsub.s32 0, %v64_v7 }
  0x36   :  { %934 = vmatprep.subr.bf16.mxu1 %v5686_v13  ;;  %923 = vmatprep.mubr.bf16.mxu0 %v7519_v0  ;;  %v61_v13 = vld [vmem:[%s7513_s3] sm:$0xf] }
  0x37   :  { %964 = vmatprep.mubr.bf16.mxu1 %v7519_v0 }
  0x38   :  { %894 = vmatpush1.bf16.msra.mxu0 %v5690_v14 }
  0x39   :  { %935 = vmatpush1.bf16.msra.mxu1 %v5692_v15  ;;  %895 = vmatprep.subr.bf16.mxu0 %v5704_v18  ;;  %v77_v18 = vsub.s32 3, %v64_v7 }
  0x3a   :  { %936 = vmatprep.subr.bf16.mxu1 %v5707_v20 }
  0x3b   :  { %v5892_v26 = vrot.slane %v61_v13, %v77_v18 }
  0x3c   :  { %896 = vmatpush1.bf16.msra.mxu0 %v5709_v21  ;;  %v66_v21 = vrot.slane %v61_v13, %v65_v12 }
  0x3d   :  { %937 = vmatpush1.bf16.msra.mxu1 %v5712_v22  ;;  %897 = vmatprep.subr.bf16.mxu0 %v5716_v23 }
  0x3e   :  { %938 = vmatprep.subr.bf16.mxu1 %v5719_v24  ;;  %v5888_v24 = vrot.slane %v61_v13, %v73_v16 }
  0x40   :  { %898 = vmatpush1.bf16.msra.mxu0 %v5721_v25  ;;  %v5890_v25 = vrot.slane %v61_v13, %v69_v17 }
  0x41   :  { %939 = vmatpush1.bf16.msra.mxu1 %v5735_v28  ;;  %899 = vmatprep.subr.bf16.mxu0 %v5737_v29 }
  0x42   :  { %940 = vmatprep.subr.bf16.mxu1 %v5741_v30 }
  0x44   :  { %900 = vmatpush1.bf16.msra.mxu0 %v5744_v32 }
  0x45   :  { %941 = vmatpush1.bf16.msra.mxu1 %v5746_v33  ;;  %901 = vmatprep.subr.bf16.mxu0 %v5750_v34 }
  0x46   :  { %942 = vmatprep.subr.bf16.mxu1 %v5753_v35 }
  0x48   :  { %902 = vmatpush1.bf16.msra.mxu0 %v5757_v36 }
  0x49   :  { %943 = vmatpush1.bf16.msra.mxu1 %v5759_v37  ;;  %903 = vmatprep.subr.bf16.mxu0 %v5771_v40 }
  0x4a   :  { %944 = vmatprep.subr.bf16.mxu1 %v5775_v41 }
  0x4c   :  { %904 = vmatpush1.bf16.msra.mxu0 %v5777_v42 }
  0x4d   :  { %945 = vmatpush1.bf16.msra.mxu1 %v5779_v44  ;;  %905 = vmatprep.subr.bf16.mxu0 %v5781_v45 }
  0x4e   :  { %946 = vmatprep.subr.bf16.mxu1 %v5784_v46 }
  0x50   :  { %906 = vmatpush1.bf16.msra.mxu0 %v5792_v47 }
  0x51   :  { %947 = vmatpush1.bf16.msra.mxu1 %v5797_v48  ;;  %1325 = vmatprep.subr.bf16.mxu0 %v5673_v8 }
  0x52   :  { %1366 = vmatprep.subr.bf16.mxu1 %v5675_v9 }
  0xd3   :  { %v170_v49 = vpop.f32.mrf.mxu0  ;;  %v5841_v50 = vpop.f32.mrf.mxu1 }
  0xd4   :  { %v5898_v29 = vadd.f32 %v170_v49, %v66_v21  ;;  %v5927_v0 = vadd.f32 %v5841_v50, %v5888_v24 }
  0xd5   :  { %v5843_v51 = vpop.f32.mrf.mxu0  ;;  %v5845_v52 = vpop.f32.mrf.mxu1 }
  0xd6   :  { %7611 = vst [vmem:[#allocation7_spill] sm:$0xff] %v5898_v29  ;;  %7619 = vst [vmem:[#allocation15_spill] sm:$0xff] %v5927_v0  ;;  %v5938_v50 = vadd.f32 %v5845_v52, %v5892_v26 }
  0xd7   :  { %v174_v53 = vpop.f32.mrf.mxu0  ;;  %v5847_v54 = vpop.f32.mrf.mxu1 }
  0xd8   :  { %v5900_v30 = vadd.f32 %v174_v53, %v66_v21  ;;  %7621 = vst [vmem:[#allocation17_spill] sm:$0xff] %v5938_v50 }
  0xd9   :  { %v5849_v55 = vpop.f32.mrf.mxu0  ;;  %v5851_v56 = vpop.f32.mrf.mxu1 }
  0xda   :  { %7612 = vst [vmem:[#allocation8_spill] sm:$0xff] %v5900_v30 }
  0xdb   :  { %v180_v57 = vpop.f32.mrf.mxu0  ;;  %v5853_v58 = vpop.f32.mrf.mxu1 }
  0xdc   :  { %v5902_v31 = vadd.f32 %v180_v57, %v66_v21 }
  0xdd   :  { %v5855_v59 = vpop.f32.mrf.mxu0  ;;  %v5857_v60 = vpop.f32.mrf.mxu1 }
  0xde   :  { %7613 = vst [vmem:[#allocation9_spill] sm:$0xff] %v5902_v31 }
  0xdf   :  { %v184_v61 = vpop.f32.mrf.mxu0  ;;  %v5859_v62 = vpop.f32.mrf.mxu1 }
  0xe0   :  { %v5904_v32 = vadd.f32 %v184_v61, %v66_v21 }
  0xe1   :  { %v5861_v63 = vpop.f32.mrf.mxu0  ;;  %v5863_v1 = vpop.f32.mrf.mxu1 }
  0xe2   :  { %7614 = vst [vmem:[#allocation10_spill] sm:$0xff] %v5904_v32 }
  0xe3   :  { %v190_v3 = vpop.f32.mrf.mxu0  ;;  %v5865_v4 = vpop.f32.mrf.mxu1 }
  0xe4   :  { %v5906_v33 = vadd.f32 %v190_v3, %v66_v21 }
  0xe5   :  { %v5867_v5 = vpop.f32.mrf.mxu0  ;;  %v5869_v6 = vpop.f32.mrf.mxu1 }
  0xe6   :  { %7615 = vst [vmem:[#allocation11_spill] sm:$0xff] %v5906_v33 }
  0xe7   :  { %v194_v8 = vpop.f32.mrf.mxu0  ;;  %v5871_v9 = vpop.f32.mrf.mxu1 }
  0xe8   :  { %v5908_v38 = vadd.f32 %v194_v8, %v66_v21 }
  0xe9   :  { %v5873_v10 = vpop.f32.mrf.mxu0  ;;  %v5875_v11 = vpop.f32.mrf.mxu1 }
  0xea   :  { %7616 = vst [vmem:[#allocation12_spill] sm:$0xff] %v5908_v38 }
  0xeb   :  { %v200_v14 = vpop.f32.mrf.mxu0  ;;  %v5880_v15 = vpop.f32.mrf.mxu1 }
  0xec   :  { %v5910_v39 = vadd.f32 %v200_v14, %v66_v21 }
  0xed   :  { %v5882_v19 = vpop.f32.mrf.mxu0  ;;  %v5884_v20 = vpop.f32.mrf.mxu1 }
  0xee   :  { %7617 = vst [vmem:[#allocation13_spill] sm:$0xff] %v5910_v39 }
  0xef   :  { %v204_v22 = vpop.f32.mrf.mxu0  ;;  %v5886_v23 = vpop.f32.mrf.mxu1 }
  0xf0   :  { %v5912_v43 = vadd.f32 %v204_v22, %v66_v21 }
  0xf1   :  { %v5894_v27 = vpop.f32.mrf.mxu0  ;;  %v5896_v28 = vpop.f32.mrf.mxu1 }
  0xf2   :  { %7618 = vst [vmem:[#allocation14_spill] sm:$0xff] %v5912_v43 }
  0xf3   :  { %v508_v2 = vpop.f32.mrf.mxu0 }
  0xf4   :  { %v560_v7 = vrot.slane %v508_v2, 1  ;;  %v564_v12 = vrot.slane %v508_v2, 2  ;;  %v568_v13 = vrot.slane %v508_v2, 3  ;;  %v572_v49 = vrot.slane %v508_v2, 4  ;;  %v5914_v16 = vpop.f32.mrf.mxu1 }
  0xf5   :  { %v576_v53 = vrot.slane %v508_v2, 5  ;;  %v580_v57 = vrot.slane %v508_v2, 6  ;;  %v584_v17 = vrot.slane %v508_v2, 7  ;;  %v620_v61 = vadd.f32 %v508_v2, %v5898_v29  ;;  %v5917_v3 = vpop.f32.mrf.mxu0 }
  0xf6   :  { %v624_v8 = vadd.f32 %v560_v7, %v5900_v30  ;;  %v628_v14 = vadd.f32 %v564_v12, %v5902_v31  ;;  %v632_v18 = vadd.f32 %v568_v13, %v5904_v32  ;;  %v636_v21 = vadd.f32 %v572_v49, %v5906_v33  ;;  %v5923_v22 = vpop.f32.mrf.mxu1 }
  0xf7   :  { %v640_v48 = vadd.f32 %v576_v53, %v5908_v38  ;;  %v644_v2 = vadd.f32 %v580_v57, %v5910_v39  ;;  %v4155_v29 = vmul.f32 -1.442695, %v620_v61  ;;  %v512_v47 = vpop.f32.mrf.mxu0  ;;  %v648_v7 = vadd.f32 %v584_v17, %v5912_v43 }
  0xf8   :  { %v4156_v30 = vmul.f32 -1.442695, %v624_v8  ;;  %v4157_v12 = vmul.f32 -1.442695, %v628_v14  ;;  %v4158_v31 = vmul.f32 -1.442695, %v632_v18  ;;  %v553_v13 = vpop.f32.mrf.mxu1  ;;  %v5934_v49 = vadd.f32 %v5843_v51, %v5890_v25 }
  0xf9   :  { %4457 = vpow2.f32 %v4155_v29  ;;  %v4159_v53 = vmul.f32 -1.442695, %v636_v21  ;;  %v513_v38 = vpop.f32.mrf.mxu0  ;;  %v5942_v47 = vadd.f32 %v5847_v54, %v5888_v24  ;;  %v4160_v57 = vmul.f32 -1.442695, %v640_v48 }
  0xfa   :  { %7620 = vst [vmem:[#allocation16_spill] sm:$0xff] %v5934_v49  ;;  %4459 = vpow2.f32 %v4156_v30  ;;  %v562_v17 = vrot.slane %v5914_v16, 1  ;;  %v554_v61 = vpop.f32.mrf.mxu1  ;;  %v5947_v51 = vadd.f32 %v5853_v58, %v5888_v24  ;;  %v4161_v8 = vmul.f32 -1.442695, %v644_v2 }
  0xfb   :  { %7622 = vst [vmem:[#allocation18_spill] sm:$0xff] %v5942_v47  ;;  %4461 = vpow2.f32 %v4157_v12  ;;  %v566_v52 = vrot.slane %v5914_v16, 2  ;;  %v5952_v29 = vadd.f32 %v5859_v62, %v5888_v24  ;;  %v4162_v54 = vmul.f32 -1.442695, %v648_v7 }
  0xfc   :  { %7623 = vst [vmem:[#allocation19_spill] sm:$0xff] %v5947_v51  ;;  %4463 = vpow2.f32 %v4158_v31  ;;  %v570_v30 = vrot.slane %v5914_v16, 3  ;;  %v5957_v48 = vadd.f32 %v5865_v4, %v5888_v24  ;;  %v574_v58 = vrot.slane %v5914_v16, 4 }
  0xfd   :  { %7624 = vst [vmem:[#allocation20_spill] sm:$0xff] %v5952_v29  ;;  %4465 = vpow2.f32 %v4159_v53  ;;  %v622_v38 = vadd.f32 %v5914_v16, %v5927_v0  ;;  %v5964_v14 = vadd.f32 %v5871_v9, %v5888_v24  ;;  %v578_v62 = vrot.slane %v5914_v16, 5 }
  0xfe   :  { %7625 = vst [vmem:[#allocation21_spill] sm:$0xff] %v5957_v48  ;;  %4467 = vpow2.f32 %v4160_v57  ;;  %v626_v31 = vadd.f32 %v562_v17, %v5942_v47  ;;  %v5970_v18 = vadd.f32 %v5880_v15, %v5888_v24  ;;  %v582_v4 = vrot.slane %v5914_v16, 6 }
  0xff   :  { %7626 = vst [vmem:[#allocation22_spill] sm:$0xff] %v5964_v14  ;;  %4469 = vpow2.f32 %v4161_v8  ;;  %v630_v21 = vadd.f32 %v566_v52, %v5947_v51  ;;  %v5976_v2 = vadd.f32 %v5886_v23, %v5888_v24  ;;  %v586_v9 = vrot.slane %v5914_v16, 7 }
 0x100   :  { %7627 = vst [vmem:[#allocation23_spill] sm:$0xff] %v5970_v18  ;;  %4471 = vpow2.f32 %v4162_v54  ;;  %v634_v7 = vadd.f32 %v570_v30, %v5952_v29  ;;  %v5982_v12 = vadd.f32 %v5849_v55, %v5890_v25  ;;  %v5986_v15 = vadd.f32 %v5851_v56, %v5892_v26 }
 0x101   :  { %7628 = vst [vmem:[#allocation24_spill] sm:$0xff] %v5976_v2  ;;  %v638_v13 = vadd.f32 %v574_v58, %v5957_v48  ;;  %4473 = vtanh.f32 %v622_v38  ;;  %v5991_v23 = vadd.f32 %v5855_v59, %v5890_v25  ;;  %v5995_v24 = vadd.f32 %v5857_v60, %v5892_v26 }
 0x102   :  { %7629 = vst [vmem:[#allocation25_spill] sm:$0xff] %v5982_v12  ;;  %7630 = vst [vmem:[#allocation26_spill] sm:$0xff] %v5986_v15  ;;  %v642_v16 = vadd.f32 %v578_v62, %v5964_v14  ;;  %4475 = vtanh.f32 %v626_v31  ;;  %v6000_v55 = vadd.f32 %v5861_v63, %v5890_v25  ;;  %v6004_v56 = vadd.f32 %v5863_v1, %v5892_v26 }
 0x103   :  { %7631 = vst [vmem:[#allocation27_spill] sm:$0xff] %v5991_v23  ;;  %7632 = vst [vmem:[#allocation28_spill] sm:$0xff] %v5995_v24  ;;  %v646_v53 = vadd.f32 %v582_v4, %v5970_v18  ;;  %4477 = vtanh.f32 %v630_v21  ;;  %v6009_v59 = vadd.f32 %v5867_v5, %v5890_v25  ;;  %v6013_v60 = vadd.f32 %v5869_v6, %v5892_v26 }
 0x104   :  { %7633 = vst [vmem:[#allocation29_spill] sm:$0xff] %v6000_v55  ;;  %7634 = vst [vmem:[#allocation30_spill] sm:$0xff] %v6004_v56  ;;  %v650_v57 = vadd.f32 %v586_v9, %v5976_v2  ;;  %4479 = vtanh.f32 %v634_v7  ;;  %v6018_v63 = vadd.f32 %v5873_v10, %v5890_v25  ;;  %v6022_v1 = vadd.f32 %v5875_v11, %v5892_v26 }
 0x105   :  { %7635 = vst [vmem:[#allocation31_spill] sm:$0xff] %v6009_v59  ;;  %7636 = vst [vmem:[#allocation32_spill] sm:$0xff] %v6013_v60  ;;  %v6026_v17 = vadd.f32 %v5882_v19, %v5890_v25  ;;  %4481 = vtanh.f32 %v638_v13  ;;  %v6030_v6 = vadd.f32 %v5884_v20, %v5892_v26  ;;  %v6034_v61 = vadd.f32 %v5894_v27, %v5890_v25 }
 0x106   :  { %7637 = vst [vmem:[#allocation33_spill] sm:$0xff] %v6018_v63  ;;  %7638 = vst [vmem:[#allocation34_spill] sm:$0xff] %v6022_v1  ;;  %v4458_v5 = vpop.eup %4457  ;;  %4483 = vtanh.f32 %v642_v16  ;;  %v561_v10 = vrot.slane %v5917_v3, 1  ;;  %v6039_v11 = vadd.f32 %v5896_v28, %v5892_v26  ;;  %v565_v52 = vrot.slane %v5917_v3, 2 }
 0x107   :  { %7639 = vst [vmem:[#allocation35_spill] sm:$0xff] %v6026_v17  ;;  %7640 = vst [vmem:[#allocation36_spill] sm:$0xff] %v6030_v6  ;;  %v4460_v8 = vpop.eup %4459  ;;  %v676_v19 = vadd.f32 1.0, %v4458_v5  ;;  %4485 = vtanh.f32 %v646_v53  ;;  %v569_v20 = vrot.slane %v5917_v3, 3  ;;  %v573_v25 = vrot.slane %v5917_v3, 4 }
 0x108   :  { %7641 = vst [vmem:[#allocation37_spill] sm:$0xff] %v6034_v61  ;;  %7642 = vst [vmem:[#allocation38_spill] sm:$0xff] %v6039_v11  ;;  %v4462_v54 = vpop.eup %4461  ;;  %v677_v30 = vadd.f32 1.0, %v4460_v8  ;;  %4487 = vtanh.f32 %v650_v57  ;;  %v577_v38 = vrot.slane %v5917_v3, 5  ;;  %v621_v26 = vadd.f32 %v5917_v3, %v5934_v49 }
 0x109   :  { %v4464_v27 = vpop.eup %4463  ;;  %v678_v58 = vadd.f32 1.0, %v4462_v54  ;;  %4489 = vrcp.f32 %v676_v19  ;;  %v581_v31 = vrot.slane %v5917_v3, 6  ;;  %v625_v4 = vadd.f32 %v561_v10, %v5982_v12 }
 0x10a   :  { %v4466_v28 = vpop.eup %4465  ;;  %v679_v62 = vadd.f32 1.0, %v4464_v27  ;;  %4491 = vrcp.f32 %v677_v30  ;;  %v585_v7 = vrot.slane %v5917_v3, 7  ;;  %v629_v13 = vadd.f32 %v565_v52, %v5991_v23 }
 0x10b   :  { %v4468_v21 = vpop.eup %4467  ;;  %v680_v9 = vadd.f32 1.0, %v4466_v28  ;;  %4493 = vrcp.f32 %v678_v58  ;;  %v633_v57 = vadd.f32 %v569_v20, %v6000_v55  ;;  %v637_v5 = vadd.f32 %v573_v25, %v6009_v59 }
 0x10c   :  { %v4470_v16 = vpop.eup %4469  ;;  %v681_v53 = vadd.f32 1.0, %v4468_v21  ;;  %4495 = vrcp.f32 %v679_v62  ;;  %v641_v54 = vadd.f32 %v577_v38, %v6018_v63  ;;  %v4163_v10 = vmul.f32 -1.442695, %v621_v26 }
 0x10d   :  { %v4472_v8 = vpop.eup %4471  ;;  %v682_v19 = vadd.f32 1.0, %v4470_v16  ;;  %4497 = vrcp.f32 %v680_v9  ;;  %v4164_v3 = vmul.f32 -1.442695, %v625_v4  ;;  %v563_v52 = vrot.slane %v5923_v22, 1 }
 0x10e   :  { %v6054_v30 = vpop.eup %4473  ;;  %v683_v27 = vadd.f32 1.0, %v4472_v8  ;;  %4499 = vrcp.f32 %v681_v53  ;;  %v645_v20 = vadd.f32 %v581_v31, %v6026_v17  ;;  %v4165_v28 = vmul.f32 -1.442695, %v629_v13 }
 0x10f   :  { %v6057_v58 = vpop.eup %4475  ;;  %4501 = vrcp.f32 %v682_v19  ;;  %v567_v25 = vrot.slane %v5923_v22, 2  ;;  %v649_v38 = vadd.f32 %v585_v7, %v6034_v61  ;;  %v4166_v26 = vmul.f32 -1.442695, %v633_v57 }
 0x110   :  { %v6061_v62 = vpop.eup %4477  ;;  %4503 = vrcp.f32 %v683_v27  ;;  %v571_v21 = vrot.slane %v5923_v22, 3  ;;  %v4167_v4 = vmul.f32 -1.442695, %v637_v5  ;;  %v575_v16 = vrot.slane %v5923_v22, 4 }
 0x111   :  { %v6065_v9 = vpop.eup %4479  ;;  %4505 = vpow2.f32 %v4163_v10  ;;  %v623_v31 = vadd.f32 %v5923_v22, %v5938_v50  ;;  %v4168_v53 = vmul.f32 -1.442695, %v641_v54  ;;  %v579_v8 = vrot.slane %v5923_v22, 5 }
 0x112   :  { %v6070_v13 = vpop.eup %4481  ;;  %4507 = vpow2.f32 %v4164_v3  ;;  %v627_v7 = vadd.f32 %v563_v52, %v5986_v15  ;;  %v4169_v19 = vmul.f32 -1.442695, %v645_v20  ;;  %v583_v10 = vrot.slane %v5923_v22, 6 }
 0x113   :  { %v6074_v57 = vpop.eup %4483  ;;  %4509 = vpow2.f32 %v4165_v28  ;;  %v631_v5 = vadd.f32 %v567_v25, %v5995_v24  ;;  %v4170_v50 = vmul.f32 -1.442695, %v649_v38  ;;  %v587_v61 = vrot.slane %v5923_v22, 7 }
 0x114   :  { %v6078_v27 = vpop.eup %4485  ;;  %4511 = vpow2.f32 %v4166_v26  ;;  %v635_v54 = vadd.f32 %v571_v21, %v6004_v56  ;;  %v639_v52 = vadd.f32 %v575_v16, %v6013_v60  ;;  %v4171_v15 = vmul.f32 -1.442695, %v623_v31 }
 0x115   :  { %v6082_v3 = vpop.eup %4487  ;;  %4513 = vpow2.f32 %v4167_v4  ;;  %v643_v20 = vadd.f32 %v579_v8, %v6022_v1  ;;  %v4172_v25 = vmul.f32 -1.442695, %v627_v7  ;;  %v647_v38 = vadd.f32 %v583_v10, %v6030_v6 }
 0x116   :  { %v6085_v28 = vpop.eup %4489  ;;  %4515 = vpow2.f32 %v4168_v53  ;;  %v4173_v22 = vmul.f32 -1.442695, %v631_v5  ;;  %v651_v21 = vadd.f32 %v587_v61, %v6039_v11  ;;  %v4174_v4 = vmul.f32 -1.442695, %v635_v54 }
 0x117   :  { %v6088_v24 = vpop.eup %4491  ;;  %4517 = vpow2.f32 %v4169_v19  ;;  %v4175_v31 = vmul.f32 -1.442695, %v639_v52  ;;  %v4176_v8 = vmul.f32 -1.442695, %v643_v20  ;;  %v4177_v19 = vmul.f32 -1.442695, %v647_v38 }
 0x118   :  { %v6091_v26 = vpop.eup %4493  ;;  %4519 = vpow2.f32 %v4170_v50  ;;  %v4178_v5 = vmul.f32 -1.442695, %v651_v21 }
 0x119   :  { %v6094_v16 = vpop.eup %4495  ;;  %4521 = vpow2.f32 %v4171_v15 }
 0x11a   :  { %v6096_v53 = vpop.eup %4497  ;;  %4523 = vpow2.f32 %v4172_v25 }
 0x11b   :  { %v6098_v7 = vpop.eup %4499  ;;  %4525 = vpow2.f32 %v4173_v22 }
 0x11c   :  { %v6100_v10 = vpop.eup %4501  ;;  %4527 = vpow2.f32 %v4174_v4 }
 0x11d   :  { %v6102_v50 = vpop.eup %4503  ;;  %4529 = vpow2.f32 %v4175_v31 }
 0x11e   :  { %v4506_v61 = vpop.eup %4505  ;;  %4531 = vpow2.f32 %v4176_v8 }
 0x11f   :  { %v4508_v54 = vpop.eup %4507  ;;  %v724_v15 = vadd.f32 1.0, %v4506_v61  ;;  %4533 = vpow2.f32 %v4177_v19 }
 0x120   :  { %v4510_v52 = vpop.eup %4509  ;;  %v725_v11 = vadd.f32 1.0, %v4508_v54  ;;  %4535 = vpow2.f32 %v4178_v5 }
 0x121   :  { %v4512_v20 = vpop.eup %4511  ;;  %v726_v25 = vadd.f32 1.0, %v4510_v52  ;;  %4537 = vrcp.f32 %v724_v15 }
 0x122   :  { %v4514_v22 = vpop.eup %4513  ;;  %v727_v38 = vadd.f32 1.0, %v4512_v20  ;;  %4539 = vrcp.f32 %v725_v11 }
 0x123   :  { %v4516_v6 = vpop.eup %4515  ;;  %v728_v4 = vadd.f32 1.0, %v4514_v22  ;;  %4541 = vrcp.f32 %v726_v25 }
 0x124   :  { %v4518_v21 = vpop.eup %4517  ;;  %v729_v1 = vadd.f32 1.0, %v4516_v6  ;;  %4543 = vrcp.f32 %v727_v38 }
 0x125   :  { %v4520_v31 = vpop.eup %4519  ;;  %v730_v8 = vadd.f32 1.0, %v4518_v21  ;;  %4545 = vrcp.f32 %v728_v4 }
 0x126   :  { %v4522_v61 = vpop.eup %4521  ;;  %v731_v19 = vadd.f32 1.0, %v4520_v31  ;;  %4547 = vrcp.f32 %v729_v1 }
 0x127   :  { %v4524_v54 = vpop.eup %4523  ;;  %4549 = vrcp.f32 %v730_v8  ;;  %v780_v5 = vadd.f32 1.0, %v4522_v61 }
 0x128   :  { %v4526_v52 = vpop.eup %4525  ;;  %4551 = vrcp.f32 %v731_v19  ;;  %v781_v15 = vadd.f32 1.0, %v4524_v54  ;;  %v812_v19 = vmul.f32 %v6085_v28, %v6054_v30  ;;  %v815_v30 = vmul.f32 %v6094_v16, %v6065_v9 }
 0x129   :  { %v4528_v20 = vpop.eup %4527  ;;  %v782_v11 = vadd.f32 1.0, %v4526_v52  ;;  %4553 = vrcp.f32 %v780_v5 }
 0x12a   :  { %v4530_v60 = vpop.eup %4529  ;;  %v783_v22 = vadd.f32 1.0, %v4528_v20  ;;  %4555 = vrcp.f32 %v781_v15  ;;  %v814_v20 = vmul.f32 %v6091_v26, %v6061_v62 }
 0x12b   :  { %v4532_v25 = vpop.eup %4531  ;;  %v784_v56 = vadd.f32 1.0, %v4530_v60  ;;  %4557 = vrcp.f32 %v782_v11  ;;  %v813_v60 = vmul.f32 %v6088_v24, %v6057_v58  ;;  %v816_v24 = vmul.f32 %v6096_v53, %v6070_v13 }
 0x12c   :  { %v4534_v6 = vpop.eup %4533  ;;  %v785_v38 = vadd.f32 1.0, %v4532_v25  ;;  %4559 = vrcp.f32 %v783_v22  ;;  %v818_v13 = vmul.f32 %v6100_v10, %v6078_v27 }
 0x12d   :  { %v4536_v4 = vpop.eup %4535  ;;  %v786_v21 = vadd.f32 1.0, %v4534_v6  ;;  %4561 = vrcp.f32 %v784_v56 }
 0x12e   :  { %v4538_v1 = vpop.eup %4537  ;;  %v787_v31 = vadd.f32 1.0, %v4536_v4  ;;  %4563 = vrcp.f32 %v785_v38  ;;  %v817_v38 = vmul.f32 %v6098_v7, %v6074_v57  ;;  %v819_v57 = vmul.f32 %v6102_v50, %v6082_v3 }
 0x12f   :  { %v4540_v8 = vpop.eup %4539  ;;  %v804_v61 = vmul.f32 0.0, %v4538_v1  ;;  %4565 = vrcp.f32 %v786_v21 }
 0x130   :  { %v4542_v54 = vpop.eup %4541  ;;  %v805_v52 = vmul.f32 0.0, %v4540_v8  ;;  %4567 = vrcp.f32 %v787_v31 }
 0x131   :  { %v4544_v5 = vpop.eup %4543  ;;  %v806_v15 = vmul.f32 0.0, %v4542_v54  ;;  %v6110_v11 = vadd.f32 %v812_v19, %v804_v61 }
 0x132   :  { %v4546_v22 = vpop.eup %4545  ;;  %v807_v25 = vmul.f32 0.0, %v4544_v5  ;;  %v6114_v56 = vadd.f32 %v813_v60, %v805_v52 }
 0x133   :  { %v4548_v28 = vpop.eup %4547  ;;  %v808_v6 = vmul.f32 0.0, %v4546_v22  ;;  %v6118_v58 = vadd.f32 %v814_v20, %v806_v15  ;;  %4569 = vtanh.f32 %v6110_v11 }
 0x134   :  { %v4550_v62 = vpop.eup %4549  ;;  %v809_v26 = vmul.f32 0.0, %v4548_v28  ;;  %v6123_v4 = vadd.f32 %v815_v30, %v807_v25  ;;  %4571 = vtanh.f32 %v6114_v56 }
 0x135   :  { %v4552_v9 = vpop.eup %4551  ;;  %v810_v16 = vmul.f32 0.0, %v4550_v62  ;;  %v6126_v21 = vadd.f32 %v816_v24, %v808_v6  ;;  %4573 = vtanh.f32 %v6118_v58 }
 0x136   :  { %v811_v53 = vmul.f32 0.0, %v4552_v9  ;;  %v6131_v1 = vadd.f32 %v817_v38, %v809_v26  ;;  %4575 = vtanh.f32 %v6123_v4  ;;  %v4554_v31 = vpop.eup %4553 }
 0x137   :  { %4577 = vtanh.f32 %v6126_v21  ;;  %v6137_v7 = vadd.f32 %v818_v13, %v810_v16  ;;  %v4556_v61 = vpop.eup %4555 }
 0x138   :  { %v6139_v8 = vadd.f32 %v819_v57, %v811_v53  ;;  %4579 = vtanh.f32 %v6131_v1  ;;  %v4558_v27 = vpop.eup %4557 }
 0x139   :  { %4581 = vtanh.f32 %v6137_v7  ;;  %v4560_v10 = vpop.eup %4559 }
 0x13a   :  { %4583 = vtanh.f32 %v6139_v8  ;;  %v4562_v19 = vpop.eup %4561 }
 0x13b   :  { %v4564_v54 = vpop.eup %4563 }
 0x13c   :  { %v4566_v52 = vpop.eup %4565 }
 0x13d   :  { %v4568_v3 = vpop.eup %4567 }
 0x140   :  { %v4570_v50 = vpop.eup %4569 }
 0x141   :  { %v4572_v60 = vpop.eup %4571  ;;  %v836_v5 = vmul.f32 %v4570_v50, %v4554_v31 }
 0x142   :  { %v4574_v15 = vpop.eup %4573  ;;  %v837_v20 = vmul.f32 %v4572_v60, %v4556_v61 }
 0x143   :  { %v4576_v22 = vpop.eup %4575  ;;  %v838_v25 = vmul.f32 %v4574_v15, %v4558_v27  ;;  %v844_v30 = vpack.c.bf16 %v836_v5, %v836_v5 }
 0x144   :  { %v4578_v28 = vpop.eup %4577  ;;  %v839_v6 = vmul.f32 %v4576_v22, %v4560_v10  ;;  %v845_v24 = vpack.c.bf16 %v837_v20, %v837_v20 }
 0x145   :  { %v4580_v62 = vpop.eup %4579  ;;  %v840_v26 = vmul.f32 %v4578_v28, %v4562_v19  ;;  %v846_v38 = vpack.c.bf16 %v838_v25, %v838_v25  ;;  %v860_v61 = vunpack.c.l.b16 %v844_v30 }
 0x146   :  { %v4582_v9 = vpop.eup %4581  ;;  %v841_v16 = vmul.f32 %v4580_v62, %v4564_v54  ;;  %v847_v13 = vpack.c.bf16 %v839_v6, %v839_v6  ;;  %v861_v53 = vunpack.c.l.b16 %v845_v24 }
 0x147   :  { %v4584_v57 = vpop.eup %4583  ;;  %v842_v31 = vmul.f32 %v4582_v9, %v4566_v52  ;;  %v848_v50 = vpack.c.bf16 %v840_v26, %v840_v26  ;;  %v862_v60 = vunpack.c.l.b16 %v846_v38 }
 0x148   :  { %v843_v27 = vmul.f32 %v4584_v57, %v4568_v3  ;;  %v849_v5 = vpack.c.bf16 %v841_v16, %v841_v16  ;;  %v863_v15 = vunpack.c.l.b16 %v847_v13  ;;  %v868_v10 = vrot.slane %v861_v53, 7 }
 0x149   :  { %v850_v20 = vpack.c.bf16 %v842_v31, %v842_v31  ;;  %v864_v22 = vunpack.c.l.b16 %v848_v50  ;;  %v871_v19 = vrot.slane %v862_v60, 6  ;;  %v6151_v50 = vld [vmem:[#allocation2 + $0xe0] ss:$16 sps:$4 sm:$0xff]   ;;  %v6157_v60 = vld [vmem:[#allocation2 + $0xc4] ss:$16 sps:$4 sm:$0xff]  }
 0x14a   :  { %v851_v25 = vpack.c.bf16 %v843_v27, %v843_v27  ;;  %v865_v28 = vunpack.c.l.b16 %v849_v5  ;;  %v870_v54 = vsel %vm869_vm1, %v868_v10, %v860_v61  ;;  %v874_v6 = vrot.slane %v863_v15, 5  ;;  %v6154_v61 = vld [vmem:[#allocation2 + $0xe8] ss:$16 sps:$4 sm:$0xff]   ;;  %v6160_v27 = vld [vmem:[#allocation2 + $0xcc] ss:$16 sps:$4 sm:$0xff]  }
 0x14b   :  { %v866_v24 = vunpack.c.l.b16 %v850_v20  ;;  %v873_v62 = vsel %vm872_vm2, %v871_v19, %v870_v54  ;;  %v877_v52 = vrot.slane %v864_v22, 4  ;;  %v7643_v5 = vmov 0   ;;  %v6165_v15 = vld [vmem:[#allocation2 + $0xc0] ss:$16 sps:$4 sm:$0xff]   ;;  %v6168_v10 = vld [vmem:[#allocation2 + $0xc8] ss:$16 sps:$4 sm:$0xff]  }
 0x14c   :  { %v867_v30 = vunpack.c.l.b16 %v851_v25  ;;  %v876_v3 = vsel %vm875_vm3, %v874_v6, %v873_v62  ;;  %v880_v26 = vrot.slane %v865_v28, 3  ;;  %v6171_v20 = vld [vmem:[#allocation2 + $0xa4] ss:$16 sps:$4 sm:$0xff]   ;;  %v6174_v22 = vld [vmem:[#allocation2 + $0xac] ss:$16 sps:$4 sm:$0xff]  }
 0x14d   :  { %v879_v38 = vsel %vm878_vm4, %v877_v52, %v876_v3  ;;  %v883_v9 = vrot.slane %v866_v24, 2  ;;  %v6177_v19 = vld [vmem:[#allocation2 + $0xa0] ss:$16 sps:$4 sm:$0xff]   ;;  %v6180_v25 = vld [vmem:[#allocation2 + $0xa8] ss:$16 sps:$4 sm:$0xff]  }
 0x14e   :  { %v882_v16 = vsel %vm881_vm5, %v880_v26, %v879_v38  ;;  %v886_v13 = vrot.slane %v867_v30, 1  ;;  %7644 = vst [vmem:[#allocation39_spill] sm:$0xff] %v6180_v25  ;;  %v6183_v28 = vld [vmem:[#allocation2 + $0x84] ss:$16 sps:$4 sm:$0xff]   ;;  %v6186_v54 = vld [vmem:[#allocation2 + $0x8c] ss:$16 sps:$4 sm:$0xff]  }
 0x14f   :  { %v885_v53 = vsel %vm884_vm6, %v883_v9, %v882_v16  ;;  %7645 = vst [vmem:[#allocation40_spill] sm:$0xff] %v6183_v28  ;;  %7646 = vst [vmem:[#allocation41_spill] sm:$0xff] %v6186_v54  ;;  %v6189_v6 = vld [vmem:[#allocation2 + $0x80] ss:$16 sps:$4 sm:$0xff]   ;;  %v6192_v24 = vld [vmem:[#allocation2 + $0x88] ss:$16 sps:$4 sm:$0xff]  }
 0x150   :  { %v888_v57 = vsel %vm887_vm7, %v886_v13, %v885_v53  ;;  %7647 = vst [vmem:[#allocation42_spill] sm:$0xff] %v6189_v6  ;;  %7648 = vst [vmem:[#allocation43_spill] sm:$0xff] %v6192_v24  ;;  %v6195_v62 = vld [vmem:[#allocation2 + $0x64] ss:$16 sps:$4 sm:$0xff]   ;;  %v6198_v52 = vld [vmem:[#allocation2 + $0x6c] ss:$16 sps:$4 sm:$0xff]  }
 0x151   :  { %v889_v31 = vpack.c.b16 %v888_v57, %v888_v57  ;;  %7649 = vst [vmem:[#allocation44_spill] sm:$0xff] %v6195_v62  ;;  %7650 = vst [vmem:[#allocation45_spill] sm:$0xff] %v6198_v52  ;;  %v6201_v30 = vld [vmem:[#allocation2 + $0x60] ss:$16 sps:$4 sm:$0xff]   ;;  %v6204_v3 = vld [vmem:[#allocation2 + $0x68] ss:$16 sps:$4 sm:$0xff]  }
 0x152   :  { %7651 = vst [vmem:[#allocation46_spill] sm:$0xff] %v6201_v30  ;;  %7652 = vst [vmem:[#allocation47_spill] sm:$0xff] %v6204_v3  ;;  %v7653_v26 = vld [vmem:[#allocation5_spill] sm:$0xff]  ;;  %v7657_v16 = vld [vmem:[#allocation8_spill] sm:$0xff] }
 0x153   :  { %924 = vmatmul.mubr.bf16.vlgmr.msra.gmra.mxu0 %v889_v31  ;;  %965 = vmatmul.mubr.bf16.vlgmr.msra.gmra.mxu1 %v889_v31  ;;  %v7658_v31 = vld [vmem:[#allocation7_spill] sm:$0xff] }
 0x154   :  { %1326 = vmatpush1.bf16.msra.mxu0 %v6151_v50  ;;  %1367 = vmatpush1.bf16.msra.mxu1 %v6154_v61 }
 0x155   :  { %1327 = vmatprep.subr.bf16.mxu0 %v6157_v60  ;;  %1368 = vmatprep.subr.bf16.mxu1 %v6160_v27 }
 0x156   :  { %1357 = vmatprep.mubr.bf16.mxu0 %v7643_v5  ;;  %1398 = vmatprep.mubr.bf16.mxu1 %v7643_v5 }
 0x158   :  { %1328 = vmatpush1.bf16.msra.mxu0 %v6165_v15  ;;  %1369 = vmatpush1.bf16.msra.mxu1 %v6168_v10 }
 0x159   :  { %1329 = vmatprep.subr.bf16.mxu0 %v6171_v20  ;;  %1370 = vmatprep.subr.bf16.mxu1 %v6174_v22 }
 0x15c   :  { %1330 = vmatpush1.bf16.msra.mxu0 %v6177_v19  ;;  %1371 = vmatpush1.bf16.msra.mxu1 %v6180_v25 }
 0x15d   :  { %1331 = vmatprep.subr.bf16.mxu0 %v6183_v28  ;;  %1372 = vmatprep.subr.bf16.mxu1 %v6186_v54 }
 0x160   :  { %1332 = vmatpush1.bf16.msra.mxu0 %v6189_v6  ;;  %1373 = vmatpush1.bf16.msra.mxu1 %v6192_v24 }
 0x161   :  { %1333 = vmatprep.subr.bf16.mxu0 %v6195_v62  ;;  %1374 = vmatprep.subr.bf16.mxu1 %v6198_v52 }
 0x164   :  { %1334 = vmatpush1.bf16.msra.mxu0 %v6201_v30  ;;  %1375 = vmatpush1.bf16.msra.mxu1 %v6204_v3  ;;  %v7660_v30 = vld [vmem:[#allocation12_spill] sm:$0xff] }
 0x165   :  { %1335 = vmatprep.subr.bf16.mxu0 %v5750_v34  ;;  %1376 = vmatprep.subr.bf16.mxu1 %v5753_v35  ;;  %v7654_v34 = vld [vmem:[#allocation6_spill] sm:$0xff]  ;;  %v6219_v35 = vld [vmem:[#allocation2 + $0xe4] ss:$16 sps:$4 sm:$0xff]  }
 0x166   :  { %7655 = vst [vmem:[#allocation5_spill] sm:$0xff] %v6219_v35 }
 0x168   :  { %1336 = vmatpush1.bf16.msra.mxu0 %v5757_v36  ;;  %1377 = vmatpush1.bf16.msra.mxu1 %v5759_v37  ;;  %v6222_v36 = vld [vmem:[#allocation2 + $0xec] ss:$16 sps:$4 sm:$0xff]  }
 0x169   :  { %1337 = vmatprep.subr.bf16.mxu0 %v5771_v40  ;;  %1378 = vmatprep.subr.bf16.mxu1 %v5775_v41  ;;  %7656 = vst [vmem:[#allocation6_spill] sm:$0xff] %v6222_v36 }
 0x16c   :  { %1338 = vmatpush1.bf16.msra.mxu0 %v5777_v42  ;;  %1379 = vmatpush1.bf16.msra.mxu1 %v5779_v44 }
 0x16d   :  { %1339 = vmatprep.subr.bf16.mxu0 %v5781_v45  ;;  %1380 = vmatprep.subr.bf16.mxu1 %v5784_v46 }
 0x170   :  { %1340 = vmatpush1.bf16.msra.mxu0 %v7653_v26  ;;  %1381 = vmatpush1.bf16.msra.mxu1 %v7654_v34  ;;  %v7659_v34 = vld [vmem:[#allocation9_spill] sm:$0xff] }
 0x171   :  { %1759 = vmatprep.subr.bf16.mxu0 %v6219_v35  ;;  %1800 = vmatprep.subr.bf16.mxu1 %v6222_v36 }
 0x213   :  { %v925_v37 = vpop.f32.mrf.mxu0  ;;  %v966_v40 = vpop.f32.mrf.mxu1 }
 0x214   :  { %v977_v41 = vrot.slane %v925_v37, 7  ;;  %v981_v42 = vrot.slane %v925_v37, 1  ;;  %v985_v44 = vrot.slane %v925_v37, 2  ;;  %v989_v45 = vrot.slane %v925_v37, 3 }
 0x215   :  { %v993_v38 = vrot.slane %v925_v37, 4  ;;  %v997_v46 = vrot.slane %v925_v37, 5  ;;  %v1001_v9 = vrot.slane %v925_v37, 6  ;;  %v1041_v13 = vadd.f32 %v925_v37, %v7657_v16  ;;  %v6226_v53 = vpop.f32.mrf.mxu0  ;;  %v6228_v57 = vpop.f32.mrf.mxu1 }
 0x216   :  { %v1037_v26 = vadd.f32 %v977_v41, %v7658_v31  ;;  %v1045_v35 = vadd.f32 %v981_v42, %v7659_v34  ;;  %v1049_v36 = vadd.f32 %v985_v44, %v5904_v32  ;;  %v1053_v3 = vadd.f32 %v989_v45, %v5906_v33 }
 0x217   :  { %v1057_v52 = vadd.f32 %v993_v38, %v7660_v30  ;;  %v1061_v62 = vadd.f32 %v997_v46, %v5910_v39  ;;  %v4180_v24 = vmul.f32 -1.442695, %v1041_v13  ;;  %v929_v6 = vpop.f32.mrf.mxu0  ;;  %v970_v54 = vpop.f32.mrf.mxu1  ;;  %v1065_v37 = vadd.f32 %v1001_v9, %v5912_v43 }
 0x218   :  { %v4179_v16 = vmul.f32 -1.442695, %v1037_v26  ;;  %v4181_v28 = vmul.f32 -1.442695, %v1045_v35  ;;  %v4182_v25 = vmul.f32 -1.442695, %v1049_v36 }
 0x219   :  { %4585 = vpow2.f32 %v4180_v24  ;;  %v4183_v41 = vmul.f32 -1.442695, %v1053_v3  ;;  %v930_v31 = vpop.f32.mrf.mxu0  ;;  %v971_v42 = vpop.f32.mrf.mxu1  ;;  %v4184_v44 = vmul.f32 -1.442695, %v1057_v52  ;;  %v979_v32 = vrot.slane %v966_v40, 7 }
 0x21a   :  { %4587 = vpow2.f32 %v4179_v16  ;;  %v4185_v45 = vmul.f32 -1.442695, %v1061_v62  ;;  %v983_v38 = vrot.slane %v966_v40, 1  ;;  %v4186_v46 = vmul.f32 -1.442695, %v1065_v37 }
 0x21b   :  { %4589 = vpow2.f32 %v4181_v28  ;;  %v987_v13 = vrot.slane %v966_v40, 2  ;;  %v991_v54 = vrot.slane %v966_v40, 3  ;;  %v1039_v6 = vadd.f32 %v979_v32, %v5927_v0 }
 0x21c   :  { %4591 = vpow2.f32 %v4182_v25  ;;  %v995_v35 = vrot.slane %v966_v40, 4  ;;  %v1043_v24 = vadd.f32 %v966_v40, %v5942_v47  ;;  %v999_v3 = vrot.slane %v966_v40, 5 }
 0x21d   :  { %4593 = vpow2.f32 %v4183_v41  ;;  %v1047_v36 = vadd.f32 %v983_v38, %v5947_v51  ;;  %v1003_v52 = vrot.slane %v966_v40, 6  ;;  %v1051_v28 = vadd.f32 %v987_v13, %v5952_v29 }
 0x21e   :  { %4595 = vpow2.f32 %v4184_v44  ;;  %v1055_v25 = vadd.f32 %v991_v54, %v5957_v48  ;;  %v1059_v62 = vadd.f32 %v995_v35, %v5964_v14  ;;  %v1063_v32 = vadd.f32 %v999_v3, %v5970_v18 }
 0x21f   :  { %4597 = vpow2.f32 %v4185_v45  ;;  %v1067_v9 = vadd.f32 %v1003_v52, %v5976_v2  ;;  %v978_v16 = vrot.slane %v6226_v53, 7  ;;  %v982_v37 = vrot.slane %v6226_v53, 1 }
 0x220   :  { %4599 = vpow2.f32 %v4186_v46  ;;  %v986_v44 = vrot.slane %v6226_v53, 2  ;;  %v990_v45 = vrot.slane %v6226_v53, 3  ;;  %v994_v13 = vrot.slane %v6226_v53, 4 }
 0x221   :  { %4601 = vtanh.f32 %v1039_v6  ;;  %v1038_v54 = vadd.f32 %v978_v16, %v5934_v49  ;;  %v1042_v3 = vadd.f32 %v6226_v53, %v5982_v12 }
 0x222   :  { %4603 = vtanh.f32 %v1043_v24  ;;  %v998_v24 = vrot.slane %v6226_v53, 5  ;;  %v1054_v16 = vadd.f32 %v990_v45, %v6009_v59  ;;  %v984_v45 = vrot.slane %v6228_v57, 1 }
 0x223   :  { %4605 = vtanh.f32 %v1047_v36 }
 0x224   :  { %4607 = vtanh.f32 %v1051_v28  ;;  %v1002_v28 = vrot.slane %v6226_v53, 6  ;;  %v1058_v53 = vadd.f32 %v994_v13, %v6018_v63  ;;  %v4191_v13 = vmul.f32 -1.442695, %v1054_v16  ;;  %v7664_v16 = vld [vmem:[#allocation28_spill] sm:$0xff] }
 0x225   :  { %4609 = vtanh.f32 %v1055_v25  ;;  %v1046_v25 = vadd.f32 %v982_v37, %v5991_v23  ;;  %v4188_v37 = vmul.f32 -1.442695, %v1042_v3  ;;  %v992_v3 = vrot.slane %v6228_v57, 3 }
 0x226   :  { %v4586_v31 = vpop.eup %4585  ;;  %4611 = vtanh.f32 %v1059_v62  ;;  %v1048_v63 = vadd.f32 %v984_v45, %v7664_v16 }
 0x227   :  { %v4588_v40 = vpop.eup %4587  ;;  %v1094_v26 = vadd.f32 1.0, %v4586_v31  ;;  %4613 = vtanh.f32 %v1063_v32 }
 0x228   :  { %v4590_v41 = vpop.eup %4589  ;;  %v1093_v42 = vadd.f32 1.0, %v4588_v40  ;;  %4615 = vtanh.f32 %v1067_v9  ;;  %v1050_v9 = vadd.f32 %v986_v44, %v6000_v55  ;;  %v1062_v44 = vadd.f32 %v998_v24, %v6026_v17 }
 0x229   :  { %v4592_v38 = vpop.eup %4591  ;;  %v1095_v46 = vadd.f32 1.0, %v4590_v41  ;;  %4617 = vrcp.f32 %v1094_v26  ;;  %v4187_v26 = vmul.f32 -1.442695, %v1038_v54  ;;  %v980_v41 = vrot.slane %v6228_v57, 7  ;;  %v7661_v54 = vld [vmem:[#allocation37_spill] sm:$0xff] }
 0x22a   :  { %v4594_v6 = vpop.eup %4593  ;;  %v1096_v35 = vadd.f32 1.0, %v4592_v38  ;;  %4619 = vrcp.f32 %v1093_v42  ;;  %v996_v17 = vrot.slane %v6228_v57, 4 }
 0x22b   :  { %v4596_v36 = vpop.eup %4595  ;;  %v1097_v52 = vadd.f32 1.0, %v4594_v6  ;;  %4621 = vrcp.f32 %v1095_v46  ;;  %v4189_v6 = vmul.f32 -1.442695, %v1046_v25  ;;  %v4192_v25 = vmul.f32 -1.442695, %v1058_v53  ;;  %v7665_v53 = vld [vmem:[#allocation30_spill] sm:$0xff] }
 0x22c   :  { %v4598_v62 = vpop.eup %4597  ;;  %v1098_v32 = vadd.f32 1.0, %v4596_v36  ;;  %4623 = vrcp.f32 %v1096_v35  ;;  %v1066_v36 = vadd.f32 %v1002_v28, %v7661_v54  ;;  %v4193_v54 = vmul.f32 -1.442695, %v1062_v44  ;;  %v7667_v44 = vld [vmem:[#allocation34_spill] sm:$0xff] }
 0x22d   :  { %v4600_v31 = vpop.eup %4599  ;;  %v1099_v40 = vadd.f32 1.0, %v4598_v62  ;;  %4625 = vrcp.f32 %v1097_v52  ;;  %v4190_v52 = vmul.f32 -1.442695, %v1050_v9  ;;  %v988_v62 = vrot.slane %v6228_v57, 2 }
 0x22e   :  { %v6259_v42 = vpop.eup %4601  ;;  %v1100_v38 = vadd.f32 1.0, %v4600_v31  ;;  %4627 = vrcp.f32 %v1098_v32  ;;  %v7662_v31 = vld [vmem:[#allocation17_spill] sm:$0xff]  ;;  %v1060_v49 = vadd.f32 %v996_v17, %v7667_v44 }
 0x22f   :  { %v6262_v46 = vpop.eup %4603  ;;  %4629 = vrcp.f32 %v1099_v40  ;;  %v1040_v40 = vadd.f32 %v980_v41, %v7662_v31  ;;  %v4194_v41 = vmul.f32 -1.442695, %v1066_v36  ;;  %v1052_v31 = vadd.f32 %v988_v62, %v7665_v53  ;;  %v7668_v36 = vld [vmem:[#allocation36_spill] sm:$0xff]  ;;  %v7669_v62 = vld [vmem:[#allocation38_spill] sm:$0xff] }
 0x230   :  { %v6266_v35 = vpop.eup %4605  ;;  %4631 = vrcp.f32 %v1100_v38  ;;  %v7663_v38 = vld [vmem:[#allocation26_spill] sm:$0xff]  ;;  %v4200_v17 = vmul.f32 -1.442695, %v1060_v49 }
 0x231   :  { %v6270_v32 = vpop.eup %4607  ;;  %4633 = vpow2.f32 %v4187_v26  ;;  %v1044_v28 = vadd.f32 %v6228_v57, %v7663_v38  ;;  %v1000_v26 = vrot.slane %v6228_v57, 5  ;;  %v7666_v38 = vld [vmem:[#allocation32_spill] sm:$0xff]  ;;  %v4195_v12 = vmul.f32 -1.442695, %v1040_v40 }
 0x232   :  { %v6274_v24 = vpop.eup %4609  ;;  %4635 = vpow2.f32 %v4188_v37  ;;  %v1004_v37 = vrot.slane %v6228_v57, 6  ;;  %v1056_v23 = vadd.f32 %v992_v3, %v7666_v38  ;;  %v4197_v57 = vmul.f32 -1.442695, %v1048_v63 }
 0x233   :  { %v6279_v9 = vpop.eup %4611  ;;  %4637 = vpow2.f32 %v4189_v6  ;;  %v4196_v45 = vmul.f32 -1.442695, %v1044_v28  ;;  %v4198_v53 = vmul.f32 -1.442695, %v1052_v31 }
 0x234   :  { %v6283_v59 = vpop.eup %4613  ;;  %4639 = vpow2.f32 %v4190_v52  ;;  %v1064_v52 = vadd.f32 %v1000_v26, %v7668_v36  ;;  %v4199_v40 = vmul.f32 -1.442695, %v1056_v23 }
 0x235   :  { %v6287_v55 = vpop.eup %4615  ;;  %4641 = vpow2.f32 %v4191_v13  ;;  %v1068_v13 = vadd.f32 %v1004_v37, %v7669_v62 }
 0x236   :  { %v6290_v6 = vpop.eup %4617  ;;  %4643 = vpow2.f32 %v4192_v25 }
 0x237   :  { %v6293_v16 = vpop.eup %4619  ;;  %4645 = vpow2.f32 %v4193_v54  ;;  %v4201_v54 = vmul.f32 -1.442695, %v1064_v52  ;;  %v4202_v63 = vmul.f32 -1.442695, %v1068_v13 }
 0x238   :  { %v6296_v2 = vpop.eup %4621  ;;  %4647 = vpow2.f32 %v4194_v41 }
 0x239   :  { %v6299_v3 = vpop.eup %4623  ;;  %4649 = vpow2.f32 %v4195_v12 }
 0x23a   :  { %v6301_v25 = vpop.eup %4625  ;;  %4651 = vpow2.f32 %v4196_v45 }
 0x23b   :  { %v6303_v28 = vpop.eup %4627  ;;  %4653 = vpow2.f32 %v4197_v57 }
 0x23c   :  { %v6305_v26 = vpop.eup %4629  ;;  %4655 = vpow2.f32 %v4198_v53 }
 0x23d   :  { %v6307_v41 = vpop.eup %4631  ;;  %4657 = vpow2.f32 %v4199_v40 }
 0x23e   :  { %v4634_v31 = vpop.eup %4633  ;;  %4659 = vpow2.f32 %v4200_v17 }
 0x23f   :  { %v4636_v37 = vpop.eup %4635  ;;  %v1141_v12 = vadd.f32 1.0, %v4634_v31  ;;  %4661 = vpow2.f32 %v4201_v54 }
 0x240   :  { %v4638_v23 = vpop.eup %4637  ;;  %v1142_v62 = vadd.f32 1.0, %v4636_v37  ;;  %4663 = vpow2.f32 %v4202_v63 }
 0x241   :  { %v4640_v49 = vpop.eup %4639  ;;  %v1143_v45 = vadd.f32 1.0, %v4638_v23  ;;  %4665 = vrcp.f32 %v1141_v12 }
 0x242   :  { %v4642_v57 = vpop.eup %4641  ;;  %v1144_v52 = vadd.f32 1.0, %v4640_v49  ;;  %4667 = vrcp.f32 %v1142_v62 }
 0x243   :  { %v4644_v36 = vpop.eup %4643  ;;  %v1145_v53 = vadd.f32 1.0, %v4642_v57  ;;  %4669 = vrcp.f32 %v1143_v45 }
 0x244   :  { %v4646_v13 = vpop.eup %4645  ;;  %v1146_v44 = vadd.f32 1.0, %v4644_v36  ;;  %4671 = vrcp.f32 %v1144_v52  ;;  %v1229_v52 = vrot.slane %v6110_v11, 7  ;;  %v1235_v11 = vrot.slane %v6137_v7, 7 }
 0x245   :  { %v4648_v40 = vpop.eup %4647  ;;  %v1147_v17 = vadd.f32 1.0, %v4646_v13  ;;  %4673 = vrcp.f32 %v1145_v53  ;;  %v1230_v53 = vrot.slane %v6114_v56, 7  ;;  %v1253_v56 = vmul.f32 %v6293_v16, %v6259_v42 }
 0x246   :  { %v4650_v31 = vpop.eup %4649  ;;  %v1148_v54 = vadd.f32 1.0, %v4648_v40  ;;  %4675 = vrcp.f32 %v1146_v44  ;;  %v1231_v40 = vrot.slane %v6118_v58, 7 }
 0x247   :  { %v4652_v37 = vpop.eup %4651  ;;  %4677 = vrcp.f32 %v1147_v17  ;;  %v1197_v63 = vadd.f32 1.0, %v4650_v31  ;;  %v1232_v17 = vrot.slane %v6123_v4, 7  ;;  %v1236_v4 = vrot.slane %v6139_v8, 7 }
 0x248   :  { %v4654_v23 = vpop.eup %4653  ;;  %4679 = vrcp.f32 %v1148_v54  ;;  %v1198_v12 = vadd.f32 1.0, %v4652_v37  ;;  %v1233_v37 = vrot.slane %v6126_v21, 7 }
 0x249   :  { %v4656_v49 = vpop.eup %4655  ;;  %v1199_v62 = vadd.f32 1.0, %v4654_v23  ;;  %4681 = vrcp.f32 %v1197_v63 }
 0x24a   :  { %v4658_v38 = vpop.eup %4657  ;;  %v1200_v57 = vadd.f32 1.0, %v4656_v49  ;;  %4683 = vrcp.f32 %v1198_v12  ;;  %v1254_v49 = vmul.f32 %v6290_v6, %v6262_v46  ;;  %v1257_v46 = vmul.f32 %v6301_v25, %v6274_v24 }
 0x24b   :  { %v4660_v45 = vpop.eup %4659  ;;  %v1201_v18 = vadd.f32 1.0, %v4658_v38  ;;  %4685 = vrcp.f32 %v1199_v62  ;;  %v1234_v38 = vrot.slane %v6131_v1, 7  ;;  %v1255_v1 = vmul.f32 %v6296_v2, %v6266_v35 }
 0x24c   :  { %v4662_v36 = vpop.eup %4661  ;;  %v1202_v13 = vadd.f32 1.0, %v4660_v45  ;;  %4687 = vrcp.f32 %v1200_v57 }
 0x24d   :  { %v4664_v44 = vpop.eup %4663  ;;  %v1203_v31 = vadd.f32 1.0, %v4662_v36  ;;  %4689 = vrcp.f32 %v1201_v18  ;;  %v1256_v18 = vmul.f32 %v6299_v3, %v6270_v32 }
 0x24e   :  { %v4666_v54 = vpop.eup %4665  ;;  %v1204_v63 = vadd.f32 1.0, %v4664_v44  ;;  %4691 = vrcp.f32 %v1202_v13  ;;  %v1259_v13 = vmul.f32 %v6305_v26, %v6283_v59  ;;  %v1260_v44 = vmul.f32 %v6307_v41, %v6287_v55 }
 0x24f   :  { %v4668_v23 = vpop.eup %4667  ;;  %v1245_v12 = vmul.f32 %v4666_v54, %v1229_v52  ;;  %4693 = vrcp.f32 %v1203_v31  ;;  %v1258_v52 = vmul.f32 %v6303_v28, %v6279_v9 }
 0x250   :  { %v4670_v58 = vpop.eup %4669  ;;  %v1246_v62 = vmul.f32 %v4668_v23, %v1230_v53  ;;  %4695 = vrcp.f32 %v1204_v63 }
 0x251   :  { %v4672_v21 = vpop.eup %4671  ;;  %v1247_v57 = vmul.f32 %v4670_v58, %v1231_v40  ;;  %v6323_v45 = vadd.f32 %v1253_v56, %v1245_v12 }
 0x252   :  { %v4674_v7 = vpop.eup %4673  ;;  %v6327_v42 = vadd.f32 %v1254_v49, %v1246_v62  ;;  %v1248_v8 = vmul.f32 %v4672_v21, %v1232_v17 }
 0x253   :  { %v4676_v16 = vpop.eup %4675  ;;  %v1249_v6 = vmul.f32 %v4674_v7, %v1233_v37  ;;  %v6331_v36 = vadd.f32 %v1255_v1, %v1247_v57  ;;  %4697 = vtanh.f32 %v6323_v45 }
 0x254   :  { %v4678_v2 = vpop.eup %4677  ;;  %v1250_v35 = vmul.f32 %v4676_v16, %v1234_v38  ;;  %v6336_v53 = vadd.f32 %v1256_v18, %v1248_v8  ;;  %4699 = vtanh.f32 %v6327_v42 }
 0x255   :  { %v4680_v32 = vpop.eup %4679  ;;  %v1251_v3 = vmul.f32 %v4678_v2, %v1235_v11  ;;  %v6341_v24 = vadd.f32 %v1257_v46, %v1249_v6  ;;  %4701 = vtanh.f32 %v6331_v36 }
 0x256   :  { %v1252_v25 = vmul.f32 %v4680_v32, %v1236_v4  ;;  %v6346_v40 = vadd.f32 %v1258_v52, %v1250_v35  ;;  %4703 = vtanh.f32 %v6336_v53  ;;  %v4682_v28 = vpop.eup %4681 }
 0x257   :  { %v6349_v9 = vadd.f32 %v1259_v13, %v1251_v3  ;;  %4705 = vtanh.f32 %v6341_v24  ;;  %v4684_v59 = vpop.eup %4683 }
 0x258   :  { %v6352_v17 = vadd.f32 %v1260_v44, %v1252_v25  ;;  %4707 = vtanh.f32 %v6346_v40  ;;  %v4686_v26 = vpop.eup %4685 }
 0x259   :  { %4709 = vtanh.f32 %v6349_v9  ;;  %v4688_v55 = vpop.eup %4687 }
 0x25a   :  { %4711 = vtanh.f32 %v6352_v17  ;;  %v4690_v41 = vpop.eup %4689 }
 0x25b   :  { %v4692_v31 = vpop.eup %4691 }
 0x25c   :  { %v4694_v54 = vpop.eup %4693 }
 0x25d   :  { %v4696_v37 = vpop.eup %4695 }
 0x260   :  { %v4698_v38 = vpop.eup %4697 }
 0x261   :  { %v4700_v63 = vpop.eup %4699  ;;  %v1277_v23 = vmul.f32 %v4698_v38, %v4682_v28 }
 0x262   :  { %v4702_v11 = vpop.eup %4701  ;;  %v1278_v56 = vmul.f32 %v4700_v63, %v4684_v59 }
 0x263   :  { %v4704_v12 = vpop.eup %4703  ;;  %v1279_v58 = vmul.f32 %v4702_v11, %v4686_v26  ;;  %v1285_v4 = vpack.c.bf16 %v1277_v23, %v1277_v23 }
 0x264   :  { %v4706_v49 = vpop.eup %4705  ;;  %v1280_v62 = vmul.f32 %v4704_v12, %v4688_v55  ;;  %v1286_v21 = vpack.c.bf16 %v1278_v56, %v1278_v56 }
 0x265   :  { %v4708_v1 = vpop.eup %4707  ;;  %v1281_v57 = vmul.f32 %v4706_v49, %v4690_v41  ;;  %v1287_v7 = vpack.c.bf16 %v1279_v58, %v1279_v58  ;;  %v1301_v18 = vunpack.c.l.b16 %v1285_v4 }
 0x266   :  { %v4710_v8 = vpop.eup %4709  ;;  %v1282_v16 = vmul.f32 %v4708_v1, %v4692_v31  ;;  %v1288_v46 = vpack.c.bf16 %v1280_v62, %v1280_v62  ;;  %v1302_v6 = vunpack.c.l.b16 %v1286_v21 }
 0x267   :  { %v4712_v2 = vpop.eup %4711  ;;  %v1283_v35 = vmul.f32 %v4710_v8, %v4694_v54  ;;  %v1289_v52 = vpack.c.bf16 %v1281_v57, %v1281_v57  ;;  %v1303_v32 = vunpack.c.l.b16 %v1287_v7  ;;  %v1309_v3 = vrot.slane %v1301_v18, 1  ;;  %v7674_v57 = vld [vmem:[#allocation43_spill] sm:$0xff]  ;;  %v7675_v7 = vld [vmem:[#allocation44_spill] sm:$0xff] }
 0x268   :  { %v1284_v13 = vmul.f32 %v4712_v2, %v4696_v37  ;;  %v1290_v25 = vpack.c.bf16 %v1282_v16, %v1282_v16  ;;  %v1304_v44 = vunpack.c.l.b16 %v1288_v46  ;;  %v6390_v18 = vld [vmem:[#allocation2 + $0x40] ss:$16 sps:$4 sm:$0xff]   ;;  %v6393_v8 = vld [vmem:[#allocation2 + $0x48] ss:$16 sps:$4 sm:$0xff]   ;;  %v6396_v16 = vld [vmem:[#allocation2 + $0x24] ss:$16 sps:$4 sm:$0xff]  }
 0x269   :  { %v1291_v28 = vpack.c.bf16 %v1283_v35, %v1283_v35  ;;  %v1305_v59 = vunpack.c.l.b16 %v1289_v52  ;;  %v1310_v26 = vsel %vm869_vm1, %v1302_v6, %v1309_v3  ;;  %v1311_v55 = vrot.slane %v1303_v32, 7  ;;  %v6399_v46 = vld [vmem:[#allocation2 + $0x2c] ss:$16 sps:$4 sm:$0xff]   ;;  %v6402_v6 = vld [vmem:[#allocation2 + $0x20] ss:$16 sps:$4 sm:$0xff]  }
 0x26a   :  { %v1292_v41 = vpack.c.bf16 %v1284_v13, %v1284_v13  ;;  %v1306_v38 = vunpack.c.l.b16 %v1290_v25  ;;  %v1313_v63 = vrot.slane %v1304_v44, 6  ;;  %v6405_v2 = vld [vmem:[#allocation2 + $0x28] ss:$16 sps:$4 sm:$0xff]   ;;  %v6408_v35 = vld [vmem:[#allocation2 + $0x4] ss:$16 sps:$4 sm:$0xff]  }
 0x26b   :  { %v1307_v23 = vunpack.c.l.b16 %v1291_v28  ;;  %v1312_v31 = vsel %vm872_vm2, %v1311_v55, %v1310_v26  ;;  %v1315_v11 = vrot.slane %v1305_v59, 5  ;;  %v6411_v52 = vld [vmem:[#allocation2 + $0xc] ss:$16 sps:$4 sm:$0xff]   ;;  %v6414_v32 = vld [vmem:[#allocation2] ss:$16 sps:$4 sm:$0xff]  }
 0x26c   :  { %v1308_v56 = vunpack.c.l.b16 %v1292_v41  ;;  %v1314_v54 = vsel %vm875_vm3, %v1313_v63, %v1312_v31  ;;  %v1317_v12 = vrot.slane %v1306_v38, 4  ;;  %v6417_v3 = vld [vmem:[#allocation2 + $0x8] ss:$16 sps:$4 sm:$0xff]   ;;  %v7679_v13 = vld [vmem:[#allocation5_spill] sm:$0xff] }
 0x26d   :  { %v1316_v37 = vsel %vm878_vm4, %v1315_v11, %v1314_v54  ;;  %v1319_v58 = vrot.slane %v1307_v23, 3  ;;  %v7680_v25 = vld [vmem:[#allocation6_spill] sm:$0xff]  ;;  %v7681_v54 = vld [vmem:[#allocation7_spill] sm:$0xff] }
 0x26e   :  { %v1318_v4 = vsel %vm881_vm5, %v1317_v12, %v1316_v37  ;;  %v1321_v49 = vrot.slane %v1308_v56, 2  ;;  %v7682_v37 = vld [vmem:[#allocation8_spill] sm:$0xff] }
 0x26f   :  { %v1320_v62 = vsel %vm884_vm6, %v1319_v58, %v1318_v4  ;;  %v7683_v4 = vld [vmem:[#allocation10_spill] sm:$0xff] }
 0x270   :  { %v1322_v21 = vsel %vm887_vm7, %v1321_v49, %v1320_v62 }
 0x271   :  { %v1323_v1 = vpack.c.b16 %v1322_v21, %v1322_v21 }
 0x273   :  { %1358 = vmatmul.mubr.bf16.vlgmr.msra.gmra.mxu0 %v1323_v1  ;;  %1399 = vmatmul.mubr.bf16.vlgmr.msra.gmra.mxu1 %v1323_v1 }
 0x274   :  { %1760 = vmatpush1.bf16.msra.mxu0 %v6151_v50  ;;  %1801 = vmatpush1.bf16.msra.mxu1 %v6154_v61  ;;  %v7670_v50 = vld [vmem:[#allocation39_spill] sm:$0xff]  ;;  %v7671_v61 = vld [vmem:[#allocation40_spill] sm:$0xff] }
 0x275   :  { %1761 = vmatprep.subr.bf16.mxu0 %v6157_v60  ;;  %1802 = vmatprep.subr.bf16.mxu1 %v6160_v27  ;;  %v7672_v60 = vld [vmem:[#allocation41_spill] sm:$0xff]  ;;  %v7673_v27 = vld [vmem:[#allocation42_spill] sm:$0xff] }
 0x276   :  { %1791 = vmatprep.mubr.bf16.mxu0 %v7643_v5  ;;  %1832 = vmatprep.mubr.bf16.mxu1 %v7643_v5 }
 0x278   :  { %1762 = vmatpush1.bf16.msra.mxu0 %v6165_v15  ;;  %1803 = vmatpush1.bf16.msra.mxu1 %v6168_v10  ;;  %v7676_v15 = vld [vmem:[#allocation45_spill] sm:$0xff]  ;;  %v7677_v10 = vld [vmem:[#allocation46_spill] sm:$0xff] }
 0x279   :  { %1763 = vmatprep.subr.bf16.mxu0 %v6171_v20  ;;  %1804 = vmatprep.subr.bf16.mxu1 %v6174_v22  ;;  %v7678_v20 = vld [vmem:[#allocation47_spill] sm:$0xff] }
 0x27a   :  { %v6384_v22 = vld [vmem:[#allocation2 + $0x44] ss:$16 sps:$4 sm:$0xff]  }
 0x27c   :  { %1764 = vmatpush1.bf16.msra.mxu0 %v6177_v19  ;;  %1805 = vmatpush1.bf16.msra.mxu1 %v7670_v50  ;;  %v6387_v19 = vld [vmem:[#allocation2 + $0x4c] ss:$16 sps:$4 sm:$0xff]  }
 0x27d   :  { %1765 = vmatprep.subr.bf16.mxu0 %v7671_v61  ;;  %1806 = vmatprep.subr.bf16.mxu1 %v7672_v60 }
 0x280   :  { %1766 = vmatpush1.bf16.msra.mxu0 %v7673_v27  ;;  %1807 = vmatpush1.bf16.msra.mxu1 %v7674_v57 }
 0x281   :  { %1767 = vmatprep.subr.bf16.mxu0 %v7675_v7  ;;  %1808 = vmatprep.subr.bf16.mxu1 %v7676_v15 }
 0x284   :  { %1768 = vmatpush1.bf16.msra.mxu0 %v7677_v10  ;;  %1809 = vmatpush1.bf16.msra.mxu1 %v7678_v20 }
 0x285   :  { %1769 = vmatprep.subr.bf16.mxu0 %v6384_v22  ;;  %1810 = vmatprep.subr.bf16.mxu1 %v6387_v19 }
 0x288   :  { %1770 = vmatpush1.bf16.msra.mxu0 %v6390_v18  ;;  %1811 = vmatpush1.bf16.msra.mxu1 %v6393_v8 }
 0x289   :  { %1771 = vmatprep.subr.bf16.mxu0 %v6396_v16  ;;  %1812 = vmatprep.subr.bf16.mxu1 %v6399_v46 }
 0x28c   :  { %1772 = vmatpush1.bf16.msra.mxu0 %v6402_v6  ;;  %1813 = vmatpush1.bf16.msra.mxu1 %v6405_v2 }
 0x28d   :  { %1773 = vmatprep.subr.bf16.mxu0 %v6408_v35  ;;  %1814 = vmatprep.subr.bf16.mxu1 %v6411_v52 }
 0x290   :  { %1774 = vmatpush1.bf16.msra.mxu0 %v6414_v32  ;;  %1815 = vmatpush1.bf16.msra.mxu1 %v6417_v3 }
 0x291   :  { %2193 = vmatprep.subr.bf16.mxu0 %v7679_v13  ;;  %2234 = vmatprep.subr.bf16.mxu1 %v7680_v25 }
 0x333   :  { %v1359_v44 = vpop.f32.mrf.mxu0  ;;  %v1400_v28 = vpop.f32.mrf.mxu1 }
 0x334   :  { %v1411_v59 = vrot.slane %v1359_v44, 6  ;;  %v1415_v26 = vrot.slane %v1359_v44, 7  ;;  %v1419_v55 = vrot.slane %v1359_v44, 1  ;;  %v1423_v41 = vrot.slane %v1359_v44, 2 }
 0x335   :  { %v1427_v38 = vrot.slane %v1359_v44, 3  ;;  %v1431_v63 = vrot.slane %v1359_v44, 4  ;;  %v1435_v23 = vrot.slane %v1359_v44, 5  ;;  %v1479_v31 = vadd.f32 %v1359_v44, %v7659_v34  ;;  %v6423_v11 = vpop.f32.mrf.mxu0  ;;  %v6425_v56 = vpop.f32.mrf.mxu1 }
 0x336   :  { %v1471_v12 = vadd.f32 %v1411_v59, %v7681_v54  ;;  %v1475_v58 = vadd.f32 %v1415_v26, %v7682_v37  ;;  %v1483_v49 = vadd.f32 %v1419_v55, %v7683_v4  ;;  %v1487_v62 = vadd.f32 %v1423_v41, %v5906_v33 }
 0x337   :  { %v1491_v21 = vadd.f32 %v1427_v38, %v7660_v30  ;;  %v1495_v1 = vadd.f32 %v1431_v63, %v5910_v39  ;;  %v4205_v50 = vmul.f32 -1.442695, %v1479_v31  ;;  %v1363_v61 = vpop.f32.mrf.mxu0  ;;  %v1404_v60 = vpop.f32.mrf.mxu1  ;;  %v1499_v27 = vadd.f32 %v1435_v23, %v5912_v43 }
 0x338   :  { %v4203_v57 = vmul.f32 -1.442695, %v1471_v12  ;;  %v4204_v7 = vmul.f32 -1.442695, %v1475_v58  ;;  %v4206_v15 = vmul.f32 -1.442695, %v1483_v49  ;;  %v1481_v58 = vadd.f32 %v1400_v28, %v5947_v51 }
 0x339   :  { %4713 = vpow2.f32 %v4205_v50  ;;  %v4207_v10 = vmul.f32 -1.442695, %v1487_v62  ;;  %v1364_v20 = vpop.f32.mrf.mxu0  ;;  %v1405_v13 = vpop.f32.mrf.mxu1  ;;  %v4208_v25 = vmul.f32 -1.442695, %v1491_v21  ;;  %v1413_v44 = vrot.slane %v1400_v28, 6  ;;  %v7684_v50 = vld [vmem:[#allocation23_spill] sm:$0xff] }
 0x33a   :  { %4715 = vpow2.f32 %v4203_v57  ;;  %v1417_v59 = vrot.slane %v1400_v28, 7  ;;  %v4209_v26 = vmul.f32 -1.442695, %v1495_v1  ;;  %v4210_v55 = vmul.f32 -1.442695, %v1499_v27  ;;  %v7685_v60 = vld [vmem:[#allocation24_spill] sm:$0xff] }
 0x33b   :  { %4717 = vpow2.f32 %v4204_v7  ;;  %v1421_v41 = vrot.slane %v1400_v28, 1  ;;  %v1425_v38 = vrot.slane %v1400_v28, 2  ;;  %v1473_v63 = vadd.f32 %v1413_v44, %v5927_v0 }
 0x33c   :  { %4719 = vpow2.f32 %v4206_v15  ;;  %v1429_v23 = vrot.slane %v1400_v28, 3  ;;  %v1477_v31 = vadd.f32 %v1417_v59, %v5942_v47  ;;  %v1433_v12 = vrot.slane %v1400_v28, 4 }
 0x33d   :  { %4721 = vpow2.f32 %v4207_v10  ;;  %v1437_v49 = vrot.slane %v1400_v28, 5  ;;  %v1485_v62 = vadd.f32 %v1421_v41, %v5952_v29  ;;  %v1489_v21 = vadd.f32 %v1425_v38, %v5957_v48  ;;  %v7686_v38 = vld [vmem:[#allocation16_spill] sm:$0xff]  ;;  %v7699_v48 = vld [vmem:[#allocation34_spill] sm:$0xff] }
 0x33e   :  { %4723 = vpow2.f32 %v4208_v25  ;;  %v1493_v1 = vadd.f32 %v1429_v23, %v5964_v14  ;;  %v1497_v61 = vadd.f32 %v1433_v12, %v7684_v50  ;;  %v1412_v57 = vrot.slane %v6423_v11, 6 }
 0x33f   :  { %4725 = vpow2.f32 %v4209_v26  ;;  %v1501_v27 = vadd.f32 %v1437_v49, %v7685_v60  ;;  %v1416_v28 = vrot.slane %v6423_v11, 7  ;;  %v1420_v20 = vrot.slane %v6423_v11, 1 }
 0x340   :  { %4727 = vpow2.f32 %v4210_v55  ;;  %v1424_v44 = vrot.slane %v6423_v11, 2  ;;  %v1428_v59 = vrot.slane %v6423_v11, 3  ;;  %v1432_v41 = vrot.slane %v6423_v11, 4 }
 0x341   :  { %4729 = vtanh.f32 %v1473_v63  ;;  %v1472_v63 = vadd.f32 %v1412_v57, %v7686_v38  ;;  %v1436_v12 = vrot.slane %v6423_v11, 5  ;;  %v7691_v38 = vld [vmem:[#allocation33_spill] sm:$0xff] }
 0x342   :  { %4731 = vtanh.f32 %v1477_v31 }
 0x343   :  { %4733 = vtanh.f32 %v1481_v58  ;;  %v7687_v58 = vld [vmem:[#allocation25_spill] sm:$0xff]  ;;  %v4211_v50 = vmul.f32 -1.442695, %v1472_v63 }
 0x344   :  { %4735 = vtanh.f32 %v1485_v62  ;;  %v1476_v49 = vadd.f32 %v1416_v28, %v7687_v58  ;;  %v1414_v28 = vrot.slane %v6425_v56, 6 }
 0x345   :  { %4737 = vtanh.f32 %v1489_v21 }
 0x346   :  { %v4714_v7 = vpop.eup %4713  ;;  %4739 = vtanh.f32 %v1493_v1  ;;  %v7688_v1 = vld [vmem:[#allocation27_spill] sm:$0xff] }
 0x347   :  { %v4716_v15 = vpop.eup %4715  ;;  %v1529_v10 = vadd.f32 1.0, %v4714_v7  ;;  %4741 = vtanh.f32 %v1497_v61  ;;  %v1480_v61 = vadd.f32 %v6423_v11, %v7688_v1  ;;  %v4212_v11 = vmul.f32 -1.442695, %v1476_v49 }
 0x348   :  { %v4718_v13 = vpop.eup %4717  ;;  %v1527_v25 = vadd.f32 1.0, %v4716_v15  ;;  %4743 = vtanh.f32 %v1501_v27  ;;  %v7689_v27 = vld [vmem:[#allocation29_spill] sm:$0xff] }
 0x349   :  { %v4720_v26 = vpop.eup %4719  ;;  %v1528_v55 = vadd.f32 1.0, %v4718_v13  ;;  %4745 = vrcp.f32 %v1529_v10  ;;  %v1484_v7 = vadd.f32 %v1420_v20, %v7689_v27  ;;  %v7690_v13 = vld [vmem:[#allocation31_spill] sm:$0xff]  ;;  %v1418_v20 = vrot.slane %v6425_v56, 7 }
 0x34a   :  { %v4722_v23 = vpop.eup %4721  ;;  %v1530_v31 = vadd.f32 1.0, %v4720_v26  ;;  %4747 = vrcp.f32 %v1527_v25  ;;  %v1488_v57 = vadd.f32 %v1424_v44, %v7690_v13  ;;  %v1492_v26 = vadd.f32 %v1428_v59, %v7691_v38 }
 0x34b   :  { %v4724_v62 = vpop.eup %4723  ;;  %v1531_v21 = vadd.f32 1.0, %v4722_v23  ;;  %4749 = vrcp.f32 %v1528_v55  ;;  %v1422_v38 = vrot.slane %v6425_v56, 1 }
 0x34c   :  { %v4726_v15 = vpop.eup %4725  ;;  %v1532_v10 = vadd.f32 1.0, %v4724_v62  ;;  %4751 = vrcp.f32 %v1530_v31  ;;  %v7692_v31 = vld [vmem:[#allocation35_spill] sm:$0xff]  ;;  %v4213_v62 = vmul.f32 -1.442695, %v1480_v61  ;;  %v4215_v49 = vmul.f32 -1.442695, %v1488_v57 }
 0x34d   :  { %v4728_v25 = vpop.eup %4727  ;;  %v1533_v60 = vadd.f32 1.0, %v4726_v15  ;;  %4753 = vrcp.f32 %v1531_v21  ;;  %v1496_v44 = vadd.f32 %v1432_v41, %v7692_v31  ;;  %v7693_v21 = vld [vmem:[#allocation37_spill] sm:$0xff]  ;;  %v4214_v15 = vmul.f32 -1.442695, %v1484_v7 }
 0x34e   :  { %v6457_v23 = vpop.eup %4729  ;;  %v1534_v55 = vadd.f32 1.0, %v4728_v25  ;;  %4755 = vrcp.f32 %v1532_v10  ;;  %v1500_v63 = vadd.f32 %v1436_v12, %v7693_v21  ;;  %v1426_v10 = vrot.slane %v6425_v56, 2  ;;  %v7694_v25 = vld [vmem:[#allocation17_spill] sm:$0xff] }
 0x34f   :  { %v6460_v27 = vpop.eup %4731  ;;  %4757 = vrcp.f32 %v1533_v60  ;;  %v1474_v1 = vadd.f32 %v1414_v28, %v7694_v25  ;;  %v4216_v41 = vmul.f32 -1.442695, %v1492_v26  ;;  %v1430_v61 = vrot.slane %v6425_v56, 3  ;;  %v7697_v26 = vld [vmem:[#allocation30_spill] sm:$0xff] }
 0x350   :  { %v6463_v59 = vpop.eup %4733  ;;  %4759 = vrcp.f32 %v1534_v55  ;;  %v7695_v55 = vld [vmem:[#allocation26_spill] sm:$0xff]  ;;  %v4217_v7 = vmul.f32 -1.442695, %v1496_v44  ;;  %v1434_v21 = vrot.slane %v6425_v56, 4  ;;  %v4218_v28 = vmul.f32 -1.442695, %v1500_v63 }
 0x351   :  { %v6467_v13 = vpop.eup %4735  ;;  %4761 = vpow2.f32 %v4211_v50  ;;  %v1478_v31 = vadd.f32 %v1418_v20, %v7695_v55  ;;  %v7696_v50 = vld [vmem:[#allocation28_spill] sm:$0xff]  ;;  %v1486_v25 = vadd.f32 %v1422_v38, %v7697_v26  ;;  %v1494_v29 = vadd.f32 %v1430_v61, %v7699_v48  ;;  %v7701_v38 = vld [vmem:[#allocation38_spill] sm:$0xff] }
 0x352   :  { %v6471_v60 = vpop.eup %4737  ;;  %4763 = vpow2.f32 %v4212_v11  ;;  %v1482_v57 = vadd.f32 %v6425_v56, %v7696_v50  ;;  %v1438_v11 = vrot.slane %v6425_v56, 5  ;;  %v7698_v20 = vld [vmem:[#allocation32_spill] sm:$0xff] }
 0x353   :  { %v6475_v12 = vpop.eup %4739  ;;  %4765 = vpow2.f32 %v4213_v62  ;;  %v1490_v55 = vadd.f32 %v1426_v10, %v7698_v20  ;;  %v4219_v62 = vmul.f32 -1.442695, %v1474_v1  ;;  %v4220_v50 = vmul.f32 -1.442695, %v1478_v31  ;;  %v7700_v63 = vld [vmem:[#allocation36_spill] sm:$0xff] }
 0x354   :  { %v6480_v58 = vpop.eup %4741  ;;  %4767 = vpow2.f32 %v4214_v15  ;;  %v1498_v15 = vadd.f32 %v1434_v21, %v7700_v63  ;;  %v4221_v56 = vmul.f32 -1.442695, %v1482_v57  ;;  %v4222_v26 = vmul.f32 -1.442695, %v1486_v25 }
 0x355   :  { %v6484_v14 = vpop.eup %4743  ;;  %4769 = vpow2.f32 %v4215_v49  ;;  %v1502_v49 = vadd.f32 %v1438_v11, %v7701_v38  ;;  %v4223_v1 = vmul.f32 -1.442695, %v1490_v55  ;;  %v4224_v31 = vmul.f32 -1.442695, %v1494_v29 }
 0x356   :  { %v6487_v44 = vpop.eup %4745  ;;  %4771 = vpow2.f32 %v4216_v41 }
 0x357   :  { %v6490_v51 = vpop.eup %4747  ;;  %4773 = vpow2.f32 %v4217_v7  ;;  %v4225_v7 = vmul.f32 -1.442695, %v1498_v15  ;;  %v4226_v57 = vmul.f32 -1.442695, %v1502_v49 }
 0x358   :  { %v6493_v47 = vpop.eup %4749  ;;  %4775 = vpow2.f32 %v4218_v28 }
 0x359   :  { %v6496_v10 = vpop.eup %4751  ;;  %4777 = vpow2.f32 %v4219_v62 }
 0x35a   :  { %v6498_v41 = vpop.eup %4753  ;;  %4779 = vpow2.f32 %v4220_v50 }
 0x35b   :  { %v6500_v61 = vpop.eup %4755  ;;  %4781 = vpow2.f32 %v4221_v56 }
 0x35c   :  { %v6502_v21 = vpop.eup %4757  ;;  %4783 = vpow2.f32 %v4222_v26 }
 0x35d   :  { %v6504_v28 = vpop.eup %4759  ;;  %4785 = vpow2.f32 %v4223_v1 }
 0x35e   :  { %v4762_v25 = vpop.eup %4761  ;;  %4787 = vpow2.f32 %v4224_v31 }
 0x35f   :  { %v4764_v11 = vpop.eup %4763  ;;  %v1575_v62 = vadd.f32 1.0, %v4762_v25  ;;  %4789 = vpow2.f32 %v4225_v7 }
 0x360   :  { %v4766_v55 = vpop.eup %4765  ;;  %v1576_v38 = vadd.f32 1.0, %v4764_v11  ;;  %4791 = vpow2.f32 %v4226_v57 }
 0x361   :  { %v4768_v29 = vpop.eup %4767  ;;  %v1577_v50 = vadd.f32 1.0, %v4766_v55  ;;  %4793 = vrcp.f32 %v1575_v62 }
 0x362   :  { %v4770_v56 = vpop.eup %4769  ;;  %v1578_v15 = vadd.f32 1.0, %v4768_v29  ;;  %4795 = vrcp.f32 %v1576_v38 }
 0x363   :  { %v4772_v63 = vpop.eup %4771  ;;  %v1579_v26 = vadd.f32 1.0, %v4770_v56  ;;  %4797 = vrcp.f32 %v1577_v50 }
 0x364   :  { %v4774_v49 = vpop.eup %4773  ;;  %v1580_v48 = vadd.f32 1.0, %v4772_v63  ;;  %4799 = vrcp.f32 %v1578_v15  ;;  %v1663_v15 = vrot.slane %v6323_v45, 7  ;;  %v1669_v45 = vrot.slane %v6349_v9, 7 }
 0x365   :  { %v4776_v1 = vpop.eup %4775  ;;  %v1581_v31 = vadd.f32 1.0, %v4774_v49  ;;  %4801 = vrcp.f32 %v1579_v26  ;;  %v1664_v26 = vrot.slane %v6327_v42, 7  ;;  %v1687_v42 = vmul.f32 %v6490_v51, %v6457_v23 }
 0x366   :  { %v4778_v25 = vpop.eup %4777  ;;  %v1582_v7 = vadd.f32 1.0, %v4776_v1  ;;  %4803 = vrcp.f32 %v1580_v48  ;;  %v1666_v1 = vrot.slane %v6336_v53, 7 }
 0x367   :  { %v4780_v11 = vpop.eup %4779  ;;  %4805 = vrcp.f32 %v1581_v31  ;;  %v1631_v57 = vadd.f32 1.0, %v4778_v25  ;;  %v1665_v31 = vrot.slane %v6331_v36, 7  ;;  %v1670_v36 = vrot.slane %v6352_v17, 7 }
 0x368   :  { %v4782_v55 = vpop.eup %4781  ;;  %4807 = vrcp.f32 %v1582_v7  ;;  %v1632_v62 = vadd.f32 1.0, %v4780_v11  ;;  %v1667_v11 = vrot.slane %v6341_v24, 7 }
 0x369   :  { %v4784_v29 = vpop.eup %4783  ;;  %v1633_v38 = vadd.f32 1.0, %v4782_v55  ;;  %4809 = vrcp.f32 %v1631_v57 }
 0x36a   :  { %v4786_v20 = vpop.eup %4785  ;;  %v1634_v56 = vadd.f32 1.0, %v4784_v29  ;;  %4811 = vrcp.f32 %v1632_v62  ;;  %v1688_v29 = vmul.f32 %v6493_v47, %v6460_v27  ;;  %v1691_v47 = vmul.f32 %v6498_v41, %v6471_v60 }
 0x36b   :  { %v4788_v50 = vpop.eup %4787  ;;  %v1635_v0 = vadd.f32 1.0, %v4786_v20  ;;  %4813 = vrcp.f32 %v1633_v38  ;;  %v1668_v20 = vrot.slane %v6346_v40, 7  ;;  %v1689_v40 = vmul.f32 %v6487_v44, %v6463_v59 }
 0x36c   :  { %v4790_v63 = vpop.eup %4789  ;;  %v1636_v49 = vadd.f32 1.0, %v4788_v50  ;;  %4815 = vrcp.f32 %v1634_v56 }
 0x36d   :  { %v4792_v48 = vpop.eup %4791  ;;  %v1637_v25 = vadd.f32 1.0, %v4790_v63  ;;  %4817 = vrcp.f32 %v1635_v0  ;;  %v1690_v0 = vmul.f32 %v6496_v10, %v6467_v13 }
 0x36e   :  { %v4794_v7 = vpop.eup %4793  ;;  %v1638_v57 = vadd.f32 1.0, %v4792_v48  ;;  %4819 = vrcp.f32 %v1636_v49  ;;  %v1693_v49 = vmul.f32 %v6502_v21, %v6480_v58  ;;  %v1694_v48 = vmul.f32 %v6504_v28, %v6484_v14 }
 0x36f   :  { %v4796_v55 = vpop.eup %4795  ;;  %v1679_v62 = vmul.f32 %v4794_v7, %v1663_v15  ;;  %4821 = vrcp.f32 %v1637_v25  ;;  %v1692_v15 = vmul.f32 %v6500_v61, %v6475_v12 }
 0x370   :  { %v4798_v53 = vpop.eup %4797  ;;  %v1680_v38 = vmul.f32 %v4796_v55, %v1664_v26  ;;  %4823 = vrcp.f32 %v1638_v57 }
 0x371   :  { %v4800_v24 = vpop.eup %4799  ;;  %v1681_v56 = vmul.f32 %v4798_v53, %v1665_v31  ;;  %v6520_v50 = vadd.f32 %v1687_v42, %v1679_v62 }
 0x372   :  { %v4802_v9 = vpop.eup %4801  ;;  %v6524_v51 = vadd.f32 %v1688_v29, %v1680_v38  ;;  %v1682_v17 = vmul.f32 %v4800_v24, %v1666_v1 }
 0x373   :  { %v4804_v23 = vpop.eup %4803  ;;  %v1683_v27 = vmul.f32 %v4802_v9, %v1667_v11  ;;  %v6528_v63 = vadd.f32 %v1689_v40, %v1681_v56  ;;  %4825 = vtanh.f32 %v6520_v50 }
 0x374   :  { %v4806_v59 = vpop.eup %4805  ;;  %v1684_v44 = vmul.f32 %v4804_v23, %v1668_v20  ;;  %v6533_v26 = vadd.f32 %v1690_v0, %v1682_v17  ;;  %4827 = vtanh.f32 %v6524_v51 }
 0x375   :  { %v4808_v13 = vpop.eup %4807  ;;  %v1685_v10 = vmul.f32 %v4806_v59, %v1669_v45  ;;  %v6538_v60 = vadd.f32 %v1691_v47, %v1683_v27  ;;  %4829 = vtanh.f32 %v6528_v63 }
 0x376   :  { %v1686_v41 = vmul.f32 %v4808_v13, %v1670_v36  ;;  %v6543_v1 = vadd.f32 %v1692_v15, %v1684_v44  ;;  %4831 = vtanh.f32 %v6533_v26  ;;  %v4810_v61 = vpop.eup %4809 }
 0x377   :  { %v6546_v12 = vadd.f32 %v1693_v49, %v1685_v10  ;;  %4833 = vtanh.f32 %v6538_v60  ;;  %v4812_v58 = vpop.eup %4811 }
 0x378   :  { %v6549_v31 = vadd.f32 %v1694_v48, %v1686_v41  ;;  %4835 = vtanh.f32 %v6543_v1  ;;  %v4814_v21 = vpop.eup %4813 }
 0x379   :  { %4837 = vtanh.f32 %v6546_v12  ;;  %v4816_v14 = vpop.eup %4815 }
 0x37a   :  { %4839 = vtanh.f32 %v6549_v31  ;;  %v4818_v28 = vpop.eup %4817 }
 0x37b   :  { %v4820_v25 = vpop.eup %4819 }
 0x37c   :  { %v4822_v7 = vpop.eup %4821 }
 0x37d   :  { %v4824_v11 = vpop.eup %4823 }
 0x380   :  { %v4826_v20 = vpop.eup %4825 }
 0x381   :  { %v4828_v57 = vpop.eup %4827  ;;  %v1711_v55 = vmul.f32 %v4826_v20, %v4810_v61 }
 0x382   :  { %v4830_v45 = vpop.eup %4829  ;;  %v1712_v42 = vmul.f32 %v4828_v57, %v4812_v58 }
 0x383   :  { %v4832_v62 = vpop.eup %4831  ;;  %v1713_v53 = vmul.f32 %v4830_v45, %v4814_v21  ;;  %v1719_v36 = vpack.c.bf16 %v1711_v55, %v1711_v55 }
 0x384   :  { %v4834_v29 = vpop.eup %4833  ;;  %v1714_v38 = vmul.f32 %v4832_v62, %v4816_v14  ;;  %v1720_v24 = vpack.c.bf16 %v1712_v42, %v1712_v42 }
 0x385   :  { %v4836_v40 = vpop.eup %4835  ;;  %v1715_v56 = vmul.f32 %v4834_v29, %v4818_v28  ;;  %v1721_v9 = vpack.c.bf16 %v1713_v53, %v1713_v53  ;;  %v1735_v0 = vunpack.c.l.b16 %v1719_v36 }
 0x386   :  { %v4838_v17 = vpop.eup %4837  ;;  %v1716_v23 = vmul.f32 %v4836_v40, %v4820_v25  ;;  %v1722_v47 = vpack.c.bf16 %v1714_v38, %v1714_v38  ;;  %v1736_v27 = vunpack.c.l.b16 %v1720_v24 }
 0x387   :  { %v4840_v59 = vpop.eup %4839  ;;  %v1717_v44 = vmul.f32 %v4838_v17, %v4822_v7  ;;  %v1723_v15 = vpack.c.bf16 %v1715_v56, %v1715_v56  ;;  %v1743_v13 = vrot.slane %v1735_v0, 2  ;;  %v1737_v58 = vunpack.c.l.b16 %v1721_v9  ;;  %v6561_v56 = vld [vmem:[#allocation2 + $0xe0] ss:$16 sps:$4 sm:$0xff]   ;;  %v6564_v9 = vld [vmem:[#allocation2 + $0xe8] ss:$16 sps:$4 sm:$0xff]  }
 0x388   :  { %v1718_v10 = vmul.f32 %v4840_v59, %v4824_v11  ;;  %v1724_v49 = vpack.c.bf16 %v1716_v23, %v1716_v23  ;;  %v1738_v41 = vunpack.c.l.b16 %v1722_v47  ;;  %v1744_v48 = vrot.slane %v1736_v27, 1  ;;  %v6567_v0 = vld [vmem:[#allocation2 + $0xc4] ss:$16 sps:$4 sm:$0xff]   ;;  %v6570_v17 = vld [vmem:[#allocation2 + $0xcc] ss:$16 sps:$4 sm:$0xff]  }
 0x389   :  { %v1725_v61 = vpack.c.bf16 %v1717_v44, %v1717_v44  ;;  %v1739_v21 = vunpack.c.l.b16 %v1723_v15  ;;  %v6575_v23 = vld [vmem:[#allocation2 + $0xc0] ss:$16 sps:$4 sm:$0xff]   ;;  %v6578_v47 = vld [vmem:[#allocation2 + $0xc8] ss:$16 sps:$4 sm:$0xff]   ;;  %v6581_v27 = vld [vmem:[#allocation2 + $0xa4] ss:$16 sps:$4 sm:$0xff]  }
 0x38a   :  { %v1726_v14 = vpack.c.bf16 %v1718_v10, %v1718_v10  ;;  %v1740_v20 = vunpack.c.l.b16 %v1724_v49  ;;  %v1745_v28 = vsel %vm869_vm1, %v1744_v48, %v1743_v13  ;;  %v1747_v57 = vrot.slane %v1738_v41, 7  ;;  %v6584_v59 = vld [vmem:[#allocation2 + $0xac] ss:$16 sps:$4 sm:$0xff]   ;;  %v6587_v44 = vld [vmem:[#allocation2 + $0xa0] ss:$16 sps:$4 sm:$0xff]  }
 0x38b   :  { %v1741_v55 = vunpack.c.l.b16 %v1725_v61  ;;  %v1746_v25 = vsel %vm872_vm2, %v1737_v58, %v1745_v28  ;;  %v1749_v45 = vrot.slane %v1739_v21, 6  ;;  %v6590_v15 = vld [vmem:[#allocation2 + $0xa8] ss:$16 sps:$4 sm:$0xff]   ;;  %v6593_v13 = vld [vmem:[#allocation2 + $0x84] ss:$16 sps:$4 sm:$0xff]  }
 0x38c   :  { %v1742_v42 = vunpack.c.l.b16 %v1726_v14  ;;  %v1748_v7 = vsel %vm875_vm3, %v1747_v57, %v1746_v25  ;;  %v1751_v62 = vrot.slane %v1740_v20, 5  ;;  %v6596_v10 = vld [vmem:[#allocation2 + $0x8c] ss:$16 sps:$4 sm:$0xff]   ;;  %v6599_v49 = vld [vmem:[#allocation2 + $0x80] ss:$16 sps:$4 sm:$0xff]  }
 0x38d   :  { %v1750_v11 = vsel %vm878_vm4, %v1749_v45, %v1748_v7  ;;  %v1753_v53 = vrot.slane %v1741_v55, 4  ;;  %v6602_v41 = vld [vmem:[#allocation2 + $0x88] ss:$16 sps:$4 sm:$0xff]   ;;  %v6605_v48 = vld [vmem:[#allocation2 + $0x64] ss:$16 sps:$4 sm:$0xff]  }
 0x38e   :  { %v1752_v36 = vsel %vm881_vm5, %v1751_v62, %v1750_v11  ;;  %v1755_v29 = vrot.slane %v1742_v42, 3  ;;  %v6608_v61 = vld [vmem:[#allocation2 + $0x6c] ss:$16 sps:$4 sm:$0xff]   ;;  %v6611_v58 = vld [vmem:[#allocation2 + $0x60] ss:$16 sps:$4 sm:$0xff]  }
 0x38f   :  { %v1754_v38 = vsel %vm884_vm6, %v1753_v53, %v1752_v36  ;;  %v6614_v21 = vld [vmem:[#allocation2 + $0x68] ss:$16 sps:$4 sm:$0xff]  }
 0x390   :  { %v1756_v24 = vsel %vm887_vm7, %v1755_v29, %v1754_v38 }
 0x391   :  { %v1757_v40 = vpack.c.b16 %v1756_v24, %v1756_v24 }
 0x393   :  { %1792 = vmatmul.mubr.bf16.vlgmr.msra.gmra.mxu0 %v1757_v40  ;;  %1833 = vmatmul.mubr.bf16.vlgmr.msra.gmra.mxu1 %v1757_v40 }
 0x394   :  { %2194 = vmatpush1.bf16.msra.mxu0 %v6561_v56  ;;  %2235 = vmatpush1.bf16.msra.mxu1 %v6564_v9 }
 0x395   :  { %2195 = vmatprep.subr.bf16.mxu0 %v6567_v0  ;;  %2236 = vmatprep.subr.bf16.mxu1 %v6570_v17 }
 0x396   :  { %2225 = vmatprep.mubr.bf16.mxu0 %v7643_v5  ;;  %2266 = vmatprep.mubr.bf16.mxu1 %v7643_v5 }
 0x398   :  { %2196 = vmatpush1.bf16.msra.mxu0 %v6575_v23  ;;  %2237 = vmatpush1.bf16.msra.mxu1 %v6578_v47 }
 0x399   :  { %2197 = vmatprep.subr.bf16.mxu0 %v6581_v27  ;;  %2238 = vmatprep.subr.bf16.mxu1 %v6584_v59 }
 0x39c   :  { %2198 = vmatpush1.bf16.msra.mxu0 %v6587_v44  ;;  %2239 = vmatpush1.bf16.msra.mxu1 %v6590_v15 }
 0x39d   :  { %2199 = vmatprep.subr.bf16.mxu0 %v6593_v13  ;;  %2240 = vmatprep.subr.bf16.mxu1 %v6596_v10 }
 0x3a0   :  { %2200 = vmatpush1.bf16.msra.mxu0 %v6599_v49  ;;  %2241 = vmatpush1.bf16.msra.mxu1 %v6602_v41 }
 0x3a1   :  { %2201 = vmatprep.subr.bf16.mxu0 %v6605_v48  ;;  %2242 = vmatprep.subr.bf16.mxu1 %v6608_v61 }
 0x3a4   :  { %2202 = vmatpush1.bf16.msra.mxu0 %v6611_v58  ;;  %2243 = vmatpush1.bf16.msra.mxu1 %v6614_v21 }
 0x3a5   :  { %2203 = vmatprep.subr.bf16.mxu0 %v6384_v22  ;;  %2244 = vmatprep.subr.bf16.mxu1 %v6387_v19  ;;  %v6629_v22 = vld [vmem:[#allocation2 + $0xe4] ss:$16 sps:$4 sm:$0xff]   ;;  %v6632_v19 = vld [vmem:[#allocation2 + $0xec] ss:$16 sps:$4 sm:$0xff]  }
 0x3a8   :  { %2204 = vmatpush1.bf16.msra.mxu0 %v6390_v18  ;;  %2245 = vmatpush1.bf16.msra.mxu1 %v6393_v8 }
 0x3a9   :  { %2205 = vmatprep.subr.bf16.mxu0 %v6396_v16  ;;  %2246 = vmatprep.subr.bf16.mxu1 %v6399_v46 }
 0x3ac   :  { %2206 = vmatpush1.bf16.msra.mxu0 %v6402_v6  ;;  %2247 = vmatpush1.bf16.msra.mxu1 %v6405_v2 }
 0x3ad   :  { %2207 = vmatprep.subr.bf16.mxu0 %v6408_v35  ;;  %2248 = vmatprep.subr.bf16.mxu1 %v6411_v52 }
 0x3b0   :  { %2208 = vmatpush1.bf16.msra.mxu0 %v6414_v32  ;;  %2249 = vmatpush1.bf16.msra.mxu1 %v6417_v3 }
 0x3b1   :  { %2627 = vmatprep.subr.bf16.mxu0 %v6629_v22  ;;  %2668 = vmatprep.subr.bf16.mxu1 %v6632_v19 }
 0x453   :  { %v1793_v18 = vpop.f32.mrf.mxu0  ;;  %v1834_v8 = vpop.f32.mrf.mxu1 }
 0x454   :  { %v1845_v16 = vrot.slane %v1793_v18, 5  ;;  %v1849_v46 = vrot.slane %v1793_v18, 6  ;;  %v1853_v6 = vrot.slane %v1793_v18, 7  ;;  %v1857_v2 = vrot.slane %v1793_v18, 1 }
 0x455   :  { %v1861_v35 = vrot.slane %v1793_v18, 2  ;;  %v1865_v52 = vrot.slane %v1793_v18, 3  ;;  %v1869_v14 = vrot.slane %v1793_v18, 4  ;;  %v1917_v32 = vadd.f32 %v1793_v18, %v7683_v4  ;;  %v6636_v3 = vpop.f32.mrf.mxu0  ;;  %v6638_v20 = vpop.f32.mrf.mxu1  ;;  %v7723_v4 = vld [vmem:[#allocation34_spill] sm:$0xff] }
 0x456   :  { %v1905_v28 = vadd.f32 %v1845_v16, %v7681_v54  ;;  %v1909_v57 = vadd.f32 %v1849_v46, %v7682_v37  ;;  %v1913_v55 = vadd.f32 %v1853_v6, %v7659_v34  ;;  %v1921_v25 = vadd.f32 %v1857_v2, %v5906_v33 }
 0x457   :  { %v1925_v45 = vadd.f32 %v1861_v35, %v7660_v30  ;;  %v1929_v42 = vadd.f32 %v1865_v52, %v5910_v39  ;;  %v4230_v7 = vmul.f32 -1.442695, %v1917_v32  ;;  %v1797_v62 = vpop.f32.mrf.mxu0  ;;  %v1838_v11 = vpop.f32.mrf.mxu1  ;;  %v1933_v53 = vadd.f32 %v1869_v14, %v5912_v43 }
 0x458   :  { %v4227_v36 = vmul.f32 -1.442695, %v1905_v28  ;;  %v4228_v29 = vmul.f32 -1.442695, %v1909_v57  ;;  %v4229_v38 = vmul.f32 -1.442695, %v1913_v55 }
 0x459   :  { %4841 = vpow2.f32 %v4230_v7  ;;  %v4231_v24 = vmul.f32 -1.442695, %v1921_v25  ;;  %v1798_v40 = vpop.f32.mrf.mxu0  ;;  %v1839_v18 = vpop.f32.mrf.mxu1  ;;  %v4232_v16 = vmul.f32 -1.442695, %v1925_v45  ;;  %v1847_v46 = vrot.slane %v1834_v8, 5  ;;  %v7702_v62 = vld [vmem:[#allocation15_spill] sm:$0xff] }
 0x45a   :  { %4843 = vpow2.f32 %v4227_v36  ;;  %v1851_v6 = vrot.slane %v1834_v8, 6  ;;  %v4233_v2 = vmul.f32 -1.442695, %v1929_v42  ;;  %v1855_v35 = vrot.slane %v1834_v8, 7  ;;  %v7703_v57 = vld [vmem:[#allocation18_spill] sm:$0xff]  ;;  %v7704_v7 = vld [vmem:[#allocation19_spill] sm:$0xff] }
 0x45b   :  { %4845 = vpow2.f32 %v4228_v29  ;;  %v4234_v52 = vmul.f32 -1.442695, %v1933_v53  ;;  %v1859_v32 = vrot.slane %v1834_v8, 1  ;;  %v1907_v14 = vadd.f32 %v1847_v46, %v7702_v62  ;;  %v7705_v36 = vld [vmem:[#allocation20_spill] sm:$0xff]  ;;  %v7706_v42 = vld [vmem:[#allocation21_spill] sm:$0xff]  ;;  %v7707_v53 = vld [vmem:[#allocation22_spill] sm:$0xff] }
 0x45c   :  { %4847 = vpow2.f32 %v4229_v38  ;;  %v1863_v28 = vrot.slane %v1834_v8, 2  ;;  %v1911_v55 = vadd.f32 %v1851_v6, %v7703_v57  ;;  %v1867_v25 = vrot.slane %v1834_v8, 3  ;;  %v7714_v62 = vld [vmem:[#allocation31_spill] sm:$0xff] }
 0x45d   :  { %4849 = vpow2.f32 %v4231_v24  ;;  %v1915_v11 = vadd.f32 %v1855_v35, %v7704_v7  ;;  %v1871_v45 = vrot.slane %v1834_v8, 4  ;;  %v1919_v29 = vadd.f32 %v1834_v8, %v7705_v36  ;;  %v7708_v24 = vld [vmem:[#allocation23_spill] sm:$0xff]  ;;  %v7713_v7 = vld [vmem:[#allocation29_spill] sm:$0xff] }
 0x45e   :  { %4851 = vpow2.f32 %v4232_v16  ;;  %v1923_v40 = vadd.f32 %v1859_v32, %v7706_v42  ;;  %v1927_v38 = vadd.f32 %v1863_v28, %v7707_v53  ;;  %v1931_v18 = vadd.f32 %v1867_v25, %v7708_v24  ;;  %v7709_v16 = vld [vmem:[#allocation24_spill] sm:$0xff]  ;;  %v7712_v42 = vld [vmem:[#allocation27_spill] sm:$0xff] }
 0x45f   :  { %4853 = vpow2.f32 %v4233_v2  ;;  %v1935_v46 = vadd.f32 %v1871_v45, %v7709_v16  ;;  %v1846_v6 = vrot.slane %v6636_v3, 5  ;;  %v1850_v35 = vrot.slane %v6636_v3, 6 }
 0x460   :  { %4855 = vpow2.f32 %v4234_v52  ;;  %v1854_v32 = vrot.slane %v6636_v3, 7  ;;  %v1862_v25 = vrot.slane %v6636_v3, 2 }
 0x461   :  { %4857 = vtanh.f32 %v1907_v14 }
 0x462   :  { %4859 = vtanh.f32 %v1911_v55  ;;  %v1858_v55 = vrot.slane %v6636_v3, 1  ;;  %v1914_v36 = vadd.f32 %v1854_v32, %v7712_v42 }
 0x463   :  { %4861 = vtanh.f32 %v1915_v11 }
 0x464   :  { %4863 = vtanh.f32 %v1919_v29  ;;  %v1866_v29 = vrot.slane %v6636_v3, 3 }
 0x465   :  { %4865 = vtanh.f32 %v1923_v40  ;;  %v7710_v40 = vld [vmem:[#allocation16_spill] sm:$0xff] }
 0x466   :  { %v4842_v2 = vpop.eup %4841  ;;  %4867 = vtanh.f32 %v1927_v38  ;;  %v1906_v38 = vadd.f32 %v1846_v6, %v7710_v40  ;;  %v1922_v6 = vadd.f32 %v1858_v55, %v7714_v62  ;;  %v7715_v40 = vld [vmem:[#allocation33_spill] sm:$0xff] }
 0x467   :  { %v4844_v8 = vpop.eup %4843  ;;  %v1964_v52 = vadd.f32 1.0, %v4842_v2  ;;  %4869 = vtanh.f32 %v1931_v18  ;;  %v1870_v18 = vrot.slane %v6636_v3, 4  ;;  %v7711_v2 = vld [vmem:[#allocation25_spill] sm:$0xff] }
 0x468   :  { %v4846_v14 = vpop.eup %4845  ;;  %v1961_v28 = vadd.f32 1.0, %v4844_v8  ;;  %4871 = vtanh.f32 %v1935_v46  ;;  %v1910_v53 = vadd.f32 %v1850_v35, %v7711_v2  ;;  %v4235_v39 = vmul.f32 -1.442695, %v1906_v38  ;;  %v7717_v38 = vld [vmem:[#allocation37_spill] sm:$0xff] }
 0x469   :  { %v4848_v11 = vpop.eup %4847  ;;  %v1962_v45 = vadd.f32 1.0, %v4846_v14  ;;  %4873 = vrcp.f32 %v1964_v52  ;;  %v1918_v14 = vadd.f32 %v6636_v3, %v7713_v7  ;;  %v1848_v35 = vrot.slane %v6638_v20, 5 }
 0x46a   :  { %v4850_v16 = vpop.eup %4849  ;;  %v1963_v24 = vadd.f32 1.0, %v4848_v11  ;;  %4875 = vrcp.f32 %v1961_v28  ;;  %v1926_v11 = vadd.f32 %v1862_v25, %v7715_v40  ;;  %v4236_v32 = vmul.f32 -1.442695, %v1910_v53 }
 0x46b   :  { %v4852_v8 = vpop.eup %4851  ;;  %v1965_v46 = vadd.f32 1.0, %v4850_v16  ;;  %4877 = vrcp.f32 %v1962_v45  ;;  %v1852_v3 = vrot.slane %v6638_v20, 6  ;;  %v1856_v25 = vrot.slane %v6638_v20, 7 }
 0x46c   :  { %v4854_v52 = vpop.eup %4853  ;;  %v1966_v57 = vadd.f32 1.0, %v4852_v8  ;;  %4879 = vrcp.f32 %v1963_v24  ;;  %v7716_v24 = vld [vmem:[#allocation35_spill] sm:$0xff]  ;;  %v4237_v8 = vmul.f32 -1.442695, %v1914_v36  ;;  %v4238_v40 = vmul.f32 -1.442695, %v1918_v14 }
 0x46d   :  { %v4856_v28 = vpop.eup %4855  ;;  %v1967_v43 = vadd.f32 1.0, %v4854_v52  ;;  %4881 = vrcp.f32 %v1965_v46  ;;  %v1930_v55 = vadd.f32 %v1866_v29, %v7716_v24  ;;  %v1934_v46 = vadd.f32 %v1870_v18, %v7717_v38  ;;  %v7719_v24 = vld [vmem:[#allocation26_spill] sm:$0xff] }
 0x46e   :  { %v6670_v16 = vpop.eup %4857  ;;  %v1968_v45 = vadd.f32 1.0, %v4856_v28  ;;  %4883 = vrcp.f32 %v1966_v57  ;;  %v4239_v57 = vmul.f32 -1.442695, %v1922_v6  ;;  %v1860_v53 = vrot.slane %v6638_v20, 1  ;;  %v7718_v28 = vld [vmem:[#allocation17_spill] sm:$0xff] }
 0x46f   :  { %v6673_v7 = vpop.eup %4859  ;;  %4885 = vrcp.f32 %v1967_v43  ;;  %v1908_v42 = vadd.f32 %v1848_v35, %v7718_v28  ;;  %v4240_v36 = vmul.f32 -1.442695, %v1926_v11  ;;  %v1864_v29 = vrot.slane %v6638_v20, 2 }
 0x470   :  { %v6677_v52 = vpop.eup %4861  ;;  %4887 = vrcp.f32 %v1968_v45  ;;  %v1912_v2 = vadd.f32 %v1852_v3, %v7719_v24  ;;  %v4241_v18 = vmul.f32 -1.442695, %v1930_v55  ;;  %v1868_v14 = vrot.slane %v6638_v20, 3  ;;  %v7722_v3 = vld [vmem:[#allocation32_spill] sm:$0xff] }
 0x471   :  { %v6680_v62 = vpop.eup %4863  ;;  %4889 = vpow2.f32 %v4235_v39  ;;  %v7720_v39 = vld [vmem:[#allocation28_spill] sm:$0xff]  ;;  %v4242_v35 = vmul.f32 -1.442695, %v1934_v46  ;;  %v1872_v28 = vrot.slane %v6638_v20, 4  ;;  %v1924_v24 = vadd.f32 %v1860_v53, %v7722_v3 }
 0x472   :  { %v6684_v43 = vpop.eup %4865  ;;  %4891 = vpow2.f32 %v4236_v32  ;;  %v1916_v6 = vadd.f32 %v1856_v25, %v7720_v39  ;;  %v7721_v32 = vld [vmem:[#allocation30_spill] sm:$0xff]  ;;  %v1928_v25 = vadd.f32 %v1864_v29, %v7723_v4  ;;  %v4244_v39 = vmul.f32 -1.442695, %v1912_v2 }
 0x473   :  { %v6688_v45 = vpop.eup %4867  ;;  %4893 = vpow2.f32 %v4237_v8  ;;  %v1920_v11 = vadd.f32 %v6638_v20, %v7721_v32  ;;  %v4243_v8 = vmul.f32 -1.442695, %v1908_v42  ;;  %v7725_v20 = vld [vmem:[#allocation38_spill] sm:$0xff]  ;;  %v4247_v42 = vmul.f32 -1.442695, %v1924_v24 }
 0x474   :  { %v6692_v38 = vpop.eup %4869  ;;  %4895 = vpow2.f32 %v4238_v40  ;;  %v7724_v40 = vld [vmem:[#allocation36_spill] sm:$0xff]  ;;  %v4245_v37 = vmul.f32 -1.442695, %v1916_v6  ;;  %v4248_v2 = vmul.f32 -1.442695, %v1928_v25 }
 0x475   :  { %v6697_v30 = vpop.eup %4871  ;;  %4897 = vpow2.f32 %v4239_v57  ;;  %v1932_v46 = vadd.f32 %v1868_v14, %v7724_v40  ;;  %v1936_v57 = vadd.f32 %v1872_v28, %v7725_v20  ;;  %v4246_v32 = vmul.f32 -1.442695, %v1920_v11 }
 0x476   :  { %v6700_v55 = vpop.eup %4873  ;;  %4899 = vpow2.f32 %v4240_v36 }
 0x477   :  { %v6703_v34 = vpop.eup %4875  ;;  %4901 = vpow2.f32 %v4241_v18  ;;  %v4249_v18 = vmul.f32 -1.442695, %v1932_v46  ;;  %v4250_v6 = vmul.f32 -1.442695, %v1936_v57 }
 0x478   :  { %v6706_v54 = vpop.eup %4877  ;;  %4903 = vpow2.f32 %v4242_v35 }
 0x479   :  { %v6709_v53 = vpop.eup %4879  ;;  %4905 = vpow2.f32 %v4243_v8 }
 0x47a   :  { %v6711_v36 = vpop.eup %4881  ;;  %4907 = vpow2.f32 %v4244_v39 }
 0x47b   :  { %v6713_v29 = vpop.eup %4883  ;;  %4909 = vpow2.f32 %v4245_v37 }
 0x47c   :  { %v6715_v14 = vpop.eup %4885  ;;  %4911 = vpow2.f32 %v4246_v32 }
 0x47d   :  { %v6717_v35 = vpop.eup %4887  ;;  %4913 = vpow2.f32 %v4247_v42 }
 0x47e   :  { %v4890_v28 = vpop.eup %4889  ;;  %4915 = vpow2.f32 %v4248_v2 }
 0x47f   :  { %v4892_v11 = vpop.eup %4891  ;;  %v2009_v8 = vadd.f32 1.0, %v4890_v28  ;;  %4917 = vpow2.f32 %v4249_v18 }
 0x480   :  { %v4894_v24 = vpop.eup %4893  ;;  %v2010_v20 = vadd.f32 1.0, %v4892_v11  ;;  %4919 = vpow2.f32 %v4250_v6 }
 0x481   :  { %v4896_v39 = vpop.eup %4895  ;;  %v2011_v25 = vadd.f32 1.0, %v4894_v24  ;;  %4921 = vrcp.f32 %v2009_v8 }
 0x482   :  { %v4898_v37 = vpop.eup %4897  ;;  %v2012_v46 = vadd.f32 1.0, %v4896_v39  ;;  %4923 = vrcp.f32 %v2010_v20 }
 0x483   :  { %v4900_v40 = vpop.eup %4899  ;;  %v2013_v32 = vadd.f32 1.0, %v4898_v37  ;;  %4925 = vrcp.f32 %v2011_v25 }
 0x484   :  { %v4902_v57 = vpop.eup %4901  ;;  %v2014_v4 = vadd.f32 1.0, %v4900_v40  ;;  %4927 = vrcp.f32 %v2012_v46  ;;  %v2097_v46 = vrot.slane %v6520_v50, 7  ;;  %v2103_v50 = vrot.slane %v6546_v12, 7 }
 0x485   :  { %v4904_v42 = vpop.eup %4903  ;;  %v2015_v2 = vadd.f32 1.0, %v4902_v57  ;;  %4929 = vrcp.f32 %v2013_v32  ;;  %v2098_v32 = vrot.slane %v6524_v51, 7  ;;  %v2121_v51 = vmul.f32 %v6703_v34, %v6670_v16 }
 0x486   :  { %v4906_v28 = vpop.eup %4905  ;;  %v2016_v18 = vadd.f32 1.0, %v4904_v42  ;;  %4931 = vrcp.f32 %v2014_v4  ;;  %v2099_v42 = vrot.slane %v6528_v63, 7 }
 0x487   :  { %v4908_v11 = vpop.eup %4907  ;;  %4933 = vrcp.f32 %v2015_v2  ;;  %v2065_v6 = vadd.f32 1.0, %v4906_v28  ;;  %v2100_v2 = vrot.slane %v6533_v26, 7  ;;  %v2104_v26 = vrot.slane %v6549_v31, 7 }
 0x488   :  { %v4910_v24 = vpop.eup %4909  ;;  %4935 = vrcp.f32 %v2016_v18  ;;  %v2066_v8 = vadd.f32 1.0, %v4908_v11  ;;  %v2101_v11 = vrot.slane %v6538_v60, 7 }
 0x489   :  { %v4912_v39 = vpop.eup %4911  ;;  %v2067_v20 = vadd.f32 1.0, %v4910_v24  ;;  %4937 = vrcp.f32 %v2065_v6 }
 0x48a   :  { %v4914_v3 = vpop.eup %4913  ;;  %v2068_v37 = vadd.f32 1.0, %v4912_v39  ;;  %4939 = vrcp.f32 %v2066_v8  ;;  %v2122_v39 = vmul.f32 %v6706_v54, %v6673_v7  ;;  %v2125_v54 = vmul.f32 %v6711_v36, %v6684_v43 }
 0x48b   :  { %v4916_v25 = vpop.eup %4915  ;;  %v2069_v33 = vadd.f32 1.0, %v4914_v3  ;;  %4941 = vrcp.f32 %v2067_v20  ;;  %v2102_v3 = vrot.slane %v6543_v1, 7  ;;  %v2123_v1 = vmul.f32 %v6709_v53, %v6677_v52 }
 0x48c   :  { %v4918_v40 = vpop.eup %4917  ;;  %v2070_v57 = vadd.f32 1.0, %v4916_v25  ;;  %4943 = vrcp.f32 %v2068_v37 }
 0x48d   :  { %v4920_v4 = vpop.eup %4919  ;;  %v2071_v28 = vadd.f32 1.0, %v4918_v40  ;;  %4945 = vrcp.f32 %v2069_v33  ;;  %v2124_v33 = vmul.f32 %v6700_v55, %v6680_v62 }
 0x48e   :  { %v4922_v18 = vpop.eup %4921  ;;  %v2072_v6 = vadd.f32 1.0, %v4920_v4  ;;  %4947 = vrcp.f32 %v2070_v57  ;;  %v2127_v57 = vmul.f32 %v6715_v14, %v6692_v38  ;;  %v2128_v4 = vmul.f32 %v6717_v35, %v6697_v30 }
 0x48f   :  { %v4924_v24 = vpop.eup %4923  ;;  %v2113_v8 = vmul.f32 %v4922_v18, %v2097_v46  ;;  %4949 = vrcp.f32 %v2071_v28  ;;  %v2126_v46 = vmul.f32 %v6713_v29, %v6688_v45 }
 0x490   :  { %v4926_v63 = vpop.eup %4925  ;;  %v2114_v20 = vmul.f32 %v4924_v24, %v2098_v32  ;;  %4951 = vrcp.f32 %v2072_v6 }
 0x491   :  { %v4928_v60 = vpop.eup %4927  ;;  %v2115_v37 = vmul.f32 %v4926_v63, %v2099_v42  ;;  %v6733_v25 = vadd.f32 %v2121_v51, %v2113_v8 }
 0x492   :  { %v4930_v12 = vpop.eup %4929  ;;  %v2116_v34 = vmul.f32 %v4928_v60, %v2100_v2  ;;  %v6737_v16 = vadd.f32 %v2122_v39, %v2114_v20 }
 0x493   :  { %v4932_v31 = vpop.eup %4931  ;;  %v2117_v7 = vmul.f32 %v4930_v12, %v2101_v11  ;;  %v6741_v40 = vadd.f32 %v2123_v1, %v2115_v37  ;;  %4953 = vtanh.f32 %v6733_v25 }
 0x494   :  { %v4934_v52 = vpop.eup %4933  ;;  %v2118_v53 = vmul.f32 %v4932_v31, %v2102_v3  ;;  %v6746_v32 = vadd.f32 %v2124_v33, %v2116_v34  ;;  %4955 = vtanh.f32 %v6737_v16 }
 0x495   :  { %v4936_v62 = vpop.eup %4935  ;;  %v2119_v55 = vmul.f32 %v4934_v52, %v2103_v50  ;;  %v6751_v43 = vadd.f32 %v2125_v54, %v2117_v7  ;;  %4957 = vtanh.f32 %v6741_v40 }
 0x496   :  { %v2120_v36 = vmul.f32 %v4936_v62, %v2104_v26  ;;  %v6756_v42 = vadd.f32 %v2126_v46, %v2118_v53  ;;  %4959 = vtanh.f32 %v6746_v32  ;;  %v4938_v29 = vpop.eup %4937 }
 0x497   :  { %v6759_v45 = vadd.f32 %v2127_v57, %v2119_v55  ;;  %4961 = vtanh.f32 %v6751_v43  ;;  %v4940_v38 = vpop.eup %4939 }
 0x498   :  { %v6762_v2 = vadd.f32 %v2128_v4, %v2120_v36  ;;  %4963 = vtanh.f32 %v6756_v42  ;;  %v4942_v14 = vpop.eup %4941 }
 0x499   :  { %4965 = vtanh.f32 %v6759_v45  ;;  %v4944_v30 = vpop.eup %4943 }
 0x49a   :  { %4967 = vtanh.f32 %v6762_v2  ;;  %v4946_v35 = vpop.eup %4945 }
 0x49b   :  { %v4948_v28 = vpop.eup %4947 }
 0x49c   :  { %v4950_v18 = vpop.eup %4949 }
 0x49d   :  { %v4952_v11 = vpop.eup %4951 }
 0x4a0   :  { %v4954_v3 = vpop.eup %4953 }
 0x4a1   :  { %v4956_v6 = vpop.eup %4955  ;;  %v2145_v24 = vmul.f32 %v4954_v3, %v4938_v29 }
 0x4a2   :  { %v4958_v50 = vpop.eup %4957  ;;  %v2146_v51 = vmul.f32 %v4956_v6, %v4940_v38 }
 0x4a3   :  { %v4960_v8 = vpop.eup %4959  ;;  %v2147_v63 = vmul.f32 %v4958_v50, %v4942_v14  ;;  %v2153_v26 = vpack.c.bf16 %v2145_v24, %v2145_v24 }
 0x4a4   :  { %v4962_v39 = vpop.eup %4961  ;;  %v2148_v20 = vmul.f32 %v4960_v8, %v4944_v30  ;;  %v2154_v60 = vpack.c.bf16 %v2146_v51, %v2146_v51 }
 0x4a5   :  { %v4964_v1 = vpop.eup %4963  ;;  %v2149_v37 = vmul.f32 %v4962_v39, %v4946_v35  ;;  %v2155_v12 = vpack.c.bf16 %v2147_v63, %v2147_v63  ;;  %v2169_v33 = vunpack.c.l.b16 %v2153_v26 }
 0x4a6   :  { %v4966_v34 = vpop.eup %4965  ;;  %v2150_v31 = vmul.f32 %v4964_v1, %v4948_v28  ;;  %v2156_v54 = vpack.c.bf16 %v2148_v20, %v2148_v20  ;;  %v2170_v7 = vunpack.c.l.b16 %v2154_v60 }
 0x4a7   :  { %v4968_v52 = vpop.eup %4967  ;;  %v2151_v53 = vmul.f32 %v4966_v34, %v4950_v18  ;;  %v2157_v46 = vpack.c.bf16 %v2149_v37, %v2149_v37  ;;  %v2171_v62 = vunpack.c.l.b16 %v2155_v12  ;;  %v2177_v55 = vrot.slane %v2169_v33, 3  ;;  %v7726_v34 = vld [vmem:[#allocation11_spill] sm:$0xff] }
 0x4a8   :  { %v2152_v57 = vmul.f32 %v4968_v52, %v4952_v11  ;;  %v2158_v36 = vpack.c.bf16 %v2150_v31, %v2150_v31  ;;  %v2178_v4 = vrot.slane %v2170_v7, 2  ;;  %v2172_v3 = vunpack.c.l.b16 %v2156_v54  ;;  %v7727_v52 = vld [vmem:[#allocation7_spill] sm:$0xff] }
 0x4a9   :  { %v2159_v29 = vpack.c.bf16 %v2151_v53, %v2151_v53  ;;  %v2173_v38 = vunpack.c.l.b16 %v2157_v46  ;;  %v2180_v14 = vrot.slane %v2171_v62, 1 }
 0x4aa   :  { %v2160_v30 = vpack.c.bf16 %v2152_v57, %v2152_v57  ;;  %v2174_v35 = vunpack.c.l.b16 %v2158_v36  ;;  %v2179_v6 = vsel %vm869_vm1, %v2178_v4, %v2177_v55  ;;  %v7730_v55 = vld [vmem:[#allocation10_spill] sm:$0xff]  ;;  %v7731_v36 = vld [vmem:[#allocation12_spill] sm:$0xff] }
 0x4ab   :  { %v2175_v24 = vunpack.c.l.b16 %v2159_v29  ;;  %v2181_v28 = vsel %vm872_vm2, %v2180_v14, %v2179_v6  ;;  %v2183_v50 = vrot.slane %v2173_v38, 7  ;;  %v7732_v29 = vld [vmem:[#allocation13_spill] sm:$0xff] }
 0x4ac   :  { %v2176_v51 = vunpack.c.l.b16 %v2160_v30  ;;  %v2182_v18 = vsel %vm875_vm3, %v2172_v3, %v2181_v28  ;;  %v2185_v8 = vrot.slane %v2174_v35, 6  ;;  %v7733_v35 = vld [vmem:[#allocation14_spill] sm:$0xff] }
 0x4ad   :  { %v2184_v11 = vsel %vm878_vm4, %v2183_v50, %v2182_v18  ;;  %v2187_v63 = vrot.slane %v2175_v24, 5 }
 0x4ae   :  { %v2186_v26 = vsel %vm881_vm5, %v2185_v8, %v2184_v11  ;;  %v2189_v39 = vrot.slane %v2176_v51, 4 }
 0x4af   :  { %v2188_v20 = vsel %vm884_vm6, %v2187_v63, %v2186_v26 }
 0x4b0   :  { %v2190_v60 = vsel %vm887_vm7, %v2189_v39, %v2188_v20 }
 0x4b1   :  { %v2191_v1 = vpack.c.b16 %v2190_v60, %v2190_v60 }
 0x4b3   :  { %2226 = vmatmul.mubr.bf16.vlgmr.msra.gmra.mxu0 %v2191_v1  ;;  %2267 = vmatmul.mubr.bf16.vlgmr.msra.gmra.mxu1 %v2191_v1 }
 0x4b4   :  { %2628 = vmatpush1.bf16.msra.mxu0 %v6561_v56  ;;  %2669 = vmatpush1.bf16.msra.mxu1 %v6564_v9  ;;  %v6794_v56 = vld [vmem:[#allocation2 + $0x44] ss:$16 sps:$4 sm:$0xff]   ;;  %v6797_v9 = vld [vmem:[#allocation2 + $0x4c] ss:$16 sps:$4 sm:$0xff]  }
 0x4b5   :  { %2629 = vmatprep.subr.bf16.mxu0 %v6567_v0  ;;  %2670 = vmatprep.subr.bf16.mxu1 %v6570_v17  ;;  %v6800_v0 = vld [vmem:[#allocation2 + $0x40] ss:$16 sps:$4 sm:$0xff]   ;;  %v6803_v17 = vld [vmem:[#allocation2 + $0x48] ss:$16 sps:$4 sm:$0xff]  }
 0x4b6   :  { %2659 = vmatprep.mubr.bf16.mxu0 %v7643_v5  ;;  %2700 = vmatprep.mubr.bf16.mxu1 %v7643_v5 }
 0x4b8   :  { %2630 = vmatpush1.bf16.msra.mxu0 %v6575_v23  ;;  %2671 = vmatpush1.bf16.msra.mxu1 %v6578_v47  ;;  %v6806_v23 = vld [vmem:[#allocation2 + $0x24] ss:$16 sps:$4 sm:$0xff]   ;;  %v6809_v47 = vld [vmem:[#allocation2 + $0x2c] ss:$16 sps:$4 sm:$0xff]  }
 0x4b9   :  { %2631 = vmatprep.subr.bf16.mxu0 %v6581_v27  ;;  %2672 = vmatprep.subr.bf16.mxu1 %v6584_v59  ;;  %v6812_v27 = vld [vmem:[#allocation2 + $0x20] ss:$16 sps:$4 sm:$0xff]   ;;  %v6815_v59 = vld [vmem:[#allocation2 + $0x28] ss:$16 sps:$4 sm:$0xff]  }
 0x4bc   :  { %2632 = vmatpush1.bf16.msra.mxu0 %v6587_v44  ;;  %2673 = vmatpush1.bf16.msra.mxu1 %v6590_v15  ;;  %v6818_v44 = vld [vmem:[#allocation2 + $0x4] ss:$16 sps:$4 sm:$0xff]   ;;  %v6821_v15 = vld [vmem:[#allocation2 + $0xc] ss:$16 sps:$4 sm:$0xff]  }
 0x4bd   :  { %2633 = vmatprep.subr.bf16.mxu0 %v6593_v13  ;;  %2674 = vmatprep.subr.bf16.mxu1 %v6596_v10  ;;  %v6824_v13 = vld [vmem:[#allocation2] ss:$16 sps:$4 sm:$0xff]   ;;  %v6827_v10 = vld [vmem:[#allocation2 + $0x8] ss:$16 sps:$4 sm:$0xff]  }
 0x4c0   :  { %2634 = vmatpush1.bf16.msra.mxu0 %v6599_v49  ;;  %2675 = vmatpush1.bf16.msra.mxu1 %v6602_v41 }
 0x4c1   :  { %2635 = vmatprep.subr.bf16.mxu0 %v6605_v48  ;;  %2676 = vmatprep.subr.bf16.mxu1 %v6608_v61 }
 0x4c4   :  { %2636 = vmatpush1.bf16.msra.mxu0 %v6611_v58  ;;  %2677 = vmatpush1.bf16.msra.mxu1 %v6614_v21 }
 0x4c5   :  { %2637 = vmatprep.subr.bf16.mxu0 %v6794_v56  ;;  %2678 = vmatprep.subr.bf16.mxu1 %v6797_v9 }
 0x4c8   :  { %2638 = vmatpush1.bf16.msra.mxu0 %v6800_v0  ;;  %2679 = vmatpush1.bf16.msra.mxu1 %v6803_v17 }
 0x4c9   :  { %2639 = vmatprep.subr.bf16.mxu0 %v6806_v23  ;;  %2680 = vmatprep.subr.bf16.mxu1 %v6809_v47 }
 0x4cc   :  { %2640 = vmatpush1.bf16.msra.mxu0 %v6812_v27  ;;  %2681 = vmatpush1.bf16.msra.mxu1 %v6815_v59 }
 0x4cd   :  { %2641 = vmatprep.subr.bf16.mxu0 %v6818_v44  ;;  %2682 = vmatprep.subr.bf16.mxu1 %v6821_v15 }
 0x4d0   :  { %2642 = vmatpush1.bf16.msra.mxu0 %v6824_v13  ;;  %2683 = vmatpush1.bf16.msra.mxu1 %v6827_v10 }
 0x4d1   :  { %3061 = vmatprep.subr.bf16.mxu0 %v6629_v22  ;;  %3102 = vmatprep.subr.bf16.mxu1 %v6632_v19  ;;  %v7728_v22 = vld [vmem:[#allocation8_spill] sm:$0xff]  ;;  %v7729_v19 = vld [vmem:[#allocation9_spill] sm:$0xff] }
 0x573   :  { %v2227_v49 = vpop.f32.mrf.mxu0  ;;  %v2268_v41 = vpop.f32.mrf.mxu1 }
 0x574   :  { %v2279_v48 = vrot.slane %v2227_v49, 4  ;;  %v2283_v61 = vrot.slane %v2227_v49, 5  ;;  %v2287_v58 = vrot.slane %v2227_v49, 6  ;;  %v2291_v21 = vrot.slane %v2227_v49, 7 }
 0x575   :  { %v2295_v37 = vrot.slane %v2227_v49, 1  ;;  %v2299_v12 = vrot.slane %v2227_v49, 2  ;;  %v2303_v33 = vrot.slane %v2227_v49, 3  ;;  %v2355_v31 = vadd.f32 %v2227_v49, %v7726_v34  ;;  %v6833_v54 = vpop.f32.mrf.mxu0  ;;  %v6835_v7 = vpop.f32.mrf.mxu1  ;;  %v7734_v49 = vld [vmem:[#allocation15_spill] sm:$0xff] }
 0x576   :  { %v2339_v53 = vadd.f32 %v2279_v48, %v7727_v52  ;;  %v2343_v46 = vadd.f32 %v2283_v61, %v7728_v22  ;;  %v2347_v62 = vadd.f32 %v2287_v58, %v7729_v19  ;;  %v2351_v57 = vadd.f32 %v2291_v21, %v7730_v55  ;;  %v7735_v58 = vld [vmem:[#allocation18_spill] sm:$0xff] }
 0x577   :  { %v2359_v4 = vadd.f32 %v2295_v37, %v7731_v36  ;;  %v2363_v38 = vadd.f32 %v2299_v12, %v7732_v29  ;;  %v4255_v14 = vmul.f32 -1.442695, %v2355_v31  ;;  %v2231_v30 = vpop.f32.mrf.mxu0  ;;  %v2272_v3 = vpop.f32.mrf.mxu1  ;;  %v2367_v6 = vadd.f32 %v2303_v33, %v7733_v35  ;;  %v7736_v12 = vld [vmem:[#allocation19_spill] sm:$0xff] }
 0x578   :  { %v4251_v24 = vmul.f32 -1.442695, %v2339_v53  ;;  %v4252_v28 = vmul.f32 -1.442695, %v2343_v46  ;;  %v4253_v50 = vmul.f32 -1.442695, %v2347_v62 }
 0x579   :  { %v4254_v51 = vmul.f32 -1.442695, %v2351_v57  ;;  %4969 = vpow2.f32 %v4255_v14  ;;  %v2232_v18 = vpop.f32.mrf.mxu0  ;;  %v2273_v8 = vpop.f32.mrf.mxu1  ;;  %v4256_v11 = vmul.f32 -1.442695, %v2359_v4  ;;  %v2281_v63 = vrot.slane %v2268_v41, 4  ;;  %v7737_v53 = vld [vmem:[#allocation20_spill] sm:$0xff] }
 0x57a   :  { %4971 = vpow2.f32 %v4251_v24  ;;  %v2285_v26 = vrot.slane %v2268_v41, 5  ;;  %v4257_v39 = vmul.f32 -1.442695, %v2363_v38  ;;  %v2289_v20 = vrot.slane %v2268_v41, 6  ;;  %v7738_v62 = vld [vmem:[#allocation21_spill] sm:$0xff]  ;;  %v7739_v4 = vld [vmem:[#allocation22_spill] sm:$0xff] }
 0x57b   :  { %4973 = vpow2.f32 %v4252_v28  ;;  %v4258_v60 = vmul.f32 -1.442695, %v2367_v6  ;;  %v2293_v1 = vrot.slane %v2268_v41, 7  ;;  %v2341_v48 = vadd.f32 %v2281_v63, %v7734_v49  ;;  %v7740_v14 = vld [vmem:[#allocation23_spill] sm:$0xff]  ;;  %v7741_v3 = vld [vmem:[#allocation24_spill] sm:$0xff] }
 0x57c   :  { %4975 = vpow2.f32 %v4253_v50  ;;  %v2297_v61 = vrot.slane %v2268_v41, 1  ;;  %v2345_v21 = vadd.f32 %v2285_v26, %v7735_v58  ;;  %v2301_v37 = vrot.slane %v2268_v41, 2 }
 0x57d   :  { %4977 = vpow2.f32 %v4254_v51  ;;  %v2349_v33 = vadd.f32 %v2289_v20, %v7736_v12  ;;  %v2305_v31 = vrot.slane %v2268_v41, 3  ;;  %v2353_v46 = vadd.f32 %v2293_v1, %v7737_v53  ;;  %v7742_v1 = vld [vmem:[#allocation16_spill] sm:$0xff] }
 0x57e   :  { %4979 = vpow2.f32 %v4256_v11  ;;  %v2357_v57 = vadd.f32 %v2268_v41, %v7738_v62  ;;  %v2361_v38 = vadd.f32 %v2297_v61, %v7739_v4  ;;  %v2365_v30 = vadd.f32 %v2301_v37, %v7740_v14  ;;  %v7755_v62 = vld [vmem:[#allocation34_spill] sm:$0xff] }
 0x57f   :  { %4981 = vpow2.f32 %v4257_v39  ;;  %v2369_v6 = vadd.f32 %v2305_v31, %v7741_v3  ;;  %v2280_v24 = vrot.slane %v6833_v54, 4  ;;  %v2284_v50 = vrot.slane %v6833_v54, 5 }
 0x580   :  { %4983 = vpow2.f32 %v4258_v60  ;;  %v2288_v41 = vrot.slane %v6833_v54, 6  ;;  %v2292_v8 = vrot.slane %v6833_v54, 7  ;;  %v2296_v26 = vrot.slane %v6833_v54, 1 }
 0x581   :  { %4985 = vtanh.f32 %v2341_v48  ;;  %v2300_v60 = vrot.slane %v6833_v54, 2  ;;  %v2340_v48 = vadd.f32 %v2280_v24, %v7742_v1  ;;  %v2304_v37 = vrot.slane %v6833_v54, 3  ;;  %v7747_v1 = vld [vmem:[#allocation33_spill] sm:$0xff] }
 0x582   :  { %4987 = vtanh.f32 %v2345_v21 }
 0x583   :  { %4989 = vtanh.f32 %v2349_v33  ;;  %v7743_v33 = vld [vmem:[#allocation25_spill] sm:$0xff]  ;;  %v4259_v14 = vmul.f32 -1.442695, %v2340_v48 }
 0x584   :  { %4991 = vtanh.f32 %v2353_v46  ;;  %v2344_v31 = vadd.f32 %v2284_v50, %v7743_v33  ;;  %v2282_v50 = vrot.slane %v6835_v7, 4  ;;  %v7749_v48 = vld [vmem:[#allocation37_spill] sm:$0xff] }
 0x585   :  { %4993 = vtanh.f32 %v2357_v57 }
 0x586   :  { %v4970_v28 = vpop.eup %4969  ;;  %4995 = vtanh.f32 %v2361_v38  ;;  %v7744_v38 = vld [vmem:[#allocation27_spill] sm:$0xff] }
 0x587   :  { %v4972_v51 = vpop.eup %4971  ;;  %v2399_v18 = vadd.f32 1.0, %v4970_v28  ;;  %4997 = vtanh.f32 %v2365_v30  ;;  %v2348_v30 = vadd.f32 %v2288_v41, %v7744_v38  ;;  %v4260_v41 = vmul.f32 -1.442695, %v2344_v31 }
 0x588   :  { %v4974_v11 = vpop.eup %4973  ;;  %v2395_v63 = vadd.f32 1.0, %v4972_v51  ;;  %4999 = vtanh.f32 %v2369_v6  ;;  %v7745_v6 = vld [vmem:[#allocation29_spill] sm:$0xff] }
 0x589   :  { %v4976_v39 = vpop.eup %4975  ;;  %v2396_v20 = vadd.f32 1.0, %v4974_v11  ;;  %5001 = vrcp.f32 %v2399_v18  ;;  %v2352_v28 = vadd.f32 %v2292_v8, %v7745_v6  ;;  %v7746_v11 = vld [vmem:[#allocation31_spill] sm:$0xff]  ;;  %v2286_v8 = vrot.slane %v6835_v7, 5  ;;  %v7750_v6 = vld [vmem:[#allocation17_spill] sm:$0xff] }
 0x58a   :  { %v4978_v61 = vpop.eup %4977  ;;  %v2397_v21 = vadd.f32 1.0, %v4976_v39  ;;  %5003 = vrcp.f32 %v2395_v63  ;;  %v2356_v24 = vadd.f32 %v6833_v54, %v7746_v11  ;;  %v2360_v39 = vadd.f32 %v2296_v26, %v7747_v1 }
 0x58b   :  { %v4980_v46 = vpop.eup %4979  ;;  %v2398_v57 = vadd.f32 1.0, %v4978_v61  ;;  %5005 = vrcp.f32 %v2396_v20  ;;  %v4261_v11 = vmul.f32 -1.442695, %v2348_v30  ;;  %v2290_v26 = vrot.slane %v6835_v7, 6 }
 0x58c   :  { %v4982_v51 = vpop.eup %4981  ;;  %v2400_v18 = vadd.f32 1.0, %v4980_v46  ;;  %5007 = vrcp.f32 %v2397_v21  ;;  %v7748_v21 = vld [vmem:[#allocation35_spill] sm:$0xff]  ;;  %v4262_v1 = vmul.f32 -1.442695, %v2352_v28  ;;  %v4263_v31 = vmul.f32 -1.442695, %v2356_v24 }
 0x58d   :  { %v4984_v63 = vpop.eup %4983  ;;  %v2401_v3 = vadd.f32 1.0, %v4982_v51  ;;  %5009 = vrcp.f32 %v2398_v57  ;;  %v2364_v54 = vadd.f32 %v2300_v60, %v7748_v21  ;;  %v2368_v57 = vadd.f32 %v2304_v37, %v7749_v48  ;;  %v7751_v21 = vld [vmem:[#allocation26_spill] sm:$0xff]  ;;  %v7752_v48 = vld [vmem:[#allocation28_spill] sm:$0xff] }
 0x58e   :  { %v6867_v61 = vpop.eup %4985  ;;  %v2402_v20 = vadd.f32 1.0, %v4984_v63  ;;  %5011 = vrcp.f32 %v2400_v18  ;;  %v2294_v63 = vrot.slane %v6835_v7, 7  ;;  %v2342_v38 = vadd.f32 %v2282_v50, %v7750_v6 }
 0x58f   :  { %v6870_v46 = vpop.eup %4987  ;;  %5013 = vrcp.f32 %v2401_v3  ;;  %v4264_v60 = vmul.f32 -1.442695, %v2360_v39  ;;  %v2298_v30 = vrot.slane %v6835_v7, 1  ;;  %v2346_v33 = vadd.f32 %v2286_v8, %v7751_v21  ;;  %v7754_v8 = vld [vmem:[#allocation32_spill] sm:$0xff] }
 0x590   :  { %v6874_v51 = vpop.eup %4989  ;;  %5015 = vrcp.f32 %v2402_v20  ;;  %v4265_v37 = vmul.f32 -1.442695, %v2364_v54  ;;  %v2302_v28 = vrot.slane %v6835_v7, 2  ;;  %v2350_v4 = vadd.f32 %v2290_v26, %v7752_v48 }
 0x591   :  { %v6878_v18 = vpop.eup %4991  ;;  %5017 = vpow2.f32 %v4259_v14  ;;  %v4266_v24 = vmul.f32 -1.442695, %v2368_v57  ;;  %v2306_v50 = vrot.slane %v6835_v7, 3  ;;  %v2358_v21 = vadd.f32 %v6835_v7, %v7754_v8 }
 0x592   :  { %v6881_v3 = vpop.eup %4993  ;;  %5019 = vpow2.f32 %v4260_v41  ;;  %v7753_v41 = vld [vmem:[#allocation30_spill] sm:$0xff]  ;;  %v2362_v26 = vadd.f32 %v2298_v30, %v7755_v62  ;;  %v4268_v48 = vmul.f32 -1.442695, %v2346_v33  ;;  %v4269_v12 = vmul.f32 -1.442695, %v2350_v4 }
 0x593   :  { %v6885_v20 = vpop.eup %4995  ;;  %5021 = vpow2.f32 %v4261_v11  ;;  %v2354_v39 = vadd.f32 %v2294_v63, %v7753_v41  ;;  %v4267_v11 = vmul.f32 -1.442695, %v2342_v38  ;;  %v4271_v38 = vmul.f32 -1.442695, %v2358_v21 }
 0x594   :  { %v6889_v14 = vpop.eup %4997  ;;  %5023 = vpow2.f32 %v4262_v1  ;;  %v7756_v1 = vld [vmem:[#allocation36_spill] sm:$0xff]  ;;  %v4272_v33 = vmul.f32 -1.442695, %v2362_v26 }
 0x595   :  { %v6893_v6 = vpop.eup %4999  ;;  %5025 = vpow2.f32 %v4263_v31  ;;  %v2366_v57 = vadd.f32 %v2302_v28, %v7756_v1  ;;  %v7757_v31 = vld [vmem:[#allocation38_spill] sm:$0xff]  ;;  %v4270_v58 = vmul.f32 -1.442695, %v2354_v39 }
 0x596   :  { %v6897_v54 = vpop.eup %5001  ;;  %5027 = vpow2.f32 %v4264_v60  ;;  %v2370_v41 = vadd.f32 %v2306_v50, %v7757_v31 }
 0x597   :  { %v6900_v53 = vpop.eup %5003  ;;  %5029 = vpow2.f32 %v4265_v37  ;;  %v4273_v37 = vmul.f32 -1.442695, %v2366_v57 }
 0x598   :  { %v6903_v63 = vpop.eup %5005  ;;  %5031 = vpow2.f32 %v4266_v24  ;;  %v4274_v4 = vmul.f32 -1.442695, %v2370_v41 }
 0x599   :  { %v6906_v7 = vpop.eup %5007  ;;  %5033 = vpow2.f32 %v4267_v11 }
 0x59a   :  { %v6908_v60 = vpop.eup %5009  ;;  %5035 = vpow2.f32 %v4268_v48 }
 0x59b   :  { %v6910_v30 = vpop.eup %5011  ;;  %5037 = vpow2.f32 %v4269_v12 }
 0x59c   :  { %v6912_v28 = vpop.eup %5013  ;;  %5039 = vpow2.f32 %v4270_v58 }
 0x59d   :  { %v6914_v24 = vpop.eup %5015  ;;  %5041 = vpow2.f32 %v4271_v38 }
 0x59e   :  { %v5018_v50 = vpop.eup %5017  ;;  %5043 = vpow2.f32 %v4272_v33 }
 0x59f   :  { %v5020_v39 = vpop.eup %5019  ;;  %v2443_v11 = vadd.f32 1.0, %v5018_v50  ;;  %5045 = vpow2.f32 %v4273_v37 }
 0x5a0   :  { %v5022_v21 = vpop.eup %5021  ;;  %v2444_v31 = vadd.f32 1.0, %v5020_v39  ;;  %5047 = vpow2.f32 %v4274_v4 }
 0x5a1   :  { %v5024_v48 = vpop.eup %5023  ;;  %v2445_v26 = vadd.f32 1.0, %v5022_v21  ;;  %5049 = vrcp.f32 %v2443_v11 }
 0x5a2   :  { %v5026_v12 = vpop.eup %5025  ;;  %v2446_v57 = vadd.f32 1.0, %v5024_v48  ;;  %5051 = vrcp.f32 %v2444_v31 }
 0x5a3   :  { %v5028_v1 = vpop.eup %5027  ;;  %v2447_v58 = vadd.f32 1.0, %v5026_v12  ;;  %5053 = vrcp.f32 %v2445_v26 }
 0x5a4   :  { %v5030_v41 = vpop.eup %5029  ;;  %v2448_v62 = vadd.f32 1.0, %v5028_v1  ;;  %5055 = vrcp.f32 %v2446_v57  ;;  %v2531_v57 = vrot.slane %v6733_v25, 7  ;;  %v2537_v25 = vrot.slane %v6759_v45, 7 }
 0x5a5   :  { %v5032_v38 = vpop.eup %5031  ;;  %v2449_v33 = vadd.f32 1.0, %v5030_v41  ;;  %5057 = vrcp.f32 %v2447_v58  ;;  %v2532_v58 = vrot.slane %v6737_v16, 7  ;;  %v2555_v16 = vmul.f32 %v6900_v53, %v6867_v61 }
 0x5a6   :  { %v5034_v50 = vpop.eup %5033  ;;  %v2450_v37 = vadd.f32 1.0, %v5032_v38  ;;  %5059 = vrcp.f32 %v2448_v62  ;;  %v2534_v38 = vrot.slane %v6746_v32, 7 }
 0x5a7   :  { %v5036_v39 = vpop.eup %5035  ;;  %5061 = vrcp.f32 %v2449_v33  ;;  %v2499_v4 = vadd.f32 1.0, %v5034_v50  ;;  %v2533_v33 = vrot.slane %v6741_v40, 7  ;;  %v2538_v40 = vrot.slane %v6762_v2, 7 }
 0x5a8   :  { %v5038_v21 = vpop.eup %5037  ;;  %5063 = vrcp.f32 %v2450_v37  ;;  %v2500_v11 = vadd.f32 1.0, %v5036_v39  ;;  %v2535_v39 = vrot.slane %v6751_v43, 7 }
 0x5a9   :  { %v5040_v48 = vpop.eup %5039  ;;  %v2501_v31 = vadd.f32 1.0, %v5038_v21  ;;  %5065 = vrcp.f32 %v2499_v4 }
 0x5aa   :  { %v5042_v8 = vpop.eup %5041  ;;  %v2502_v12 = vadd.f32 1.0, %v5040_v48  ;;  %5067 = vrcp.f32 %v2500_v11  ;;  %v2556_v48 = vmul.f32 %v6903_v63, %v6870_v46  ;;  %v2559_v46 = vmul.f32 %v6897_v54, %v6881_v3 }
 0x5ab   :  { %v5044_v26 = vpop.eup %5043  ;;  %v2503_v49 = vadd.f32 1.0, %v5042_v8  ;;  %5069 = vrcp.f32 %v2501_v31  ;;  %v2536_v8 = vrot.slane %v6756_v42, 7  ;;  %v2557_v42 = vmul.f32 %v6906_v7, %v6874_v51 }
 0x5ac   :  { %v5046_v1 = vpop.eup %5045  ;;  %v2504_v41 = vadd.f32 1.0, %v5044_v26  ;;  %5071 = vrcp.f32 %v2502_v12 }
 0x5ad   :  { %v5048_v62 = vpop.eup %5047  ;;  %v2505_v50 = vadd.f32 1.0, %v5046_v1  ;;  %5073 = vrcp.f32 %v2503_v49  ;;  %v2558_v49 = vmul.f32 %v6908_v60, %v6878_v18 }
 0x5ae   :  { %v5050_v37 = vpop.eup %5049  ;;  %v2506_v4 = vadd.f32 1.0, %v5048_v62  ;;  %5075 = vrcp.f32 %v2504_v41  ;;  %v2561_v41 = vmul.f32 %v6912_v28, %v6889_v14  ;;  %v2562_v62 = vmul.f32 %v6914_v24, %v6893_v6 }
 0x5af   :  { %v5052_v21 = vpop.eup %5051  ;;  %v2547_v11 = vmul.f32 %v5050_v37, %v2531_v57  ;;  %5077 = vrcp.f32 %v2505_v50  ;;  %v2560_v57 = vmul.f32 %v6910_v30, %v6885_v20 }
 0x5b0   :  { %v5054_v32 = vpop.eup %5053  ;;  %v2548_v31 = vmul.f32 %v5052_v21, %v2532_v58  ;;  %5079 = vrcp.f32 %v2506_v4 }
 0x5b1   :  { %v5056_v43 = vpop.eup %5055  ;;  %v2549_v12 = vmul.f32 %v5054_v32, %v2533_v33  ;;  %v6930_v26 = vadd.f32 %v2555_v16, %v2547_v11 }
 0x5b2   :  { %v5058_v45 = vpop.eup %5057  ;;  %v6934_v53 = vadd.f32 %v2556_v48, %v2548_v31  ;;  %v2550_v2 = vmul.f32 %v5056_v43, %v2534_v38 }
 0x5b3   :  { %v5060_v61 = vpop.eup %5059  ;;  %v2551_v63 = vmul.f32 %v5058_v45, %v2535_v39  ;;  %v6938_v1 = vadd.f32 %v2557_v42, %v2549_v12  ;;  %5081 = vtanh.f32 %v6930_v26 }
 0x5b4   :  { %v5062_v51 = vpop.eup %5061  ;;  %v2552_v7 = vmul.f32 %v5060_v61, %v2536_v8  ;;  %v6943_v58 = vadd.f32 %v2558_v49, %v2550_v2  ;;  %5083 = vtanh.f32 %v6934_v53 }
 0x5b5   :  { %v5064_v18 = vpop.eup %5063  ;;  %v2553_v60 = vmul.f32 %v5062_v51, %v2537_v25  ;;  %v6948_v3 = vadd.f32 %v2559_v46, %v2551_v63  ;;  %5085 = vtanh.f32 %v6938_v1 }
 0x5b6   :  { %v2554_v54 = vmul.f32 %v5064_v18, %v2538_v40  ;;  %v6953_v38 = vadd.f32 %v2560_v57, %v2552_v7  ;;  %5087 = vtanh.f32 %v6943_v58  ;;  %v5066_v30 = vpop.eup %5065 }
 0x5b7   :  { %v6956_v20 = vadd.f32 %v2561_v41, %v2553_v60  ;;  %5089 = vtanh.f32 %v6948_v3  ;;  %v5068_v14 = vpop.eup %5067 }
 0x5b8   :  { %v6959_v33 = vadd.f32 %v2562_v62, %v2554_v54  ;;  %5091 = vtanh.f32 %v6953_v38  ;;  %v5070_v28 = vpop.eup %5069 }
 0x5b9   :  { %5093 = vtanh.f32 %v6956_v20  ;;  %v5072_v6 = vpop.eup %5071 }
 0x5ba   :  { %5095 = vtanh.f32 %v6959_v33  ;;  %v5074_v24 = vpop.eup %5073 }
 0x5bb   :  { %v5076_v50 = vpop.eup %5075 }
 0x5bc   :  { %v5078_v37 = vpop.eup %5077 }
 0x5bd   :  { %v5080_v39 = vpop.eup %5079 }
 0x5c0   :  { %v5082_v8 = vpop.eup %5081 }
 0x5c1   :  { %v5084_v4 = vpop.eup %5083  ;;  %v2579_v21 = vmul.f32 %v5082_v8, %v5066_v30 }
 0x5c2   :  { %v5086_v25 = vpop.eup %5085  ;;  %v2580_v16 = vmul.f32 %v5084_v4, %v5068_v14 }
 0x5c3   :  { %v5088_v11 = vpop.eup %5087  ;;  %v2581_v32 = vmul.f32 %v5086_v25, %v5070_v28  ;;  %v2587_v40 = vpack.c.bf16 %v2579_v21, %v2579_v21 }
 0x5c4   :  { %v5090_v48 = vpop.eup %5089  ;;  %v2582_v31 = vmul.f32 %v5088_v11, %v5072_v6  ;;  %v2588_v43 = vpack.c.bf16 %v2580_v16, %v2580_v16 }
 0x5c5   :  { %v5092_v42 = vpop.eup %5091  ;;  %v2583_v12 = vmul.f32 %v5090_v48, %v5074_v24  ;;  %v2589_v45 = vpack.c.bf16 %v2581_v32, %v2581_v32  ;;  %v2603_v49 = vunpack.c.l.b16 %v2587_v40 }
 0x5c6   :  { %v5094_v2 = vpop.eup %5093  ;;  %v2584_v61 = vmul.f32 %v5092_v42, %v5076_v50  ;;  %v2590_v46 = vpack.c.bf16 %v2582_v31, %v2582_v31  ;;  %v2604_v63 = vunpack.c.l.b16 %v2588_v43 }
 0x5c7   :  { %v5096_v51 = vpop.eup %5095  ;;  %v2585_v7 = vmul.f32 %v5094_v2, %v5078_v37  ;;  %v2591_v57 = vpack.c.bf16 %v2583_v12, %v2583_v12  ;;  %v2605_v18 = vunpack.c.l.b16 %v2589_v45  ;;  %v2611_v60 = vrot.slane %v2603_v49, 4  ;;  %v6971_v12 = vld [vmem:[#allocation2 + $0xe0] ss:$16 sps:$4 sm:$0xff]   ;;  %v6974_v45 = vld [vmem:[#allocation2 + $0xe8] ss:$16 sps:$4 sm:$0xff]  }
 0x5c8   :  { %v2586_v41 = vmul.f32 %v5096_v51, %v5080_v39  ;;  %v2592_v54 = vpack.c.bf16 %v2584_v61, %v2584_v61  ;;  %v2606_v62 = vunpack.c.l.b16 %v2590_v46  ;;  %v2612_v30 = vrot.slane %v2604_v63, 3  ;;  %v6977_v49 = vld [vmem:[#allocation2 + $0xc4] ss:$16 sps:$4 sm:$0xff]   ;;  %v6980_v2 = vld [vmem:[#allocation2 + $0xcc] ss:$16 sps:$4 sm:$0xff]  }
 0x5c9   :  { %v2593_v14 = vpack.c.bf16 %v2585_v7, %v2585_v7  ;;  %v2614_v28 = vrot.slane %v2605_v18, 2  ;;  %v2607_v21 = vunpack.c.l.b16 %v2591_v57  ;;  %v6985_v61 = vld [vmem:[#allocation2 + $0xc0] ss:$16 sps:$4 sm:$0xff]   ;;  %v6988_v46 = vld [vmem:[#allocation2 + $0xc8] ss:$16 sps:$4 sm:$0xff]  }
 0x5ca   :  { %v2594_v6 = vpack.c.bf16 %v2586_v41, %v2586_v41  ;;  %v2608_v8 = vunpack.c.l.b16 %v2592_v54  ;;  %v2613_v24 = vsel %vm869_vm1, %v2612_v30, %v2611_v60  ;;  %v2616_v4 = vrot.slane %v2606_v62, 1  ;;  %v6991_v63 = vld [vmem:[#allocation2 + $0xa4] ss:$16 sps:$4 sm:$0xff]   ;;  %v6994_v51 = vld [vmem:[#allocation2 + $0xac] ss:$16 sps:$4 sm:$0xff]  }
 0x5cb   :  { %v2609_v50 = vunpack.c.l.b16 %v2593_v14  ;;  %v2615_v25 = vsel %vm872_vm2, %v2614_v28, %v2613_v24  ;;  %v6997_v7 = vld [vmem:[#allocation2 + $0xa0] ss:$16 sps:$4 sm:$0xff]   ;;  %v7000_v57 = vld [vmem:[#allocation2 + $0xa8] ss:$16 sps:$4 sm:$0xff]   ;;  %v7003_v18 = vld [vmem:[#allocation2 + $0x84] ss:$16 sps:$4 sm:$0xff]  }
 0x5cc   :  { %v2610_v16 = vunpack.c.l.b16 %v2594_v6  ;;  %v2617_v37 = vsel %vm875_vm3, %v2616_v4, %v2615_v25  ;;  %v2619_v11 = vrot.slane %v2608_v8, 7  ;;  %v7006_v60 = vld [vmem:[#allocation2 + $0x8c] ss:$16 sps:$4 sm:$0xff]   ;;  %v7009_v41 = vld [vmem:[#allocation2 + $0x80] ss:$16 sps:$4 sm:$0xff]  }
 0x5cd   :  { %v2618_v39 = vsel %vm878_vm4, %v2607_v21, %v2617_v37  ;;  %v2621_v32 = vrot.slane %v2609_v50, 6  ;;  %v7012_v54 = vld [vmem:[#allocation2 + $0x88] ss:$16 sps:$4 sm:$0xff]   ;;  %v7015_v62 = vld [vmem:[#allocation2 + $0x64] ss:$16 sps:$4 sm:$0xff]  }
 0x5ce   :  { %v2620_v40 = vsel %vm881_vm5, %v2619_v11, %v2618_v39  ;;  %v2623_v48 = vrot.slane %v2610_v16, 5  ;;  %v7018_v30 = vld [vmem:[#allocation2 + $0x6c] ss:$16 sps:$4 sm:$0xff]   ;;  %v7021_v14 = vld [vmem:[#allocation2 + $0x60] ss:$16 sps:$4 sm:$0xff]  }
 0x5cf   :  { %v2622_v31 = vsel %vm884_vm6, %v2621_v32, %v2620_v40  ;;  %v7024_v28 = vld [vmem:[#allocation2 + $0x68] ss:$16 sps:$4 sm:$0xff]  }
 0x5d0   :  { %v2624_v43 = vsel %vm887_vm7, %v2623_v48, %v2622_v31 }
 0x5d1   :  { %v2625_v42 = vpack.c.b16 %v2624_v43, %v2624_v43 }
 0x5d3   :  { %2660 = vmatmul.mubr.bf16.vlgmr.msra.gmra.mxu0 %v2625_v42  ;;  %2701 = vmatmul.mubr.bf16.vlgmr.msra.gmra.mxu1 %v2625_v42 }
 0x5d4   :  { %3062 = vmatpush1.bf16.msra.mxu0 %v6971_v12  ;;  %3103 = vmatpush1.bf16.msra.mxu1 %v6974_v45 }
 0x5d5   :  { %3063 = vmatprep.subr.bf16.mxu0 %v6977_v49  ;;  %3104 = vmatprep.subr.bf16.mxu1 %v6980_v2 }
 0x5d6   :  { %3093 = vmatprep.mubr.bf16.mxu0 %v7643_v5  ;;  %3134 = vmatprep.mubr.bf16.mxu1 %v7643_v5 }
 0x5d8   :  { %3064 = vmatpush1.bf16.msra.mxu0 %v6985_v61  ;;  %3105 = vmatpush1.bf16.msra.mxu1 %v6988_v46 }
 0x5d9   :  { %3065 = vmatprep.subr.bf16.mxu0 %v6991_v63  ;;  %3106 = vmatprep.subr.bf16.mxu1 %v6994_v51 }
 0x5dc   :  { %3066 = vmatpush1.bf16.msra.mxu0 %v6997_v7  ;;  %3107 = vmatpush1.bf16.msra.mxu1 %v7000_v57 }
 0x5dd   :  { %3067 = vmatprep.subr.bf16.mxu0 %v7003_v18  ;;  %3108 = vmatprep.subr.bf16.mxu1 %v7006_v60 }
 0x5e0   :  { %3068 = vmatpush1.bf16.msra.mxu0 %v7009_v41  ;;  %3109 = vmatpush1.bf16.msra.mxu1 %v7012_v54 }
 0x5e1   :  { %3069 = vmatprep.subr.bf16.mxu0 %v7015_v62  ;;  %3110 = vmatprep.subr.bf16.mxu1 %v7018_v30 }
 0x5e4   :  { %3070 = vmatpush1.bf16.msra.mxu0 %v7021_v14  ;;  %3111 = vmatpush1.bf16.msra.mxu1 %v7024_v28 }
 0x5e5   :  { %3071 = vmatprep.subr.bf16.mxu0 %v6794_v56  ;;  %3112 = vmatprep.subr.bf16.mxu1 %v6797_v9  ;;  %v5563_v56 = vld [vmem:[#allocation2 + $0xe4] ss:$16 sps:$4 sm:$0xff]   ;;  %v5564_v9 = vld [vmem:[#allocation2 + $0xec] ss:$16 sps:$4 sm:$0xff]  }
 0x5e8   :  { %3072 = vmatpush1.bf16.msra.mxu0 %v6800_v0  ;;  %3113 = vmatpush1.bf16.msra.mxu1 %v6803_v17 }
 0x5e9   :  { %3073 = vmatprep.subr.bf16.mxu0 %v6806_v23  ;;  %3114 = vmatprep.subr.bf16.mxu1 %v6809_v47 }
 0x5ec   :  { %3074 = vmatpush1.bf16.msra.mxu0 %v6812_v27  ;;  %3115 = vmatpush1.bf16.msra.mxu1 %v6815_v59 }
 0x5ed   :  { %3075 = vmatprep.subr.bf16.mxu0 %v6818_v44  ;;  %3116 = vmatprep.subr.bf16.mxu1 %v6821_v15 }
 0x5f0   :  { %3076 = vmatpush1.bf16.msra.mxu0 %v6824_v13  ;;  %3117 = vmatpush1.bf16.msra.mxu1 %v6827_v10 }
 0x5f1   :  { %3495 = vmatprep.subr.bf16.mxu0 %v5563_v56  ;;  %3536 = vmatprep.subr.bf16.mxu1 %v5564_v9 }
 0x693   :  { %v2661_v0 = vpop.f32.mrf.mxu0  ;;  %v2702_v17 = vpop.f32.mrf.mxu1 }
 0x694   :  { %v2713_v23 = vrot.slane %v2661_v0, 3  ;;  %v2717_v47 = vrot.slane %v2661_v0, 4  ;;  %v2721_v6 = vrot.slane %v2661_v0, 5  ;;  %v2725_v27 = vrot.slane %v2661_v0, 6 }
 0x695   :  { %v2729_v8 = vrot.slane %v2661_v0, 7  ;;  %v2733_v59 = vrot.slane %v2661_v0, 1  ;;  %v2737_v24 = vrot.slane %v2661_v0, 2  ;;  %v2793_v44 = vadd.f32 %v2661_v0, %v7731_v36  ;;  %v7040_v15 = vpop.f32.mrf.mxu0  ;;  %v7042_v13 = vpop.f32.mrf.mxu1 }
 0x696   :  { %v2773_v10 = vadd.f32 %v2713_v23, %v7727_v52  ;;  %v2777_v4 = vadd.f32 %v2717_v47, %v7728_v22  ;;  %v2781_v21 = vadd.f32 %v2721_v6, %v7729_v19  ;;  %v2785_v50 = vadd.f32 %v2725_v27, %v7730_v55 }
 0x697   :  { %v2789_v25 = vadd.f32 %v2729_v8, %v7726_v34  ;;  %v2797_v16 = vadd.f32 %v2733_v59, %v7732_v29  ;;  %v4280_v37 = vmul.f32 -1.442695, %v2793_v44  ;;  %v2665_v11 = vpop.f32.mrf.mxu0  ;;  %v2706_v39 = vpop.f32.mrf.mxu1  ;;  %v2801_v32 = vadd.f32 %v2737_v24, %v7733_v35  ;;  %v7758_v24 = vld [vmem:[#allocation15_spill] sm:$0xff] }
 0x698   :  { %v4275_v40 = vmul.f32 -1.442695, %v2773_v10  ;;  %v4276_v48 = vmul.f32 -1.442695, %v2777_v4  ;;  %v4277_v31 = vmul.f32 -1.442695, %v2781_v21 }
 0x699   :  { %v4278_v43 = vmul.f32 -1.442695, %v2785_v50  ;;  %5097 = vpow2.f32 %v4280_v37  ;;  %v2666_v42 = vpop.f32.mrf.mxu0  ;;  %v2707_v56 = vpop.f32.mrf.mxu1  ;;  %v4279_v9 = vmul.f32 -1.442695, %v2789_v25  ;;  %v2715_v0 = vrot.slane %v2702_v17, 3  ;;  %v7759_v10 = vld [vmem:[#allocation18_spill] sm:$0xff] }
 0x69a   :  { %5099 = vpow2.f32 %v4275_v40  ;;  %v2719_v23 = vrot.slane %v2702_v17, 4  ;;  %v4281_v47 = vmul.f32 -1.442695, %v2797_v16  ;;  %v2723_v6 = vrot.slane %v2702_v17, 5  ;;  %v7760_v50 = vld [vmem:[#allocation19_spill] sm:$0xff]  ;;  %v7761_v11 = vld [vmem:[#allocation20_spill] sm:$0xff] }
 0x69b   :  { %5101 = vpow2.f32 %v4276_v48  ;;  %v4282_v27 = vmul.f32 -1.442695, %v2801_v32  ;;  %v2727_v8 = vrot.slane %v2702_v17, 6  ;;  %v2731_v59 = vrot.slane %v2702_v17, 7  ;;  %v7762_v16 = vld [vmem:[#allocation21_spill] sm:$0xff]  ;;  %v7763_v32 = vld [vmem:[#allocation22_spill] sm:$0xff] }
 0x69c   :  { %5103 = vpow2.f32 %v4277_v31  ;;  %v2775_v44 = vadd.f32 %v2715_v0, %v7758_v24  ;;  %v2779_v4 = vadd.f32 %v2719_v23, %v7759_v10  ;;  %v2735_v21 = vrot.slane %v2702_v17, 1  ;;  %v7764_v31 = vld [vmem:[#allocation23_spill] sm:$0xff]  ;;  %v7765_v42 = vld [vmem:[#allocation24_spill] sm:$0xff] }
 0x69d   :  { %5105 = vpow2.f32 %v4278_v43  ;;  %v2783_v37 = vadd.f32 %v2723_v6, %v7760_v50  ;;  %v2739_v25 = vrot.slane %v2702_v17, 2  ;;  %v2787_v39 = vadd.f32 %v2727_v8, %v7761_v11  ;;  %v7770_v50 = vld [vmem:[#allocation31_spill] sm:$0xff] }
 0x69e   :  { %5107 = vpow2.f32 %v4279_v9  ;;  %v2791_v40 = vadd.f32 %v2731_v59, %v7762_v16  ;;  %v2795_v48 = vadd.f32 %v2702_v17, %v7763_v32  ;;  %v2799_v43 = vadd.f32 %v2735_v21, %v7764_v31  ;;  %v7769_v16 = vld [vmem:[#allocation29_spill] sm:$0xff] }
 0x69f   :  { %5109 = vpow2.f32 %v4281_v47  ;;  %v2803_v56 = vadd.f32 %v2739_v25, %v7765_v42  ;;  %v2714_v9 = vrot.slane %v7040_v15, 3  ;;  %v2718_v23 = vrot.slane %v7040_v15, 4  ;;  %v7766_v25 = vld [vmem:[#allocation16_spill] sm:$0xff] }
 0x6a0   :  { %5111 = vpow2.f32 %v4282_v27  ;;  %v2722_v27 = vrot.slane %v7040_v15, 5  ;;  %v2726_v17 = vrot.slane %v7040_v15, 6 }
 0x6a1   :  { %5113 = vtanh.f32 %v2775_v44  ;;  %v2730_v44 = vrot.slane %v7040_v15, 7 }
 0x6a2   :  { %5115 = vtanh.f32 %v2779_v4  ;;  %v2786_v11 = vadd.f32 %v2726_v17, %v7769_v16  ;;  %v2720_v17 = vrot.slane %v7042_v13, 4  ;;  %v2732_v16 = vrot.slane %v7042_v13, 7 }
 0x6a3   :  { %5117 = vtanh.f32 %v2783_v37  ;;  %v2734_v37 = vrot.slane %v7040_v15, 1  ;;  %v2790_v10 = vadd.f32 %v2730_v44, %v7770_v50  ;;  %v7772_v44 = vld [vmem:[#allocation35_spill] sm:$0xff] }
 0x6a4   :  { %5119 = vtanh.f32 %v2787_v39  ;;  %v2774_v39 = vadd.f32 %v2714_v9, %v7766_v25  ;;  %v7771_v9 = vld [vmem:[#allocation33_spill] sm:$0xff] }
 0x6a5   :  { %5121 = vtanh.f32 %v2791_v40 }
 0x6a6   :  { %v5098_v0 = vpop.eup %5097  ;;  %5123 = vtanh.f32 %v2795_v48  ;;  %v4283_v24 = vmul.f32 -1.442695, %v2774_v39 }
 0x6a7   :  { %v5100_v47 = vpop.eup %5099  ;;  %v2834_v6 = vadd.f32 1.0, %v5098_v0  ;;  %5125 = vtanh.f32 %v2799_v43  ;;  %v2738_v43 = vrot.slane %v7040_v15, 2  ;;  %v7767_v0 = vld [vmem:[#allocation25_spill] sm:$0xff] }
 0x6a8   :  { %v5102_v8 = vpop.eup %5101  ;;  %v2829_v59 = vadd.f32 1.0, %v5100_v47  ;;  %5127 = vtanh.f32 %v2803_v56  ;;  %v2778_v42 = vadd.f32 %v2718_v23, %v7767_v0  ;;  %v7768_v56 = vld [vmem:[#allocation27_spill] sm:$0xff]  ;;  %v2716_v23 = vrot.slane %v7042_v13, 3 }
 0x6a9   :  { %v5104_v4 = vpop.eup %5103  ;;  %v2830_v21 = vadd.f32 1.0, %v5102_v8  ;;  %5129 = vrcp.f32 %v2834_v6  ;;  %v2782_v47 = vadd.f32 %v2722_v27, %v7768_v56 }
 0x6aa   :  { %v5106_v40 = vpop.eup %5105  ;;  %v2831_v48 = vadd.f32 1.0, %v5104_v4  ;;  %5131 = vrcp.f32 %v2829_v59  ;;  %v2794_v4 = vadd.f32 %v7040_v15, %v7771_v9  ;;  %v4284_v27 = vmul.f32 -1.442695, %v2778_v42 }
 0x6ab   :  { %v5108_v31 = vpop.eup %5107  ;;  %v2832_v32 = vadd.f32 1.0, %v5106_v40  ;;  %5133 = vrcp.f32 %v2830_v21  ;;  %v4285_v50 = vmul.f32 -1.442695, %v2782_v47  ;;  %v2724_v15 = vrot.slane %v7042_v13, 5 }
 0x6ac   :  { %v5110_v8 = vpop.eup %5109  ;;  %v2833_v6 = vadd.f32 1.0, %v5108_v31  ;;  %5135 = vrcp.f32 %v2831_v48  ;;  %v2798_v48 = vadd.f32 %v2734_v37, %v7772_v44  ;;  %v4286_v9 = vmul.f32 -1.442695, %v2786_v11  ;;  %v7775_v44 = vld [vmem:[#allocation26_spill] sm:$0xff] }
 0x6ad   :  { %v5112_v59 = vpop.eup %5111  ;;  %v2835_v25 = vadd.f32 1.0, %v5110_v8  ;;  %5137 = vrcp.f32 %v2832_v32  ;;  %v7773_v32 = vld [vmem:[#allocation37_spill] sm:$0xff]  ;;  %v4287_v42 = vmul.f32 -1.442695, %v2790_v10  ;;  %v4288_v47 = vmul.f32 -1.442695, %v2794_v4 }
 0x6ae   :  { %v7074_v40 = vpop.eup %5113  ;;  %v2836_v21 = vadd.f32 1.0, %v5112_v59  ;;  %5139 = vrcp.f32 %v2833_v6  ;;  %v2802_v39 = vadd.f32 %v2738_v43, %v7773_v32  ;;  %v2728_v59 = vrot.slane %v7042_v13, 6  ;;  %v7776_v32 = vld [vmem:[#allocation28_spill] sm:$0xff] }
 0x6af   :  { %v7077_v31 = vpop.eup %5115  ;;  %5141 = vrcp.f32 %v2835_v25  ;;  %v7774_v25 = vld [vmem:[#allocation17_spill] sm:$0xff]  ;;  %v2780_v0 = vadd.f32 %v2720_v17, %v7775_v44  ;;  %v4289_v11 = vmul.f32 -1.442695, %v2798_v48  ;;  %v2736_v43 = vrot.slane %v7042_v13, 1  ;;  %v7778_v4 = vld [vmem:[#allocation32_spill] sm:$0xff]  ;;  %v7779_v48 = vld [vmem:[#allocation34_spill] sm:$0xff] }
 0x6b0   :  { %v7081_v8 = vpop.eup %5117  ;;  %5143 = vrcp.f32 %v2836_v21  ;;  %v2776_v56 = vadd.f32 %v2716_v23, %v7774_v25  ;;  %v2784_v35 = vadd.f32 %v2724_v15, %v7776_v32  ;;  %v4290_v10 = vmul.f32 -1.442695, %v2802_v39  ;;  %v7777_v25 = vld [vmem:[#allocation30_spill] sm:$0xff] }
 0x6b1   :  { %v7085_v6 = vpop.eup %5119  ;;  %5145 = vpow2.f32 %v4283_v24  ;;  %v2740_v23 = vrot.slane %v7042_v13, 2  ;;  %v2788_v36 = vadd.f32 %v2728_v59, %v7777_v25  ;;  %v2792_v17 = vadd.f32 %v2732_v16, %v7778_v4 }
 0x6b2   :  { %v7089_v37 = vpop.eup %5121  ;;  %5147 = vpow2.f32 %v4284_v27  ;;  %v4291_v44 = vmul.f32 -1.442695, %v2776_v56  ;;  %v2796_v15 = vadd.f32 %v7042_v13, %v7779_v48  ;;  %v4292_v32 = vmul.f32 -1.442695, %v2780_v0 }
 0x6b3   :  { %v7092_v21 = vpop.eup %5123  ;;  %5149 = vpow2.f32 %v4285_v50  ;;  %v4293_v55 = vmul.f32 -1.442695, %v2784_v35  ;;  %v4294_v16 = vmul.f32 -1.442695, %v2788_v36 }
 0x6b4   :  { %v7096_v24 = vpop.eup %5125  ;;  %5151 = vpow2.f32 %v4286_v9  ;;  %v7780_v9 = vld [vmem:[#allocation36_spill] sm:$0xff]  ;;  %v4296_v13 = vmul.f32 -1.442695, %v2796_v15 }
 0x6b5   :  { %v7100_v27 = vpop.eup %5127  ;;  %5153 = vpow2.f32 %v4287_v42  ;;  %v2800_v39 = vadd.f32 %v2736_v43, %v7780_v9  ;;  %v7781_v42 = vld [vmem:[#allocation38_spill] sm:$0xff] }
 0x6b6   :  { %v7103_v50 = vpop.eup %5129  ;;  %5155 = vpow2.f32 %v4288_v47  ;;  %v2804_v25 = vadd.f32 %v2740_v23, %v7781_v42  ;;  %v4295_v47 = vmul.f32 -1.442695, %v2792_v17 }
 0x6b7   :  { %v7107_v34 = vpop.eup %5131  ;;  %5157 = vpow2.f32 %v4289_v11  ;;  %v4297_v11 = vmul.f32 -1.442695, %v2800_v39 }
 0x6b8   :  { %v7110_v59 = vpop.eup %5133  ;;  %5159 = vpow2.f32 %v4290_v10  ;;  %v4298_v35 = vmul.f32 -1.442695, %v2804_v25 }
 0x6b9   :  { %v7113_v56 = vpop.eup %5135  ;;  %5161 = vpow2.f32 %v4291_v44 }
 0x6ba   :  { %v7115_v4 = vpop.eup %5137  ;;  %5163 = vpow2.f32 %v4292_v32 }
 0x6bb   :  { %v7117_v0 = vpop.eup %5139  ;;  %5165 = vpow2.f32 %v4293_v55 }
 0x6bc   :  { %v7119_v43 = vpop.eup %5141  ;;  %5167 = vpow2.f32 %v4294_v16 }
 0x6bd   :  { %v7121_v10 = vpop.eup %5143  ;;  %5169 = vpow2.f32 %v4295_v47 }
 0x6be   :  { %v5146_v36 = vpop.eup %5145  ;;  %5171 = vpow2.f32 %v4296_v13 }
 0x6bf   :  { %v5148_v23 = vpop.eup %5147  ;;  %v2877_v44 = vadd.f32 1.0, %v5146_v36  ;;  %5173 = vpow2.f32 %v4297_v11 }
 0x6c0   :  { %v5150_v17 = vpop.eup %5149  ;;  %v2878_v42 = vadd.f32 1.0, %v5148_v23  ;;  %5175 = vpow2.f32 %v4298_v35 }
 0x6c1   :  { %v5152_v32 = vpop.eup %5151  ;;  %v2879_v15 = vadd.f32 1.0, %v5150_v17  ;;  %5177 = vrcp.f32 %v2877_v44 }
 0x6c2   :  { %v5154_v55 = vpop.eup %5153  ;;  %v2880_v39 = vadd.f32 1.0, %v5152_v32  ;;  %5179 = vrcp.f32 %v2878_v42 }
 0x6c3   :  { %v5156_v9 = vpop.eup %5155  ;;  %v2881_v16 = vadd.f32 1.0, %v5154_v55  ;;  %5181 = vrcp.f32 %v2879_v15 }
 0x6c4   :  { %v5158_v25 = vpop.eup %5157  ;;  %v2882_v48 = vadd.f32 1.0, %v5156_v9  ;;  %5183 = vrcp.f32 %v2880_v39  ;;  %v2965_v39 = vrot.slane %v6930_v26, 7  ;;  %v2971_v26 = vrot.slane %v6956_v20, 7 }
 0x6c5   :  { %v5160_v47 = vpop.eup %5159  ;;  %v2883_v13 = vadd.f32 1.0, %v5158_v25  ;;  %5185 = vrcp.f32 %v2881_v16  ;;  %v2966_v16 = vrot.slane %v6934_v53, 7  ;;  %v2989_v53 = vmul.f32 %v7107_v34, %v7074_v40 }
 0x6c6   :  { %v5162_v36 = vpop.eup %5161  ;;  %v2884_v11 = vadd.f32 1.0, %v5160_v47  ;;  %5187 = vrcp.f32 %v2882_v48  ;;  %v2968_v47 = vrot.slane %v6943_v58, 7  ;;  %v2992_v34 = vmul.f32 %v7115_v4, %v7085_v6 }
 0x6c7   :  { %v5164_v23 = vpop.eup %5163  ;;  %5189 = vrcp.f32 %v2883_v13  ;;  %v2933_v35 = vadd.f32 1.0, %v5162_v36  ;;  %v2967_v13 = vrot.slane %v6938_v1, 7  ;;  %v2972_v1 = vrot.slane %v6959_v33, 7 }
 0x6c8   :  { %v5166_v17 = vpop.eup %5165  ;;  %5191 = vrcp.f32 %v2884_v11  ;;  %v2934_v44 = vadd.f32 1.0, %v5164_v23  ;;  %v2969_v23 = vrot.slane %v6948_v3, 7 }
 0x6c9   :  { %v5168_v32 = vpop.eup %5167  ;;  %v2935_v42 = vadd.f32 1.0, %v5166_v17  ;;  %5193 = vrcp.f32 %v2933_v35 }
 0x6ca   :  { %v5170_v19 = vpop.eup %5169  ;;  %v2936_v55 = vadd.f32 1.0, %v5168_v32  ;;  %5195 = vrcp.f32 %v2934_v44  ;;  %v2990_v32 = vmul.f32 %v7110_v59, %v7077_v31  ;;  %v2993_v31 = vmul.f32 %v7117_v0, %v7089_v37 }
 0x6cb   :  { %v5172_v15 = vpop.eup %5171  ;;  %v2937_v22 = vadd.f32 1.0, %v5170_v19  ;;  %5197 = vrcp.f32 %v2935_v42  ;;  %v2970_v19 = vrot.slane %v6953_v38, 7  ;;  %v2991_v38 = vmul.f32 %v7113_v56, %v7081_v8 }
 0x6cc   :  { %v5174_v9 = vpop.eup %5173  ;;  %v2938_v25 = vadd.f32 1.0, %v5172_v15  ;;  %5199 = vrcp.f32 %v2936_v55  ;;  %v2994_v56 = vmul.f32 %v7103_v50, %v7092_v21 }
 0x6cd   :  { %v5176_v48 = vpop.eup %5175  ;;  %v2939_v36 = vadd.f32 1.0, %v5174_v9  ;;  %5201 = vrcp.f32 %v2937_v22 }
 0x6ce   :  { %v5178_v11 = vpop.eup %5177  ;;  %v2940_v35 = vadd.f32 1.0, %v5176_v48  ;;  %5203 = vrcp.f32 %v2938_v25  ;;  %v2995_v25 = vmul.f32 %v7119_v43, %v7096_v24  ;;  %v2996_v48 = vmul.f32 %v7121_v10, %v7100_v27 }
 0x6cf   :  { %v5180_v17 = vpop.eup %5179  ;;  %v2981_v44 = vmul.f32 %v5178_v11, %v2965_v39  ;;  %5205 = vrcp.f32 %v2939_v36 }
 0x6d0   :  { %v5182_v58 = vpop.eup %5181  ;;  %v2982_v42 = vmul.f32 %v5180_v17, %v2966_v16  ;;  %5207 = vrcp.f32 %v2940_v35 }
 0x6d1   :  { %v5184_v3 = vpop.eup %5183  ;;  %v2983_v55 = vmul.f32 %v5182_v58, %v2967_v13  ;;  %v7137_v15 = vadd.f32 %v2989_v53, %v2981_v44 }
 0x6d2   :  { %v5186_v20 = vpop.eup %5185  ;;  %v7141_v22 = vadd.f32 %v2990_v32, %v2982_v42  ;;  %v2984_v33 = vmul.f32 %v5184_v3, %v2968_v47 }
 0x6d3   :  { %v5188_v40 = vpop.eup %5187  ;;  %v2985_v59 = vmul.f32 %v5186_v20, %v2969_v23  ;;  %v7145_v9 = vadd.f32 %v2991_v38, %v2983_v55  ;;  %5209 = vtanh.f32 %v7137_v15 }
 0x6d4   :  { %v5190_v8 = vpop.eup %5189  ;;  %v2986_v39 = vmul.f32 %v5188_v40, %v2970_v19  ;;  %v7150_v16 = vadd.f32 %v2992_v34, %v2984_v33  ;;  %5211 = vtanh.f32 %v7141_v22 }
 0x6d5   :  { %v5192_v6 = vpop.eup %5191  ;;  %v2987_v4 = vmul.f32 %v5190_v8, %v2971_v26  ;;  %v7155_v37 = vadd.f32 %v2993_v31, %v2985_v59  ;;  %5213 = vtanh.f32 %v7145_v9 }
 0x6d6   :  { %v2988_v0 = vmul.f32 %v5192_v6, %v2972_v1  ;;  %v7160_v47 = vadd.f32 %v2994_v56, %v2986_v39  ;;  %5215 = vtanh.f32 %v7150_v16  ;;  %v5194_v50 = vpop.eup %5193 }
 0x6d7   :  { %v7163_v21 = vadd.f32 %v2995_v25, %v2987_v4  ;;  %5217 = vtanh.f32 %v7155_v37  ;;  %v5196_v24 = vpop.eup %5195 }
 0x6d8   :  { %v7166_v13 = vadd.f32 %v2996_v48, %v2988_v0  ;;  %5219 = vtanh.f32 %v7160_v47  ;;  %v5198_v43 = vpop.eup %5197 }
 0x6d9   :  { %5221 = vtanh.f32 %v7163_v21  ;;  %v5200_v27 = vpop.eup %5199 }
 0x6da   :  { %5223 = vtanh.f32 %v7166_v13  ;;  %v5202_v10 = vpop.eup %5201 }
 0x6db   :  { %v5204_v36 = vpop.eup %5203 }
 0x6dc   :  { %v5206_v11 = vpop.eup %5205 }
 0x6dd   :  { %v5208_v23 = vpop.eup %5207 }
 0x6e0   :  { %v5210_v19 = vpop.eup %5209 }
 0x6e1   :  { %v5212_v35 = vpop.eup %5211  ;;  %v3013_v17 = vmul.f32 %v5210_v19, %v5194_v50 }
 0x6e2   :  { %v5214_v26 = vpop.eup %5213  ;;  %v3014_v53 = vmul.f32 %v5212_v35, %v5196_v24 }
 0x6e3   :  { %v5216_v44 = vpop.eup %5215  ;;  %v3015_v58 = vmul.f32 %v5214_v26, %v5198_v43  ;;  %v3021_v1 = vpack.c.bf16 %v3013_v17, %v3013_v17 }
 0x6e4   :  { %v5218_v32 = vpop.eup %5217  ;;  %v3016_v42 = vmul.f32 %v5216_v44, %v5200_v27  ;;  %v3022_v3 = vpack.c.bf16 %v3014_v53, %v3014_v53 }
 0x6e5   :  { %v5220_v38 = vpop.eup %5219  ;;  %v3017_v55 = vmul.f32 %v5218_v32, %v5202_v10  ;;  %v3023_v20 = vpack.c.bf16 %v3015_v58, %v3015_v58  ;;  %v3037_v34 = vunpack.c.l.b16 %v3021_v1 }
 0x6e6   :  { %v5222_v33 = vpop.eup %5221  ;;  %v3018_v40 = vmul.f32 %v5220_v38, %v5204_v36  ;;  %v3024_v31 = vpack.c.bf16 %v3016_v42, %v3016_v42  ;;  %v3038_v59 = vunpack.c.l.b16 %v3022_v3 }
 0x6e7   :  { %v5224_v8 = vpop.eup %5223  ;;  %v3019_v56 = vmul.f32 %v5222_v33, %v5206_v11  ;;  %v3025_v39 = vpack.c.bf16 %v3017_v55, %v3017_v55  ;;  %v3039_v6 = vunpack.c.l.b16 %v3023_v20  ;;  %v3045_v4 = vrot.slane %v3037_v34, 5 }
 0x6e8   :  { %v3020_v25 = vmul.f32 %v5224_v8, %v5208_v23  ;;  %v3026_v0 = vpack.c.bf16 %v3018_v40, %v3018_v40  ;;  %v3040_v48 = vunpack.c.l.b16 %v3024_v31  ;;  %v3046_v50 = vrot.slane %v3038_v59, 4  ;;  %v7782_v59 = vld [vmem:[#allocation8_spill] sm:$0xff] }
 0x6e9   :  { %v3027_v24 = vpack.c.bf16 %v3019_v56, %v3019_v56  ;;  %v3041_v43 = vunpack.c.l.b16 %v3025_v39  ;;  %v3048_v27 = vrot.slane %v3039_v6, 3  ;;  %v7783_v56 = vld [vmem:[#allocation9_spill] sm:$0xff]  ;;  %v7784_v6 = vld [vmem:[#allocation10_spill] sm:$0xff] }
 0x6ea   :  { %v3028_v19 = vpack.c.bf16 %v3020_v25, %v3020_v25  ;;  %v3047_v10 = vsel %vm869_vm1, %v3046_v50, %v3045_v4  ;;  %v3050_v35 = vrot.slane %v3040_v48, 2  ;;  %v3042_v53 = vunpack.c.l.b16 %v3026_v0  ;;  %v7785_v25 = vld [vmem:[#allocation11_spill] sm:$0xff]  ;;  %v7786_v48 = vld [vmem:[#allocation12_spill] sm:$0xff] }
 0x6eb   :  { %v3043_v17 = vunpack.c.l.b16 %v3027_v24  ;;  %v3049_v36 = vsel %vm872_vm2, %v3048_v27, %v3047_v10  ;;  %v3052_v26 = vrot.slane %v3041_v43, 1 }
 0x6ec   :  { %v3044_v11 = vunpack.c.l.b16 %v3028_v19  ;;  %v3051_v44 = vsel %vm875_vm3, %v3050_v35, %v3049_v36  ;;  %v7787_v19 = vld [vmem:[#allocation14_spill] sm:$0xff] }
 0x6ed   :  { %v3053_v23 = vsel %vm878_vm4, %v3052_v26, %v3051_v44  ;;  %v3055_v58 = vrot.slane %v3043_v17, 7 }
 0x6ee   :  { %v3054_v1 = vsel %vm881_vm5, %v3042_v53, %v3053_v23  ;;  %v3057_v32 = vrot.slane %v3044_v11, 6 }
 0x6ef   :  { %v3056_v42 = vsel %vm884_vm6, %v3055_v58, %v3054_v1 }
 0x6f0   :  { %v3058_v3 = vsel %vm887_vm7, %v3057_v32, %v3056_v42 }
 0x6f1   :  { %v3059_v38 = vpack.c.b16 %v3058_v3, %v3058_v3 }
 0x6f3   :  { %3094 = vmatmul.mubr.bf16.vlgmr.msra.gmra.mxu0 %v3059_v38  ;;  %3135 = vmatmul.mubr.bf16.vlgmr.msra.gmra.mxu1 %v3059_v38 }
 0x6f4   :  { %3496 = vmatpush1.bf16.msra.mxu0 %v6971_v12  ;;  %3537 = vmatpush1.bf16.msra.mxu1 %v6974_v45  ;;  %v5566_v12 = vld [vmem:[#allocation2 + $0x4c] ss:$16 sps:$4 sm:$0xff]   ;;  %v5567_v45 = vld [vmem:[#allocation2 + $0x40] ss:$16 sps:$4 sm:$0xff]  }
 0x6f5   :  { %3497 = vmatprep.subr.bf16.mxu0 %v6977_v49  ;;  %3538 = vmatprep.subr.bf16.mxu1 %v6980_v2  ;;  %v5568_v49 = vld [vmem:[#allocation2 + $0x48] ss:$16 sps:$4 sm:$0xff]   ;;  %v5569_v2 = vld [vmem:[#allocation2 + $0x24] ss:$16 sps:$4 sm:$0xff]  }
 0x6f6   :  { %3527 = vmatprep.mubr.bf16.mxu0 %v7643_v5  ;;  %3568 = vmatprep.mubr.bf16.mxu1 %v7643_v5  ;;  %v5565_v5 = vld [vmem:[#allocation2 + $0x44] ss:$16 sps:$4 sm:$0xff]  }
 0x6f8   :  { %3498 = vmatpush1.bf16.msra.mxu0 %v6985_v61  ;;  %3539 = vmatpush1.bf16.msra.mxu1 %v6988_v46  ;;  %v5570_v61 = vld [vmem:[#allocation2 + $0x2c] ss:$16 sps:$4 sm:$0xff]   ;;  %v5571_v46 = vld [vmem:[#allocation2 + $0x20] ss:$16 sps:$4 sm:$0xff]  }
 0x6f9   :  { %3499 = vmatprep.subr.bf16.mxu0 %v6991_v63  ;;  %3540 = vmatprep.subr.bf16.mxu1 %v6994_v51  ;;  %v5572_v63 = vld [vmem:[#allocation2 + $0x28] ss:$16 sps:$4 sm:$0xff]   ;;  %v5573_v51 = vld [vmem:[#allocation2 + $0x4] ss:$16 sps:$4 sm:$0xff]  }
 0x6fc   :  { %3500 = vmatpush1.bf16.msra.mxu0 %v6997_v7  ;;  %3541 = vmatpush1.bf16.msra.mxu1 %v7000_v57  ;;  %v5574_v7 = vld [vmem:[#allocation2 + $0xc] ss:$16 sps:$4 sm:$0xff]   ;;  %v5575_v57 = vld [vmem:[#allocation2] ss:$16 sps:$4 sm:$0xff]  }
 0x6fd   :  { %3501 = vmatprep.subr.bf16.mxu0 %v7003_v18  ;;  %3542 = vmatprep.subr.bf16.mxu1 %v7006_v60  ;;  %v5576_v18 = vld [vmem:[#allocation2 + $0x8] ss:$16 sps:$4 sm:$0xff]  }
 0x700   :  { %3502 = vmatpush1.bf16.msra.mxu0 %v7009_v41  ;;  %3543 = vmatpush1.bf16.msra.mxu1 %v7012_v54 }
 0x701   :  { %3503 = vmatprep.subr.bf16.mxu0 %v7015_v62  ;;  %3544 = vmatprep.subr.bf16.mxu1 %v7018_v30 }
 0x704   :  { %3504 = vmatpush1.bf16.msra.mxu0 %v7021_v14  ;;  %3545 = vmatpush1.bf16.msra.mxu1 %v7024_v28 }
 0x705   :  { %3505 = vmatprep.subr.bf16.mxu0 %v5565_v5  ;;  %3546 = vmatprep.subr.bf16.mxu1 %v5566_v12  ;;  %v7788_v5 = vld [vmem:[#allocation15_spill] sm:$0xff] }
 0x708   :  { %3506 = vmatpush1.bf16.msra.mxu0 %v5567_v45  ;;  %3547 = vmatpush1.bf16.msra.mxu1 %v5568_v49  ;;  %v7789_v49 = vld [vmem:[#allocation18_spill] sm:$0xff] }
 0x709   :  { %3507 = vmatprep.subr.bf16.mxu0 %v5569_v2  ;;  %3548 = vmatprep.subr.bf16.mxu1 %v5570_v61  ;;  %v7790_v61 = vld [vmem:[#allocation19_spill] sm:$0xff] }
 0x70c   :  { %3508 = vmatpush1.bf16.msra.mxu0 %v5571_v46  ;;  %3549 = vmatpush1.bf16.msra.mxu1 %v5572_v63 }
 0x70d   :  { %3509 = vmatprep.subr.bf16.mxu0 %v5573_v51  ;;  %3550 = vmatprep.subr.bf16.mxu1 %v5574_v7  ;;  %v7791_v51 = vld [vmem:[#allocation20_spill] sm:$0xff] }
 0x710   :  { %3510 = vmatpush1.bf16.msra.mxu0 %v5575_v57  ;;  %3551 = vmatpush1.bf16.msra.mxu1 %v5576_v18  ;;  %v7792_v57 = vld [vmem:[#allocation21_spill] sm:$0xff] }
 0x7b3   :  { %v3095_v60 = vpop.f32.mrf.mxu0  ;;  %v3136_v41 = vpop.f32.mrf.mxu1 }
 0x7b4   :  { %v3147_v54 = vrot.slane %v3095_v60, 2  ;;  %v3151_v62 = vrot.slane %v3095_v60, 3  ;;  %v3155_v30 = vrot.slane %v3095_v60, 4  ;;  %v3159_v14 = vrot.slane %v3095_v60, 5 }
 0x7b5   :  { %v3163_v28 = vrot.slane %v3095_v60, 6  ;;  %v3167_v55 = vrot.slane %v3095_v60, 7  ;;  %v3171_v20 = vrot.slane %v3095_v60, 1  ;;  %v3231_v34 = vadd.f32 %v3095_v60, %v7732_v29  ;;  %v7199_v33 = vpop.f32.mrf.mxu0  ;;  %v7201_v40 = vpop.f32.mrf.mxu1  ;;  %v7793_v60 = vld [vmem:[#allocation22_spill] sm:$0xff] }
 0x7b6   :  { %v3207_v31 = vadd.f32 %v3147_v54, %v7727_v52  ;;  %v3211_v8 = vadd.f32 %v3151_v62, %v7782_v59  ;;  %v3215_v39 = vadd.f32 %v3155_v30, %v7783_v56  ;;  %v3219_v4 = vadd.f32 %v3159_v14, %v7784_v6  ;;  %v7794_v62 = vld [vmem:[#allocation23_spill] sm:$0xff]  ;;  %v7795_v14 = vld [vmem:[#allocation24_spill] sm:$0xff] }
 0x7b7   :  { %v3223_v0 = vadd.f32 %v3163_v28, %v7785_v25  ;;  %v3227_v50 = vadd.f32 %v3167_v55, %v7786_v48  ;;  %v4305_v24 = vmul.f32 -1.442695, %v3231_v34  ;;  %v3099_v43 = vpop.f32.mrf.mxu0  ;;  %v3140_v27 = vpop.f32.mrf.mxu1  ;;  %v3235_v10 = vadd.f32 %v3171_v20, %v7787_v19 }
 0x7b8   :  { %v4299_v35 = vmul.f32 -1.442695, %v3207_v31  ;;  %v4300_v17 = vmul.f32 -1.442695, %v3211_v8  ;;  %v4301_v36 = vmul.f32 -1.442695, %v3215_v39  ;;  %v3233_v30 = vadd.f32 %v3136_v41, %v7794_v62 }
 0x7b9   :  { %v4302_v26 = vmul.f32 -1.442695, %v3219_v4  ;;  %5225 = vpow2.f32 %v4305_v24  ;;  %v3100_v53 = vpop.f32.mrf.mxu0  ;;  %v3141_v11 = vpop.f32.mrf.mxu1  ;;  %v4303_v44 = vmul.f32 -1.442695, %v3223_v0  ;;  %v3149_v23 = vrot.slane %v3136_v41, 2 }
 0x7ba   :  { %5227 = vpow2.f32 %v4299_v35  ;;  %v3153_v58 = vrot.slane %v3136_v41, 3  ;;  %v4304_v1 = vmul.f32 -1.442695, %v3227_v50  ;;  %v3157_v32 = vrot.slane %v3136_v41, 4  ;;  %v7797_v53 = vld [vmem:[#allocation25_spill] sm:$0xff] }
 0x7bb   :  { %5229 = vpow2.f32 %v4300_v17  ;;  %v4306_v42 = vmul.f32 -1.442695, %v3235_v10  ;;  %v3161_v3 = vrot.slane %v3136_v41, 5  ;;  %v3165_v38 = vrot.slane %v3136_v41, 6  ;;  %v7796_v10 = vld [vmem:[#allocation16_spill] sm:$0xff] }
 0x7bc   :  { %5231 = vpow2.f32 %v4301_v36  ;;  %v3209_v12 = vadd.f32 %v3149_v23, %v7788_v5  ;;  %v3169_v45 = vrot.slane %v3136_v41, 7  ;;  %v3213_v2 = vadd.f32 %v3153_v58, %v7789_v49  ;;  %v7798_v58 = vld [vmem:[#allocation27_spill] sm:$0xff] }
 0x7bd   :  { %5233 = vpow2.f32 %v4302_v26  ;;  %v3217_v46 = vadd.f32 %v3157_v32, %v7790_v61  ;;  %v3173_v63 = vrot.slane %v3136_v41, 1  ;;  %v3221_v7 = vadd.f32 %v3161_v3, %v7791_v51  ;;  %v7799_v32 = vld [vmem:[#allocation29_spill] sm:$0xff] }
 0x7be   :  { %5235 = vpow2.f32 %v4303_v44  ;;  %v3225_v18 = vadd.f32 %v3165_v38, %v7792_v57  ;;  %v3229_v54 = vadd.f32 %v3169_v45, %v7793_v60  ;;  %v3148_v55 = vrot.slane %v7199_v33, 2 }
 0x7bf   :  { %5237 = vpow2.f32 %v4304_v1  ;;  %v3237_v28 = vadd.f32 %v3173_v63, %v7795_v14  ;;  %v3152_v34 = vrot.slane %v7199_v33, 3  ;;  %v3156_v39 = vrot.slane %v7199_v33, 4 }
 0x7c0   :  { %5239 = vpow2.f32 %v4306_v42  ;;  %v3160_v4 = vrot.slane %v7199_v33, 5  ;;  %v3164_v50 = vrot.slane %v7199_v33, 6  ;;  %v3168_v24 = vrot.slane %v7199_v33, 7 }
 0x7c1   :  { %5241 = vtanh.f32 %v3209_v12  ;;  %v3208_v35 = vadd.f32 %v3148_v55, %v7796_v10  ;;  %v3172_v26 = vrot.slane %v7199_v33, 1  ;;  %v3212_v11 = vadd.f32 %v3152_v34, %v7797_v53  ;;  %v7800_v12 = vld [vmem:[#allocation31_spill] sm:$0xff] }
 0x7c2   :  { %5243 = vtanh.f32 %v3213_v2  ;;  %v3216_v1 = vadd.f32 %v3156_v39, %v7798_v58  ;;  %v3220_v42 = vadd.f32 %v3160_v4, %v7799_v32  ;;  %v3224_v45 = vadd.f32 %v3164_v50, %v7800_v12  ;;  %v7801_v2 = vld [vmem:[#allocation33_spill] sm:$0xff] }
 0x7c3   :  { %5245 = vtanh.f32 %v3217_v46  ;;  %v3228_v46 = vadd.f32 %v3168_v24, %v7801_v2  ;;  %v4308_v55 = vmul.f32 -1.442695, %v3212_v11  ;;  %v3158_v4 = vrot.slane %v7201_v40, 4 }
 0x7c4   :  { %5247 = vtanh.f32 %v3221_v7  ;;  %v4309_v39 = vmul.f32 -1.442695, %v3216_v1  ;;  %v4310_v24 = vmul.f32 -1.442695, %v3220_v42  ;;  %v7805_v1 = vld [vmem:[#allocation26_spill] sm:$0xff] }
 0x7c5   :  { %5249 = vtanh.f32 %v3225_v18  ;;  %v4307_v18 = vmul.f32 -1.442695, %v3208_v35  ;;  %v4311_v35 = vmul.f32 -1.442695, %v3224_v45 }
 0x7c6   :  { %v5226_v20 = vpop.eup %5225  ;;  %5251 = vtanh.f32 %v3229_v54  ;;  %v3150_v54 = vrot.slane %v7201_v40, 2 }
 0x7c7   :  { %v5228_v31 = vpop.eup %5227  ;;  %v3269_v8 = vadd.f32 1.0, %v5226_v20  ;;  %5253 = vtanh.f32 %v3233_v30  ;;  %v3154_v20 = vrot.slane %v7201_v40, 3 }
 0x7c8   :  { %v5230_v0 = vpop.eup %5229  ;;  %v3263_v41 = vadd.f32 1.0, %v5228_v31  ;;  %5255 = vtanh.f32 %v3237_v28  ;;  %v7802_v31 = vld [vmem:[#allocation35_spill] sm:$0xff] }
 0x7c9   :  { %v5232_v43 = vpop.eup %5231  ;;  %v3264_v27 = vadd.f32 1.0, %v5230_v0  ;;  %5257 = vrcp.f32 %v3269_v8  ;;  %v3232_v8 = vadd.f32 %v7199_v33, %v7802_v31 }
 0x7ca   :  { %v5234_v17 = vpop.eup %5233  ;;  %v3265_v36 = vadd.f32 1.0, %v5232_v43  ;;  %5259 = vrcp.f32 %v3263_v41  ;;  %v7803_v41 = vld [vmem:[#allocation37_spill] sm:$0xff]  ;;  %v3162_v43 = vrot.slane %v7201_v40, 5 }
 0x7cb   :  { %v5236_v44 = vpop.eup %5235  ;;  %v3266_v23 = vadd.f32 1.0, %v5234_v17  ;;  %5261 = vrcp.f32 %v3264_v27  ;;  %v3236_v50 = vadd.f32 %v3172_v26, %v7803_v41  ;;  %v3166_v17 = vrot.slane %v7201_v40, 6 }
 0x7cc   :  { %v5238_v3 = vpop.eup %5237  ;;  %v3267_v38 = vadd.f32 1.0, %v5236_v44  ;;  %5263 = vrcp.f32 %v3265_v36  ;;  %v7804_v36 = vld [vmem:[#allocation17_spill] sm:$0xff]  ;;  %v4312_v44 = vmul.f32 -1.442695, %v3228_v46  ;;  %v4313_v42 = vmul.f32 -1.442695, %v3232_v8 }
 0x7cd   :  { %v5240_v63 = vpop.eup %5239  ;;  %v3268_v7 = vadd.f32 1.0, %v5238_v3  ;;  %5265 = vrcp.f32 %v3266_v23  ;;  %v3210_v11 = vadd.f32 %v3150_v54, %v7804_v36  ;;  %v3170_v23 = vrot.slane %v7201_v40, 7  ;;  %v7807_v54 = vld [vmem:[#allocation30_spill] sm:$0xff]  ;;  %v7808_v46 = vld [vmem:[#allocation32_spill] sm:$0xff] }
 0x7ce   :  { %v7232_v30 = vpop.eup %5241  ;;  %v3270_v28 = vadd.f32 1.0, %v5240_v63  ;;  %5267 = vrcp.f32 %v3267_v38  ;;  %v3214_v3 = vadd.f32 %v3154_v20, %v7805_v1  ;;  %v7806_v38 = vld [vmem:[#allocation28_spill] sm:$0xff]  ;;  %v4314_v45 = vmul.f32 -1.442695, %v3236_v50  ;;  %v7809_v8 = vld [vmem:[#allocation34_spill] sm:$0xff] }
 0x7cf   :  { %v7235_v34 = vpop.eup %5243  ;;  %5269 = vrcp.f32 %v3268_v7  ;;  %v3218_v63 = vadd.f32 %v3158_v4, %v7806_v38  ;;  %v3226_v36 = vadd.f32 %v3166_v17, %v7808_v46  ;;  %v4315_v20 = vmul.f32 -1.442695, %v3210_v11  ;;  %v7810_v50 = vld [vmem:[#allocation36_spill] sm:$0xff] }
 0x7d0   :  { %v7240_v0 = vpop.eup %5245  ;;  %5271 = vrcp.f32 %v3270_v28  ;;  %v3222_v28 = vadd.f32 %v3162_v43, %v7807_v54  ;;  %v4316_v4 = vmul.f32 -1.442695, %v3214_v3 }
 0x7d1   :  { %v7244_v27 = vpop.eup %5247  ;;  %5273 = vpow2.f32 %v4307_v18  ;;  %v3174_v18 = vrot.slane %v7201_v40, 1  ;;  %v4317_v41 = vmul.f32 -1.442695, %v3218_v63 }
 0x7d2   :  { %v7248_v33 = vpop.eup %5249  ;;  %5275 = vpow2.f32 %v4308_v55  ;;  %v4318_v17 = vmul.f32 -1.442695, %v3222_v28 }
 0x7d3   :  { %v7252_v26 = vpop.eup %5251  ;;  %5277 = vpow2.f32 %v4309_v39  ;;  %v3230_v39 = vadd.f32 %v3170_v23, %v7809_v8 }
 0x7d4   :  { %v7255_v7 = vpop.eup %5253  ;;  %5279 = vpow2.f32 %v4310_v24  ;;  %v3234_v24 = vadd.f32 %v7201_v40, %v7810_v50 }
 0x7d5   :  { %v7259_v55 = vpop.eup %5255  ;;  %5281 = vpow2.f32 %v4311_v35  ;;  %v7811_v35 = vld [vmem:[#allocation38_spill] sm:$0xff]  ;;  %v4320_v23 = vmul.f32 -1.442695, %v3230_v39 }
 0x7d6   :  { %v7262_v1 = vpop.eup %5257  ;;  %5283 = vpow2.f32 %v4312_v44  ;;  %v3238_v54 = vadd.f32 %v3174_v18, %v7811_v35  ;;  %v4319_v44 = vmul.f32 -1.442695, %v3226_v36 }
 0x7d7   :  { %v7265_v38 = vpop.eup %5259  ;;  %5285 = vpow2.f32 %v4313_v42  ;;  %v4321_v42 = vmul.f32 -1.442695, %v3234_v24 }
 0x7d8   :  { %v7269_v43 = vpop.eup %5261  ;;  %5287 = vpow2.f32 %v4314_v45  ;;  %v4322_v63 = vmul.f32 -1.442695, %v3238_v54 }
 0x7d9   :  { %v7272_v11 = vpop.eup %5263  ;;  %5289 = vpow2.f32 %v4315_v20 }
 0x7da   :  { %v7274_v46 = vpop.eup %5265  ;;  %5291 = vpow2.f32 %v4316_v4 }
 0x7db   :  { %v7276_v3 = vpop.eup %5267  ;;  %5293 = vpow2.f32 %v4317_v41 }
 0x7dc   :  { %v7278_v40 = vpop.eup %5269  ;;  %5295 = vpow2.f32 %v4318_v17 }
 0x7dd   :  { %v7280_v45 = vpop.eup %5271  ;;  %5297 = vpow2.f32 %v4319_v44 }
 0x7de   :  { %v5274_v18 = vpop.eup %5273  ;;  %5299 = vpow2.f32 %v4320_v23 }
 0x7df   :  { %v5276_v28 = vpop.eup %5275  ;;  %v3311_v20 = vadd.f32 1.0, %v5274_v18  ;;  %5301 = vpow2.f32 %v4321_v42 }
 0x7e0   :  { %v5278_v36 = vpop.eup %5277  ;;  %v3312_v35 = vadd.f32 1.0, %v5276_v28  ;;  %5303 = vpow2.f32 %v4322_v63 }
 0x7e1   :  { %v5280_v39 = vpop.eup %5279  ;;  %v3313_v4 = vadd.f32 1.0, %v5278_v36  ;;  %5305 = vrcp.f32 %v3311_v20 }
 0x7e2   :  { %v5282_v41 = vpop.eup %5281  ;;  %v3314_v24 = vadd.f32 1.0, %v5280_v39  ;;  %5307 = vrcp.f32 %v3312_v35 }
 0x7e3   :  { %v5284_v50 = vpop.eup %5283  ;;  %v3315_v17 = vadd.f32 1.0, %v5282_v41  ;;  %5309 = vrcp.f32 %v3313_v4 }
 0x7e4   :  { %v5286_v54 = vpop.eup %5285  ;;  %v3316_v8 = vadd.f32 1.0, %v5284_v50  ;;  %5311 = vrcp.f32 %v3314_v24  ;;  %v3399_v24 = vrot.slane %v7137_v15, 7  ;;  %v3405_v15 = vrot.slane %v7163_v21, 7 }
 0x7e5   :  { %v5288_v44 = vpop.eup %5287  ;;  %v3317_v23 = vadd.f32 1.0, %v5286_v54  ;;  %5313 = vrcp.f32 %v3315_v17  ;;  %v3400_v17 = vrot.slane %v7141_v22, 7  ;;  %v3423_v22 = vmul.f32 %v7265_v38, %v7232_v30 }
 0x7e6   :  { %v5290_v18 = vpop.eup %5289  ;;  %v3318_v42 = vadd.f32 1.0, %v5288_v44  ;;  %5315 = vrcp.f32 %v3316_v8  ;;  %v3402_v44 = vrot.slane %v7150_v16, 7 }
 0x7e7   :  { %v5292_v28 = vpop.eup %5291  ;;  %5317 = vrcp.f32 %v3317_v23  ;;  %v3367_v63 = vadd.f32 1.0, %v5290_v18  ;;  %v3401_v23 = vrot.slane %v7145_v9, 7  ;;  %v3406_v9 = vrot.slane %v7166_v13, 7 }
 0x7e8   :  { %v5294_v36 = vpop.eup %5293  ;;  %5319 = vrcp.f32 %v3318_v42  ;;  %v3368_v20 = vadd.f32 1.0, %v5292_v28  ;;  %v3403_v28 = vrot.slane %v7155_v37, 7 }
 0x7e9   :  { %v5296_v39 = vpop.eup %5295  ;;  %v3369_v35 = vadd.f32 1.0, %v5294_v36  ;;  %5321 = vrcp.f32 %v3367_v63 }
 0x7ea   :  { %v5298_v31 = vpop.eup %5297  ;;  %v3370_v41 = vadd.f32 1.0, %v5296_v39  ;;  %5323 = vrcp.f32 %v3368_v20  ;;  %v3424_v39 = vmul.f32 %v7269_v43, %v7235_v34  ;;  %v3427_v34 = vmul.f32 %v7276_v3, %v7248_v33 }
 0x7eb   :  { %v5300_v4 = vpop.eup %5299  ;;  %v3371_v2 = vadd.f32 1.0, %v5298_v31  ;;  %5325 = vrcp.f32 %v3369_v35  ;;  %v3404_v31 = vrot.slane %v7160_v47, 7  ;;  %v3425_v47 = vmul.f32 %v7272_v11, %v7240_v0 }
 0x7ec   :  { %v5302_v50 = vpop.eup %5301  ;;  %v3372_v54 = vadd.f32 1.0, %v5300_v4  ;;  %5327 = vrcp.f32 %v3370_v41 }
 0x7ed   :  { %v5304_v8 = vpop.eup %5303  ;;  %v3373_v18 = vadd.f32 1.0, %v5302_v50  ;;  %5329 = vrcp.f32 %v3371_v2  ;;  %v3426_v2 = vmul.f32 %v7274_v46, %v7244_v27 }
 0x7ee   :  { %v5306_v42 = vpop.eup %5305  ;;  %v3374_v63 = vadd.f32 1.0, %v5304_v8  ;;  %5331 = vrcp.f32 %v3372_v54  ;;  %v3429_v54 = vmul.f32 %v7262_v1, %v7255_v7  ;;  %v3430_v8 = vmul.f32 %v7280_v45, %v7259_v55 }
 0x7ef   :  { %v5308_v36 = vpop.eup %5307  ;;  %v3415_v20 = vmul.f32 %v5306_v42, %v3399_v24  ;;  %5333 = vrcp.f32 %v3373_v18  ;;  %v3428_v24 = vmul.f32 %v7278_v40, %v7252_v26 }
 0x7f0   :  { %v5310_v16 = vpop.eup %5309  ;;  %v3416_v35 = vmul.f32 %v5308_v36, %v3400_v17  ;;  %5335 = vrcp.f32 %v3374_v63 }
 0x7f1   :  { %v5312_v37 = vpop.eup %5311  ;;  %v3417_v41 = vmul.f32 %v5310_v16, %v3401_v23  ;;  %v7296_v4 = vadd.f32 %v3423_v22, %v3415_v20 }
 0x7f2   :  { %v5314_v21 = vpop.eup %5313  ;;  %v7300_v30 = vadd.f32 %v3424_v39, %v3416_v35  ;;  %v3418_v13 = vmul.f32 %v5312_v37, %v3402_v44 }
 0x7f3   :  { %v5316_v38 = vpop.eup %5315  ;;  %v3419_v43 = vmul.f32 %v5314_v21, %v3403_v28  ;;  %v7304_v50 = vadd.f32 %v3425_v47, %v3417_v41  ;;  %5337 = vtanh.f32 %v7296_v4 }
 0x7f4   :  { %v5318_v0 = vpop.eup %5317  ;;  %v3420_v11 = vmul.f32 %v5316_v38, %v3404_v31  ;;  %v7309_v17 = vadd.f32 %v3426_v2, %v3418_v13  ;;  %5339 = vtanh.f32 %v7300_v30 }
 0x7f5   :  { %v5320_v27 = vpop.eup %5319  ;;  %v3421_v46 = vmul.f32 %v5318_v0, %v3405_v15  ;;  %v7314_v33 = vadd.f32 %v3427_v34, %v3419_v43  ;;  %5341 = vtanh.f32 %v7304_v50 }
 0x7f6   :  { %v3422_v3 = vmul.f32 %v5320_v27, %v3406_v9  ;;  %v7319_v44 = vadd.f32 %v3428_v24, %v3420_v11  ;;  %5343 = vtanh.f32 %v7309_v17  ;;  %v5322_v40 = vpop.eup %5321 }
 0x7f7   :  { %v7322_v26 = vadd.f32 %v3429_v54, %v3421_v46  ;;  %5345 = vtanh.f32 %v7314_v33  ;;  %v5324_v1 = vpop.eup %5323 }
 0x7f8   :  { %v7325_v23 = vadd.f32 %v3430_v8, %v3422_v3  ;;  %5347 = vtanh.f32 %v7319_v44  ;;  %v5326_v7 = vpop.eup %5325 }
 0x7f9   :  { %5349 = vtanh.f32 %v7322_v26  ;;  %v5328_v55 = vpop.eup %5327 }
 0x7fa   :  { %5351 = vtanh.f32 %v7325_v23  ;;  %v5330_v45 = vpop.eup %5329 }
 0x7fb   :  { %v5332_v18 = vpop.eup %5331 }
 0x7fc   :  { %v5334_v42 = vpop.eup %5333 }
 0x7fd   :  { %v5336_v28 = vpop.eup %5335 }
 0x800   :  { %v5338_v31 = vpop.eup %5337 }
 0x801   :  { %v5340_v63 = vpop.eup %5339  ;;  %v3447_v36 = vmul.f32 %v5338_v31, %v5322_v40 }
 0x802   :  { %v5342_v15 = vpop.eup %5341  ;;  %v3448_v22 = vmul.f32 %v5340_v63, %v5324_v1 }
 0x803   :  { %v5344_v20 = vpop.eup %5343  ;;  %v3449_v16 = vmul.f32 %v5342_v15, %v5326_v7  ;;  %v3455_v9 = vpack.c.bf16 %v3447_v36, %v3447_v36 }
 0x804   :  { %v5346_v39 = vpop.eup %5345  ;;  %v3450_v35 = vmul.f32 %v5344_v20, %v5328_v55  ;;  %v3456_v37 = vpack.c.bf16 %v3448_v22, %v3448_v22 }
 0x805   :  { %v5348_v47 = vpop.eup %5347  ;;  %v3451_v41 = vmul.f32 %v5346_v39, %v5330_v45  ;;  %v3457_v21 = vpack.c.bf16 %v3449_v16, %v3449_v16  ;;  %v3471_v2 = vunpack.c.l.b16 %v3455_v9 }
 0x806   :  { %v5350_v13 = vpop.eup %5349  ;;  %v3452_v38 = vmul.f32 %v5348_v47, %v5332_v18  ;;  %v3458_v34 = vpack.c.bf16 %v3450_v35, %v3450_v35  ;;  %v3472_v43 = vunpack.c.l.b16 %v3456_v37 }
 0x807   :  { %v5352_v0 = vpop.eup %5351  ;;  %v3453_v11 = vmul.f32 %v5350_v13, %v5334_v42  ;;  %v3459_v24 = vpack.c.bf16 %v3451_v41, %v3451_v41  ;;  %v3473_v27 = vunpack.c.l.b16 %v3457_v21  ;;  %v3479_v46 = vrot.slane %v3471_v2, 6  ;;  %v4449_v41 = vld [vmem:[%s7514_s4 + $0x38] sm:$0xff]   ;;  %v4450_v2 = vld [vmem:[%s7514_s4 + $0x30] sm:$0xff]   ;;  %v4451_v13 = vld [vmem:[%s7514_s4 + $0x28] sm:$0xff]  }
 0x808   :  { %v3454_v54 = vmul.f32 %v5352_v0, %v5336_v28  ;;  %v3460_v3 = vpack.c.bf16 %v3452_v38, %v3452_v38  ;;  %v3474_v8 = vunpack.c.l.b16 %v3458_v34  ;;  %v3480_v40 = vrot.slane %v3472_v43, 5  ;;  %v4452_v38 = vld [vmem:[%s7514_s4 + $0x20] sm:$0xff]   ;;  %v4453_v34 = vld [vmem:[%s7514_s4 + $0x18] sm:$0xff]   ;;  %v4454_v43 = vld [vmem:[%s7514_s4 + $0x10] sm:$0xff]  }
 0x809   :  { %v3461_v1 = vpack.c.bf16 %v3453_v11, %v3453_v11  ;;  %v3475_v7 = vunpack.c.l.b16 %v3459_v24  ;;  %v3482_v55 = vrot.slane %v3473_v27, 4  ;;  %v5603_v21 = vmov 0.0   ;;  %v4455_v0 = vld [vmem:[%s7514_s4 + $0x8] sm:$0xff]   ;;  %v4456_v11 = vld [vmem:[%s7514_s4] sm:$0xff]  }
 0x80a   :  { %v3462_v31 = vpack.c.bf16 %v3454_v54, %v3454_v54  ;;  %v3476_v45 = vunpack.c.l.b16 %v3460_v3  ;;  %v3481_v63 = vsel %vm869_vm1, %v3480_v40, %v3479_v46  ;;  %v3484_v36 = vrot.slane %v3474_v8, 3  ;;  %4369 = vmatprep.subr.bf16.mxu0 %v5603_v21 }
 0x80b   :  { %v3483_v18 = vsel %vm872_vm2, %v3482_v55, %v3481_v63  ;;  %v3486_v15 = vrot.slane %v3475_v7, 2  ;;  %v3477_v16 = vunpack.c.l.b16 %v3461_v1 }
 0x80c   :  { %v3478_v22 = vunpack.c.l.b16 %v3462_v31  ;;  %v3485_v42 = vsel %vm875_vm3, %v3484_v36, %v3483_v18  ;;  %v3488_v20 = vrot.slane %v3476_v45, 1 }
 0x80d   :  { %v3487_v28 = vsel %vm878_vm4, %v3486_v15, %v3485_v42 }
 0x80e   :  { %v3489_v9 = vsel %vm881_vm5, %v3488_v20, %v3487_v28  ;;  %v3491_v39 = vrot.slane %v3478_v22, 7 }
 0x80f   :  { %v3490_v35 = vsel %vm884_vm6, %v3477_v16, %v3489_v9 }
 0x810   :  { %v3492_v37 = vsel %vm887_vm7, %v3491_v39, %v3490_v35 }
 0x811   :  { %v3493_v47 = vpack.c.b16 %v3492_v37, %v3492_v37 }
 0x813   :  { %3528 = vmatmul.mubr.bf16.vlgmr.msra.gmra.mxu0 %v3493_v47  ;;  %3569 = vmatmul.mubr.bf16.vlgmr.msra.gmra.mxu1 %v3493_v47 }
 0x814   :  { %4385 = vmatprep.mubr.msk.bf16.mxu0 %vm5604_vm8, %v5603_v21  ;;  %4370 = vmatpush3.bf16.msra.mxu0 %v4449_v41 }
 0x815   :  { %4371 = vmatprep.subr.bf16.mxu0 %v5603_v21 }
 0x818   :  { %4372 = vmatpush3.bf16.msra.mxu0 %v4450_v2 }
 0x819   :  { %4373 = vmatprep.subr.bf16.mxu0 %v5603_v21 }
 0x81c   :  { %4374 = vmatpush3.bf16.msra.mxu0 %v4451_v13 }
 0x81d   :  { %4375 = vmatprep.subr.bf16.mxu0 %v5603_v21 }
 0x820   :  { %4376 = vmatpush3.bf16.msra.mxu0 %v4452_v38 }
 0x821   :  { %4377 = vmatprep.subr.bf16.mxu0 %v5603_v21 }
 0x824   :  { %4378 = vmatpush3.bf16.msra.mxu0 %v4453_v34 }
 0x825   :  { %4379 = vmatprep.subr.bf16.mxu0 %v5603_v21 }
 0x828   :  { %4380 = vmatpush3.bf16.msra.mxu0 %v4454_v43 }
 0x829   :  { %4381 = vmatprep.subr.bf16.mxu0 %v5603_v21 }
 0x82c   :  { %4382 = vmatpush3.bf16.msra.mxu0 %v4455_v0 }
 0x82d   :  { %4383 = vmatprep.subr.bf16.mxu0 %v5603_v21 }
 0x830   :  { %4384 = vmatpush3.bf16.msra.mxu0 %v4456_v11 }
 0x8d3   :  { %v3529_v24 = vpop.f32.mrf.mxu0  ;;  %v3570_v27 = vpop.f32.mrf.mxu1 }
 0x8d4   :  { %v3581_v46 = vrot.slane %v3529_v24, 1  ;;  %v3585_v54 = vrot.slane %v3529_v24, 2  ;;  %v3589_v3 = vrot.slane %v3529_v24, 3  ;;  %v3593_v8 = vrot.slane %v3529_v24, 4 }
 0x8d5   :  { %v3597_v40 = vrot.slane %v3529_v24, 5  ;;  %v3601_v1 = vrot.slane %v3529_v24, 6  ;;  %v3605_v7 = vrot.slane %v3529_v24, 7  ;;  %v3669_v55 = vadd.f32 %v3529_v24, %v7787_v19  ;;  %v7362_v31 = vpop.f32.mrf.mxu0  ;;  %v7364_v45 = vpop.f32.mrf.mxu1 }
 0x8d6   :  { %v3641_v63 = vadd.f32 %v3581_v46, %v7727_v52  ;;  %v3645_v36 = vadd.f32 %v3585_v54, %v7782_v59  ;;  %v3649_v18 = vadd.f32 %v3589_v3, %v7783_v56  ;;  %v3653_v15 = vadd.f32 %v3593_v8, %v7784_v6 }
 0x8d7   :  { %v3657_v22 = vadd.f32 %v3597_v40, %v7785_v25  ;;  %v3661_v42 = vadd.f32 %v3601_v1, %v7786_v48  ;;  %v4330_v20 = vmul.f32 -1.442695, %v3669_v55  ;;  %v3533_v16 = vpop.f32.mrf.mxu0  ;;  %v3574_v28 = vpop.f32.mrf.mxu1  ;;  %v3665_v19 = vadd.f32 %v3605_v7, %v7732_v29 }
 0x8d8   :  { %v4323_v9 = vmul.f32 -1.442695, %v3641_v63  ;;  %v4324_v39 = vmul.f32 -1.442695, %v3645_v36  ;;  %v4325_v35 = vmul.f32 -1.442695, %v3649_v18 }
 0x8d9   :  { %v4326_v37 = vmul.f32 -1.442695, %v3653_v15  ;;  %5353 = vpow2.f32 %v4330_v20  ;;  %v3534_v52 = vpop.f32.mrf.mxu0  ;;  %v3575_v59 = vpop.f32.mrf.mxu1  ;;  %v4327_v56 = vmul.f32 -1.442695, %v3657_v22  ;;  %v3583_v47 = vrot.slane %v3570_v27, 1 }
 0x8da   :  { %5355 = vpow2.f32 %v4323_v9  ;;  %v3587_v6 = vrot.slane %v3570_v27, 2  ;;  %v4328_v25 = vmul.f32 -1.442695, %v3661_v42  ;;  %v3591_v41 = vrot.slane %v3570_v27, 3 }
 0x8db   :  { %5357 = vpow2.f32 %v4324_v39  ;;  %v4329_v48 = vmul.f32 -1.442695, %v3665_v19  ;;  %v3595_v21 = vrot.slane %v3570_v27, 4  ;;  %v3599_v2 = vrot.slane %v3570_v27, 5 }
 0x8dc   :  { %5359 = vpow2.f32 %v4325_v35  ;;  %v3643_v29 = vadd.f32 %v3583_v47, %v7788_v5  ;;  %v3603_v13 = vrot.slane %v3570_v27, 6  ;;  %v3647_v38 = vadd.f32 %v3587_v6, %v7789_v49  ;;  %v7813_v47 = vld [vmem:[#allocation35_spill] sm:$0xff] }
 0x8dd   :  { %5361 = vpow2.f32 %v4326_v37  ;;  %v3607_v34 = vrot.slane %v3570_v27, 7  ;;  %v3651_v43 = vadd.f32 %v3591_v41, %v7790_v61  ;;  %v3655_v0 = vadd.f32 %v3595_v21, %v7791_v51 }
 0x8de   :  { %5363 = vpow2.f32 %v4327_v56  ;;  %v3659_v11 = vadd.f32 %v3599_v2, %v7792_v57  ;;  %v3663_v24 = vadd.f32 %v3603_v13, %v7793_v60  ;;  %v3671_v5 = vadd.f32 %v3570_v27, %v7795_v14 }
 0x8df   :  { %5365 = vpow2.f32 %v4328_v25  ;;  %v3667_v46 = vadd.f32 %v3607_v34, %v7794_v62  ;;  %v3582_v49 = vrot.slane %v7362_v31, 1  ;;  %v3586_v61 = vrot.slane %v7362_v31, 2 }
 0x8e0   :  { %5367 = vpow2.f32 %v4329_v48  ;;  %v3590_v57 = vrot.slane %v7362_v31, 3  ;;  %v3594_v60 = vrot.slane %v7362_v31, 4  ;;  %v3598_v14 = vrot.slane %v7362_v31, 5  ;;  %v7814_v48 = vld [vmem:[#allocation37_spill] sm:$0xff] }
 0x8e1   :  { %5369 = vtanh.f32 %v3643_v29  ;;  %v3602_v27 = vrot.slane %v7362_v31, 6  ;;  %v3642_v7 = vadd.f32 %v3582_v49, %v7796_v10  ;;  %v3606_v36 = vrot.slane %v7362_v31, 7  ;;  %v7812_v10 = vld [vmem:[#allocation33_spill] sm:$0xff] }
 0x8e2   :  { %5371 = vtanh.f32 %v3647_v38  ;;  %v3646_v18 = vadd.f32 %v3586_v61, %v7797_v53  ;;  %v3650_v42 = vadd.f32 %v3590_v57, %v7798_v58  ;;  %v3654_v20 = vadd.f32 %v3594_v60, %v7799_v32 }
 0x8e3   :  { %5373 = vtanh.f32 %v3651_v43  ;;  %v3658_v19 = vadd.f32 %v3598_v14, %v7800_v12  ;;  %v3662_v9 = vadd.f32 %v3602_v27, %v7812_v10  ;;  %v4331_v37 = vmul.f32 -1.442695, %v3642_v7  ;;  %v7815_v43 = vld [vmem:[#allocation17_spill] sm:$0xff]  ;;  %v7819_v27 = vld [vmem:[#allocation32_spill] sm:$0xff] }
 0x8e4   :  { %5375 = vtanh.f32 %v3655_v0  ;;  %v3584_v53 = vrot.slane %v7364_v45, 1  ;;  %v4332_v58 = vmul.f32 -1.442695, %v3646_v18  ;;  %v3588_v32 = vrot.slane %v7364_v45, 2 }
 0x8e5   :  { %5377 = vtanh.f32 %v3659_v11  ;;  %v3666_v12 = vadd.f32 %v3606_v36, %v7813_v47  ;;  %v4333_v6 = vmul.f32 -1.442695, %v3650_v42  ;;  %v3592_v25 = vrot.slane %v7364_v45, 3 }
 0x8e6   :  { %v5354_v54 = vpop.eup %5353  ;;  %5379 = vtanh.f32 %v3663_v24  ;;  %v3670_v21 = vadd.f32 %v7362_v31, %v7814_v48  ;;  %v4334_v2 = vmul.f32 -1.442695, %v3654_v20  ;;  %v3596_v29 = vrot.slane %v7364_v45, 4 }
 0x8e7   :  { %v5356_v51 = vpop.eup %5355  ;;  %v3704_v3 = vadd.f32 1.0, %v5354_v54  ;;  %5381 = vtanh.f32 %v3667_v46  ;;  %v4335_v38 = vmul.f32 -1.442695, %v3658_v19  ;;  %v3600_v34 = vrot.slane %v7364_v45, 5 }
 0x8e8   :  { %v5358_v8 = vpop.eup %5357  ;;  %v3697_v62 = vadd.f32 1.0, %v5356_v51  ;;  %5383 = vtanh.f32 %v3671_v5  ;;  %v3644_v0 = vadd.f32 %v3584_v53, %v7815_v43  ;;  %v4336_v24 = vmul.f32 -1.442695, %v3662_v9  ;;  %v7816_v5 = vld [vmem:[#allocation26_spill] sm:$0xff]  ;;  %v7817_v51 = vld [vmem:[#allocation28_spill] sm:$0xff] }
 0x8e9   :  { %v5360_v40 = vpop.eup %5359  ;;  %v3698_v1 = vadd.f32 1.0, %v5358_v8  ;;  %5385 = vrcp.f32 %v3704_v3  ;;  %v3604_v46 = vrot.slane %v7364_v45, 6  ;;  %v3648_v49 = vadd.f32 %v3588_v32, %v7816_v5  ;;  %v7818_v8 = vld [vmem:[#allocation30_spill] sm:$0xff] }
 0x8ea   :  { %v5362_v55 = vpop.eup %5361  ;;  %v3699_v63 = vadd.f32 1.0, %v5360_v40  ;;  %5387 = vrcp.f32 %v3697_v62  ;;  %v4337_v54 = vmul.f32 -1.442695, %v3666_v12  ;;  %v3608_v61 = vrot.slane %v7364_v45, 7 }
 0x8eb   :  { %v5364_v15 = vpop.eup %5363  ;;  %v3700_v22 = vadd.f32 1.0, %v5362_v55  ;;  %5389 = vrcp.f32 %v3698_v1  ;;  %v3652_v3 = vadd.f32 %v3592_v25, %v7817_v51  ;;  %v4338_v60 = vmul.f32 -1.442695, %v3670_v21  ;;  %v7820_v55 = vld [vmem:[#allocation34_spill] sm:$0xff] }
 0x8ec   :  { %v5366_v16 = vpop.eup %5365  ;;  %v3701_v28 = vadd.f32 1.0, %v5364_v15  ;;  %5391 = vrcp.f32 %v3699_v63  ;;  %v3656_v62 = vadd.f32 %v3596_v29, %v7818_v8  ;;  %v3660_v40 = vadd.f32 %v3600_v34, %v7819_v27  ;;  %v7821_v15 = vld [vmem:[#allocation36_spill] sm:$0xff] }
 0x8ed   :  { %v5368_v39 = vpop.eup %5367  ;;  %v3702_v35 = vadd.f32 1.0, %v5366_v16  ;;  %5393 = vrcp.f32 %v3700_v22  ;;  %v4339_v1 = vmul.f32 -1.442695, %v3644_v0  ;;  %v3664_v63 = vadd.f32 %v3604_v46, %v7820_v55  ;;  %v7822_v16 = vld [vmem:[#allocation38_spill] sm:$0xff] }
 0x8ee   :  { %v7395_v52 = vpop.eup %5369  ;;  %v3703_v59 = vadd.f32 1.0, %v5368_v39  ;;  %5395 = vrcp.f32 %v3701_v28  ;;  %v4340_v36 = vmul.f32 -1.442695, %v3648_v49  ;;  %v3668_v22 = vadd.f32 %v3608_v61, %v7821_v15 }
 0x8ef   :  { %v7398_v56 = vpop.eup %5371  ;;  %5397 = vrcp.f32 %v3702_v35  ;;  %v4341_v42 = vmul.f32 -1.442695, %v3652_v3  ;;  %v3672_v28 = vadd.f32 %v7364_v45, %v7822_v16  ;;  %v4342_v19 = vmul.f32 -1.442695, %v3656_v62 }
 0x8f0   :  { %v7402_v41 = vpop.eup %5373  ;;  %5399 = vrcp.f32 %v3703_v59  ;;  %v4343_v9 = vmul.f32 -1.442695, %v3660_v40  ;;  %v4344_v35 = vmul.f32 -1.442695, %v3664_v63  ;;  %v4345_v53 = vmul.f32 -1.442695, %v3668_v22 }
 0x8f1   :  { %v7407_v13 = vpop.eup %5375  ;;  %5401 = vpow2.f32 %v4331_v37  ;;  %v3833_v27 = vrot.slane %v7296_v4, 7  ;;  %v3834_v40 = vrot.slane %v7300_v30, 7  ;;  %v3836_v63 = vrot.slane %v7309_v17, 7 }
 0x8f2   :  { %v7411_v11 = vpop.eup %5377  ;;  %5403 = vpow2.f32 %v4332_v58  ;;  %v4346_v58 = vmul.f32 -1.442695, %v3672_v28  ;;  %v3838_v16 = vrot.slane %v7319_v44, 7  ;;  %v3839_v4 = vrot.slane %v7322_v26, 7 }
 0x8f3   :  { %v7415_v31 = vpop.eup %5379  ;;  %5405 = vpow2.f32 %v4333_v6  ;;  %v3840_v30 = vrot.slane %v7325_v23, 7 }
 0x8f4   :  { %v7419_v57 = vpop.eup %5381  ;;  %5407 = vpow2.f32 %v4334_v2 }
 0x8f5   :  { %v7422_v14 = vpop.eup %5383  ;;  %5409 = vpow2.f32 %v4335_v38 }
 0x8f6   :  { %v7425_v7 = vpop.eup %5385  ;;  %5411 = vpow2.f32 %v4336_v24 }
 0x8f7   :  { %v7428_v18 = vpop.eup %5387  ;;  %5413 = vpow2.f32 %v4337_v54 }
 0x8f8   :  { %v7431_v20 = vpop.eup %5389  ;;  %5415 = vpow2.f32 %v4338_v60 }
 0x8f9   :  { %v7435_v10 = vpop.eup %5391  ;;  %5417 = vpow2.f32 %v4339_v1  ;;  %v3858_v44 = vmul.f32 %v7431_v20, %v7398_v56 }
 0x8fa   :  { %v7437_v39 = vpop.eup %5393  ;;  %5419 = vpow2.f32 %v4340_v36  ;;  %v3835_v36 = vrot.slane %v7304_v50, 7  ;;  %v3864_v50 = vmul.f32 %v7425_v7, %v7422_v14  ;;  %v3859_v23 = vmul.f32 %v7435_v10, %v7402_v41 }
 0x8fb   :  { %v7439_v37 = vpop.eup %5395  ;;  %5421 = vpow2.f32 %v4341_v42  ;;  %v3837_v42 = vrot.slane %v7314_v33, 7  ;;  %v3857_v33 = vmul.f32 %v7428_v18, %v7395_v52 }
 0x8fc   :  { %v7441_v59 = vpop.eup %5397  ;;  %5423 = vpow2.f32 %v4342_v19  ;;  %v3861_v7 = vmul.f32 %v7439_v37, %v7411_v11 }
 0x8fd   :  { %v7443_v32 = vpop.eup %5399  ;;  %5425 = vpow2.f32 %v4343_v9  ;;  %v3862_v56 = vmul.f32 %v7441_v59, %v7415_v31 }
 0x8fe   :  { %v5402_v45 = vpop.eup %5401  ;;  %5427 = vpow2.f32 %v4344_v35 }
 0x8ff   :  { %v5404_v47 = vpop.eup %5403  ;;  %v3745_v12 = vadd.f32 1.0, %v5402_v45  ;;  %5429 = vpow2.f32 %v4345_v53  ;;  %v3860_v45 = vmul.f32 %v7437_v39, %v7407_v13  ;;  %v3863_v13 = vmul.f32 %v7443_v32, %v7419_v57 }
 0x900   :  { %v5406_v6 = vpop.eup %5405  ;;  %v3746_v25 = vadd.f32 1.0, %v5404_v47  ;;  %5431 = vpow2.f32 %v4346_v58 }
 0x901   :  { %v5408_v48 = vpop.eup %5407  ;;  %v3747_v21 = vadd.f32 1.0, %v5406_v6  ;;  %5433 = vrcp.f32 %v3745_v12 }
 0x902   :  { %v5410_v2 = vpop.eup %5409  ;;  %v3748_v29 = vadd.f32 1.0, %v5408_v48  ;;  %5435 = vrcp.f32 %v3746_v25 }
 0x903   :  { %v5412_v38 = vpop.eup %5411  ;;  %v3749_v34 = vadd.f32 1.0, %v5410_v2  ;;  %5437 = vrcp.f32 %v3747_v21 }
 0x904   :  { %v5414_v43 = vpop.eup %5413  ;;  %v3750_v0 = vadd.f32 1.0, %v5412_v38  ;;  %5439 = vrcp.f32 %v3748_v29 }
 0x905   :  { %v5416_v24 = vpop.eup %5415  ;;  %v3751_v46 = vadd.f32 1.0, %v5414_v43  ;;  %5441 = vrcp.f32 %v3749_v34 }
 0x906   :  { %v5418_v5 = vpop.eup %5417  ;;  %v3752_v49 = vadd.f32 1.0, %v5416_v24  ;;  %5443 = vrcp.f32 %v3750_v0 }
 0x907   :  { %v5420_v54 = vpop.eup %5419  ;;  %5445 = vrcp.f32 %v3751_v46  ;;  %v3801_v61 = vadd.f32 1.0, %v5418_v5 }
 0x908   :  { %v5422_v51 = vpop.eup %5421  ;;  %5447 = vrcp.f32 %v3752_v49  ;;  %v3802_v3 = vadd.f32 1.0, %v5420_v54 }
 0x909   :  { %v5424_v60 = vpop.eup %5423  ;;  %v3803_v8 = vadd.f32 1.0, %v5422_v51  ;;  %5449 = vrcp.f32 %v3801_v61 }
 0x90a   :  { %v5426_v62 = vpop.eup %5425  ;;  %v3804_v1 = vadd.f32 1.0, %v5424_v60  ;;  %5451 = vrcp.f32 %v3802_v3 }
 0x90b   :  { %v5428_v55 = vpop.eup %5427  ;;  %v3805_v15 = vadd.f32 1.0, %v5426_v62  ;;  %5453 = vrcp.f32 %v3803_v8 }
 0x90c   :  { %v5430_v22 = vpop.eup %5429  ;;  %v3806_v28 = vadd.f32 1.0, %v5428_v55  ;;  %5455 = vrcp.f32 %v3804_v1 }
 0x90d   :  { %v5432_v19 = vpop.eup %5431  ;;  %v3807_v9 = vadd.f32 1.0, %v5430_v22  ;;  %5457 = vrcp.f32 %v3805_v15 }
 0x90e   :  { %v5434_v35 = vpop.eup %5433  ;;  %v3808_v17 = vadd.f32 1.0, %v5432_v19  ;;  %5459 = vrcp.f32 %v3806_v28 }
 0x90f   :  { %v5436_v53 = vpop.eup %5435  ;;  %v3849_v58 = vmul.f32 %v5434_v35, %v3833_v27  ;;  %5461 = vrcp.f32 %v3807_v9 }
 0x910   :  { %v5438_v26 = vpop.eup %5437  ;;  %v3850_v47 = vmul.f32 %v5436_v53, %v3834_v40  ;;  %5463 = vrcp.f32 %v3808_v17 }
 0x911   :  { %v5440_v14 = vpop.eup %5439  ;;  %v3851_v12 = vmul.f32 %v5438_v26, %v3835_v36  ;;  %v3865_v52 = vadd.f32 %v3857_v33, %v3849_v58 }
 0x912   :  { %v5442_v18 = vpop.eup %5441  ;;  %v3852_v20 = vmul.f32 %v5440_v14, %v3836_v63  ;;  %v3866_v6 = vadd.f32 %v3858_v44, %v3850_v47 }
 0x913   :  { %v5444_v41 = vpop.eup %5443  ;;  %v3853_v10 = vmul.f32 %v5442_v18, %v3837_v42  ;;  %v3867_v39 = vadd.f32 %v3859_v23, %v3851_v12  ;;  %5465 = vtanh.f32 %v3865_v52  ;;  %4092 = vst.msk [vmem:[%s7518_s8 - $0x7] sm:$0x80] %vm4065_vm9, %v3865_v52 }
 0x914   :  { %v5446_v11 = vpop.eup %5445  ;;  %v4077_v37 = vrot.slane %v3866_v6, 7  ;;  %v3854_v25 = vmul.f32 %v5444_v41, %v3838_v16  ;;  %v3868_v48 = vadd.f32 %v3860_v45, %v3852_v20  ;;  %5467 = vtanh.f32 %v3866_v6 }
 0x915   :  { %v5448_v31 = vpop.eup %5447  ;;  %v3855_v59 = vmul.f32 %v5446_v11, %v3839_v4  ;;  %v3869_v21 = vadd.f32 %v3861_v7, %v3853_v10  ;;  %5469 = vtanh.f32 %v3867_v39  ;;  %v4078_v2 = vrot.slane %v3867_v39, 6 }
 0x916   :  { %v3856_v29 = vmul.f32 %v5448_v31, %v3840_v30  ;;  %v3870_v38 = vadd.f32 %v3862_v56, %v3854_v25  ;;  %5471 = vtanh.f32 %v3868_v48  ;;  %v4080_v57 = vrot.slane %v3868_v48, 5  ;;  %v5450_v0 = vpop.eup %5449 }
 0x917   :  { %v3871_v32 = vadd.f32 %v3863_v13, %v3855_v59  ;;  %5473 = vtanh.f32 %v3869_v21  ;;  %v4079_v34 = vsel %vm869_vm1, %v4078_v2, %v4077_v37  ;;  %v4082_v43 = vrot.slane %v3869_v21, 4  ;;  %v5452_v49 = vpop.eup %5451 }
 0x918   :  { %v3872_v24 = vadd.f32 %v3864_v50, %v3856_v29  ;;  %5475 = vtanh.f32 %v3870_v38  ;;  %v4081_v46 = vsel %vm872_vm2, %v4080_v57, %v4079_v34  ;;  %v4084_v5 = vrot.slane %v3870_v38, 3  ;;  %v5454_v51 = vpop.eup %5453 }
 0x919   :  { %5477 = vtanh.f32 %v3871_v32  ;;  %v4083_v54 = vsel %vm875_vm3, %v4082_v43, %v4081_v46  ;;  %v4086_v61 = vrot.slane %v3871_v32, 2  ;;  %v5456_v8 = vpop.eup %5455 }
 0x91a   :  { %5479 = vtanh.f32 %v3872_v24  ;;  %v4085_v3 = vsel %vm878_vm4, %v4084_v5, %v4083_v54  ;;  %v4088_v60 = vrot.slane %v3872_v24, 1  ;;  %v5458_v27 = vpop.eup %5457 }
 0x91b   :  { %v4087_v62 = vsel %vm881_vm5, %v4086_v61, %v4085_v3  ;;  %v5460_v1 = vpop.eup %5459 }
 0x91c   :  { %v4089_v40 = vsel %vm884_vm6, %v4088_v60, %v4087_v62  ;;  %v5462_v55 = vpop.eup %5461 }
 0x91d   :  { %4093 = vst.msk [vmem:[%s7518_s8 + $0x1] sm:$0x7f] %vm4067_vm10, %v4089_v40  ;;  %v5464_v63 = vpop.eup %5463  ;;  %v4347_v40 = vld [vmem:[%s7515_s5] ss:$0 sm:$0xff] }
 0x920   :  { %v5466_v36 = vpop.eup %5465 }
 0x921   :  { %v5468_v15 = vpop.eup %5467  ;;  %v3881_v22 = vmul.f32 %v5466_v36, %v5450_v0 }
 0x922   :  { %v5470_v42 = vpop.eup %5469  ;;  %v3882_v16 = vmul.f32 %v5468_v15, %v5452_v49 }
 0x923   :  { %v5472_v28 = vpop.eup %5471  ;;  %v3883_v19 = vmul.f32 %v5470_v42, %v5454_v51  ;;  %v3889_v4 = vpack.c.bf16 %v3881_v22, %v3881_v22  ;;  %4066 = vst.msk [vmem:[%s7517_s7 - $0x7] sm:$0x80] %vm4065_vm9, %v3881_v22 }
 0x924   :  { %v5474_v30 = vpop.eup %5473  ;;  %v3884_v9 = vmul.f32 %v5472_v28, %v5456_v8  ;;  %v3890_v35 = vpack.c.bf16 %v3882_v16, %v3882_v16  ;;  %v4050_v17 = vrot.slane %v3882_v16, 7 }
 0x925   :  { %v5476_v50 = vpop.eup %5475  ;;  %v3885_v53 = vmul.f32 %v5474_v30, %v5458_v27  ;;  %v3891_v33 = vpack.c.bf16 %v3883_v19, %v3883_v19  ;;  %v3928_v44 = vunpack.c.l.b16 %v3889_v4  ;;  %v4051_v58 = vrot.slane %v3883_v19, 6 }
 0x926   :  { %v5478_v26 = vpop.eup %5477  ;;  %v3886_v23 = vmul.f32 %v5476_v50, %v5460_v1  ;;  %v3892_v45 = vpack.c.bf16 %v3884_v9, %v3884_v9  ;;  %v3929_v47 = vunpack.c.l.b16 %v3890_v35  ;;  %v4053_v14 = vrot.slane %v3884_v9, 5 }
 0x927   :  { %v5480_v7 = vpop.eup %5479  ;;  %v3887_v12 = vmul.f32 %v5478_v26, %v5462_v55  ;;  %v3893_v52 = vpack.c.bf16 %v3885_v53, %v3885_v53  ;;  %v3930_v18 = vunpack.c.l.b16 %v3891_v33  ;;  %v3936_v56 = vrot.slane %v3928_v44, 7 }
 0x928   :  { %v3888_v20 = vmul.f32 %v5480_v7, %v5464_v63  ;;  %v3894_v6 = vpack.c.bf16 %v3886_v23, %v3886_v23  ;;  %v3931_v41 = vunpack.c.l.b16 %v3892_v45  ;;  %v3937_v10 = vrot.slane %v3929_v47, 6 }
 0x929   :  { %v3895_v13 = vpack.c.bf16 %v3887_v12, %v3887_v12  ;;  %v3932_v39 = vunpack.c.l.b16 %v3893_v52  ;;  %v3939_v11 = vrot.slane %v3930_v18, 5  ;;  %v4052_v37 = vsel %vm869_vm1, %v4051_v58, %v4050_v17 }
 0x92a   :  { %v3896_v25 = vpack.c.bf16 %v3888_v20, %v3888_v20  ;;  %v3933_v48 = vunpack.c.l.b16 %v3894_v6  ;;  %v3938_v31 = vsel %vm869_vm1, %v3937_v10, %v3936_v56  ;;  %v3941_v59 = vrot.slane %v3931_v41, 4 }
 0x92b   :  { %v3934_v21 = vunpack.c.l.b16 %v3895_v13  ;;  %v3940_v2 = vsel %vm872_vm2, %v3939_v11, %v3938_v31  ;;  %v3943_v29 = vrot.slane %v3932_v39, 3  ;;  %v4054_v38 = vsel %vm872_vm2, %v4053_v14, %v4052_v37 }
 0x92c   :  { %v3942_v57 = vsel %vm875_vm3, %v3941_v59, %v3940_v2  ;;  %v3945_v32 = vrot.slane %v3933_v48, 2  ;;  %v4055_v34 = vrot.slane %v3885_v53, 4  ;;  %v4057_v24 = vrot.slane %v3886_v23, 3 }
 0x92d   :  { %v3944_v43 = vsel %vm878_vm4, %v3943_v29, %v3942_v57  ;;  %v3947_v0 = vrot.slane %v3934_v21, 1  ;;  %v3935_v46 = vunpack.c.l.b16 %v3896_v25  ;;  %v4059_v54 = vrot.slane %v3887_v12, 2 }
 0x92e   :  { %v3946_v5 = vsel %vm881_vm5, %v3945_v32, %v3944_v43  ;;  %v4056_v49 = vsel %vm875_vm3, %v4055_v34, %v4054_v38  ;;  %v4061_v3 = vrot.slane %v3888_v20, 1 }
 0x92f   :  { %v3948_v61 = vsel %vm884_vm6, %v3947_v0, %v3946_v5  ;;  %v4058_v51 = vsel %vm878_vm4, %v4057_v24, %v4056_v49 }
 0x930   :  { %v3949_v60 = vsel %vm887_vm7, %v3935_v46, %v3948_v61  ;;  %v4060_v8 = vsel %vm881_vm5, %v4059_v54, %v4058_v51 }
 0x931   :  { %v3950_v62 = vpack.c.b16 %v3949_v60, %v3949_v60  ;;  %v4062_v27 = vsel %vm884_vm6, %v4061_v3, %v4060_v8 }
 0x932   :  { %4068 = vst.msk [vmem:[%s7517_s7 + $0x1] sm:$0x7f] %vm4067_vm10, %v4062_v27 }
 0x933   :  { %4386 = vmatmul.mubr.bf16.vlgmr.msra.gmra.mxu0 %v3950_v62 }
 0x9f3   :  { %v4034_v1 = vpop.f32.mrf.mxu0 }
 0x9f4   :  { %v4035_v55 = vadd.f32 %v4347_v40, %v4034_v1 }
 0x9f5   :  { %v4387_v63 = vpop.f32.mrf.mxu0 }
 0x9f6   :  { %4041 = vst.msk [vmem:[%s7516_s6] sm:$0xff] %vm4040_vm11, %v4035_v55 }
 0x9f7   :  { %v4037_v36 = vpop.f32.mrf.mxu0 }
 0x9f9   :  { %v4388_v15 = vpop.f32.mrf.mxu0 }
 0x9fa   :  { %4106 = vsyncpa [#allocation3], 1 }

</bundles_post_ra>
